<compile_context>
chip_gen: v5e
topology: v5e:2x2
jax: 0.10.0
libtpu: 0.0.40
codegen_flags: <defaults>
</compile_context>

<pallas_src>
import jax
import jax.numpy as jnp
from jax.experimental import pallas as pl
from jax.experimental.pallas import tpu as pltpu

C_IN = 64
C_OUT = 256
K = 3
UPSCALE = 2
PRELU_INIT = 0.25


def _shufconv_kernel(x_ref, w_ref, b_ref, a_ref, o_ref):
    # x_ref: (1, TH+2, W+2, 64)  bf16 halo row-tile (zero-padded borders included)
    # w_ref: (3, 192, 256)       bf16 weights, layout [dy, dx*64 + ci, co]
    # b_ref: (1, 256)            f32 bias
    # a_ref: (1, 1)              f32 PReLU alpha (SMEM scalar)
    # o_ref: (1, TH, W, 256)     f32 conv + bias + PReLU output tile
    th = o_ref.shape[1]
    w = o_ref.shape[2]

    xt = x_ref[0]                                          # (TH+2, W+2, 64) bf16
    # Concatenate the three dx shifts along channels once per tile -> (TH+2, W, 192).
    xc = jnp.concatenate(
        [xt[:, 0:w, :], xt[:, 1:w + 1, :], xt[:, 2:w + 2, :]], axis=-1)

    # dy = 0: K=192 MXU matmul + bias, initializes the output block (f32).
    p = jnp.dot(xc[0:th].reshape(th * w, K * C_IN), w_ref[0],
                preferred_element_type=jnp.float32)
    o_ref[0] = (p + b_ref[...]).reshape(th, w, C_OUT)

    # dy = 1: accumulate into the output block (stays in VMEM).
    p = jnp.dot(xc[1:th + 1].reshape(th * w, K * C_IN), w_ref[1],
                preferred_element_type=jnp.float32)
    o_ref[0] = o_ref[0] + p.reshape(th, w, C_OUT)

    # dy = 2: accumulate + fused PReLU epilogue (single shared alpha commutes
    # with PixelShuffle, so applying it pre-shuffle is exact).
    p = jnp.dot(xc[2:th + 2].reshape(th * w, K * C_IN), w_ref[2],
                preferred_element_type=jnp.float32)
    y = o_ref[0] + p.reshape(th, w, C_OUT)
    alpha = a_ref[0, 0]
    o_ref[0] = jnp.where(y > 0, y, alpha * y)


def _pick_tile_rows(h, w, max_tile_pixels):
    """Largest divisor TH of H with TH*W <= max_tile_pixels (>= 1)."""
    th = 1
    for cand in range(1, h + 1):
        if h % cand == 0 and cand * w <= max_tile_pixels:
            th = cand
    return th


def shufblock_forward(x_nchw, w_oihw, bias, alpha, *, max_tile_pixels=2048):
    """x_nchw: (N, 64, H, W) f32 -> (N, 64, 2H, 2W) f32."""
    n, c, h, w = x_nchw.shape
    assert c == C_IN
    hp, wp = h + 2, w + 2

    # TODO(synk): very wide images (one W row-tile exceeding the VMEM budget) would
    # additionally need width tiling with a column halo; only row tiling is done here.
    th = _pick_tile_rows(h, w, max_tile_pixels)
    n_h = h // th

    # Input glue: NCHW -> NHWC, cast to bf16, zero-pad, gather overlapping row tiles.
    x_nhwc = jnp.transpose(x_nchw, (0, 2, 3, 1)).astype(jnp.bfloat16)
    x_pad = jnp.pad(x_nhwc, ((0, 0), (1, 1), (1, 1), (0, 0)))
    row_idx = (jnp.arange(n_h) * th)[:, None] + jnp.arange(th + 2)[None, :]
    x_tiles = x_pad[:, row_idx]                            # (N, nH, TH+2, Wp, 64)
    x_tiles = x_tiles.reshape(n * n_h, th + 2, wp, C_IN)

    # Weights: (O, I, 3, 3) -> (dy, dx*64 + ci, co), bf16.
    w_k = jnp.transpose(w_oihw, (2, 3, 1, 0)).reshape(K, K * C_IN, C_OUT)
    w_k = w_k.astype(jnp.bfloat16)
    b2 = bias.reshape(1, C_OUT).astype(jnp.float32)
    a2 = jnp.asarray(alpha, jnp.float32).reshape(1, 1)

    flops = 2 * K * K * C_IN * C_OUT * n * h * w
    bytes_accessed = (x_tiles.size * 2 + w_k.size * 2 + b2.size * 4
                      + n * h * w * C_OUT * 4)

    conv_out = pl.pallas_call(
        _shufconv_kernel,
        out_shape=jax.ShapeDtypeStruct((n, h, w, C_OUT), jnp.float32),
        grid=(n, n_h),
        in_specs=[
            pl.BlockSpec((1, th + 2, wp, C_IN),
                         lambda b, i: (b * n_h + i, 0, 0, 0)),
            pl.BlockSpec((K, K * C_IN, C_OUT), lambda b, i: (0, 0, 0)),
            pl.BlockSpec((1, C_OUT), lambda b, i: (0, 0)),
            pl.BlockSpec(memory_space=pltpu.MemorySpace.SMEM),
        ],
        out_specs=pl.BlockSpec((1, th, w, C_OUT), lambda b, i: (b, i, 0, 0)),
        compiler_params=pltpu.CompilerParams(
            dimension_semantics=("parallel", "parallel"),
            vmem_limit_bytes=32 * 1024 * 1024),
        cost_estimate=pl.CostEstimate(flops=flops, transcendentals=0,
                                      bytes_accessed=bytes_accessed),
    )(x_tiles, w_k, b2, a2)

    # PixelShuffle(2) + NHWC->NCHW in a single XLA transpose pass:
    # out[n, c, 2h+ry, 2w+rx] = conv[n, h, w, c*4 + ry*2 + rx]
    r = UPSCALE
    ps = conv_out.reshape(n, h, w, C_OUT // (r * r), r, r)
    out = jnp.transpose(ps, (0, 3, 1, 4, 2, 5)).reshape(
        n, C_OUT // (r * r), h * r, w * r)
    return out


def _reference(x_nchw, w_oihw, bias, alpha):
    conv = jax.lax.conv_general_dilated(
        x_nchw, w_oihw, window_strides=(1, 1), padding="SAME",
        dimension_numbers=("NCHW", "OIHW", "NCHW"))
    conv = conv + bias[None, :, None, None]
    n, _, h, w = x_nchw.shape
    r = UPSCALE
    ps = conv.reshape(n, C_OUT // (r * r), r, r, h, w)
    ps = jnp.transpose(ps, (0, 1, 4, 2, 5, 3)).reshape(
        n, C_OUT // (r * r), h * r, w * r)
    return jnp.where(ps > 0, ps, alpha * ps)


if __name__ == "__main__":
    key = jax.random.PRNGKey(0)
    k_x, k_w, k_b = jax.random.split(key, 3)

    n, h, w = 2, 16, 16
    x = jax.random.normal(k_x, (n, C_IN, h, w), jnp.float32)
    # Deterministic synthetic params (shapes per nn.Conv2d(64, 256, 3), PReLU()).
    wt = jax.random.normal(k_w, (C_OUT, C_IN, K, K), jnp.float32) * 0.05
    b = jax.random.normal(k_b, (C_OUT,), jnp.float32) * 0.1
    alpha = jnp.float32(PRELU_INIT)

    fwd = jax.jit(shufblock_forward, static_argnames=("max_tile_pixels",))

    out = jax.block_until_ready(fwd(x, wt, b, alpha, max_tile_pixels=2048))   # 1 tile/image
    out_tiled = jax.block_until_ready(fwd(x, wt, b, alpha, max_tile_pixels=64))  # 4 row tiles
    ref = jax.block_until_ready(_reference(x, wt, b, alpha))

    assert out.shape == (n, C_OUT // (UPSCALE * UPSCALE), h * UPSCALE, w * UPSCALE)
    # bf16 MXU matmuls with f32 accumulation -> looser tolerance than pure f32.
    assert jnp.allclose(out, ref, atol=3e-2, rtol=3e-2), "mismatch vs JAX reference"
    assert jnp.allclose(out_tiled, ref, atol=3e-2, rtol=3e-2), "tiled mismatch vs JAX reference"
    print("KERNEL_OK")
</pallas_src>

<mosaic_0001>
module attributes {stable_mosaic.version = 11 : i64} {
  func.func @_shufconv_kernel(%arg0: i32, %arg1: i32, %arg2: memref<1x18x18x64xbf16, #tpu.memory_space<vmem>>, %arg3: memref<3x192x256xbf16, #tpu.memory_space<vmem>>, %arg4: memref<1x256xf32, #tpu.memory_space<vmem>>, %arg5: memref<1x1xf32, #tpu.memory_space<smem>>, %arg6: memref<1x16x16x256xf32, #tpu.memory_space<vmem>>) attributes {dimension_semantics = [#tpu.dimension_semantics<parallel>, #tpu.dimension_semantics<parallel>], iteration_bounds = array<i64: 2, 1>, scalar_prefetch = 0 : i64, scratch_operands = 0 : i64, tpu.core_type = #tpu.core_type<tc>, window_params = [{transform_indices = @transform_0, window_bounds = array<i64: 1, 18, 18, 64>}, {pipeline_mode = #tpu.pipeline_mode<synchronous>, transform_indices = @transform_1, window_bounds = array<i64: 3, 192, 256>}, {pipeline_mode = #tpu.pipeline_mode<synchronous>, transform_indices = @transform_2, window_bounds = array<i64: 1, 256>}, {transform_indices = @transform_3, window_bounds = array<i64: 1, 1>}, {transform_indices = @transform_4, window_bounds = array<i64: 1, 16, 16, 256>}]} {
    %c0 = arith.constant 0 : index
    %c0_0 = arith.constant 0 : index
    %c0_1 = arith.constant 0 : index
    %c0_2 = arith.constant 0 : index
    %0 = vector.load %arg2[%c0, %c0_0, %c0_1, %c0_2] : memref<1x18x18x64xbf16, #tpu.memory_space<vmem>>, vector<1x18x18x64xbf16>
    %1 = vector.shape_cast %0 : vector<1x18x18x64xbf16> to vector<18x18x64xbf16>
    %2 = vector.extract_strided_slice %1 {offsets = [0, 0, 0], sizes = [18, 16, 64], strides = [1, 1, 1]} : vector<18x18x64xbf16> to vector<18x16x64xbf16>
    %3 = vector.extract_strided_slice %1 {offsets = [0, 1, 0], sizes = [18, 16, 64], strides = [1, 1, 1]} : vector<18x18x64xbf16> to vector<18x16x64xbf16>
    %4 = vector.extract_strided_slice %1 {offsets = [0, 2, 0], sizes = [18, 16, 64], strides = [1, 1, 1]} : vector<18x18x64xbf16> to vector<18x16x64xbf16>
    %5 = tpu.concatenate %2, %3, %4 in 2 : vector<18x16x64xbf16>, vector<18x16x64xbf16>, vector<18x16x64xbf16> -> vector<18x16x192xbf16>
    %6 = vector.extract_strided_slice %5 {offsets = [0, 0, 0], sizes = [16, 16, 192], strides = [1, 1, 1]} : vector<18x16x192xbf16> to vector<16x16x192xbf16>
    %7 = vector.shape_cast %6 : vector<16x16x192xbf16> to vector<256x192xbf16>
    %c0_3 = arith.constant 0 : index
    %c0_4 = arith.constant 0 : index
    %c0_5 = arith.constant 0 : index
    %8 = vector.load %arg3[%c0_3, %c0_4, %c0_5] : memref<3x192x256xbf16, #tpu.memory_space<vmem>>, vector<1x192x256xbf16>
    %9 = vector.shape_cast %8 : vector<1x192x256xbf16> to vector<192x256xbf16>
    %cst = arith.constant dense<0.000000e+00> : vector<256x256xf32>
    %10 = tpu.matmul %7, %9, %cst {dimension_numbers = #tpu.dot_dimension_numbers<[1], [0], [0], [1], [0, 0, 1, 1], [], []>} : vector<256x192xbf16>, vector<192x256xbf16>, vector<256x256xf32> -> vector<256x256xf32>
    %c0_6 = arith.constant 0 : index
    %c0_7 = arith.constant 0 : index
    %11 = vector.load %arg4[%c0_6, %c0_7] : memref<1x256xf32, #tpu.memory_space<vmem>>, vector<1x256xf32>
    %12 = vector.broadcast %11 : vector<1x256xf32> to vector<256x256xf32>
    %13 = arith.addf %10, %12 : vector<256x256xf32>
    %14 = vector.shape_cast %13 : vector<256x256xf32> to vector<16x16x256xf32>
    %c0_8 = arith.constant 0 : index
    %c0_9 = arith.constant 0 : index
    %c0_10 = arith.constant 0 : index
    %c0_11 = arith.constant 0 : index
    %15 = vector.load %arg6[%c0_8, %c0_9, %c0_10, %c0_11] : memref<1x16x16x256xf32, #tpu.memory_space<vmem>>, vector<1x16x16x256xf32>
    %16 = vector.shape_cast %15 : vector<1x16x16x256xf32> to vector<16x16x256xf32>
    %17 = vector.shape_cast %14 : vector<16x16x256xf32> to vector<1x16x16x256xf32>
    tpu.vector_store %arg6[%c0_8, %c0_9, %c0_10, %c0_11], %17 {strides = array<i32>} : memref<1x16x16x256xf32, #tpu.memory_space<vmem>>, vector<1x16x16x256xf32>,
    %18 = vector.extract_strided_slice %5 {offsets = [1, 0, 0], sizes = [16, 16, 192], strides = [1, 1, 1]} : vector<18x16x192xbf16> to vector<16x16x192xbf16>
    %19 = vector.shape_cast %18 : vector<16x16x192xbf16> to vector<256x192xbf16>
    %c1 = arith.constant 1 : index
    %c0_12 = arith.constant 0 : index
    %c0_13 = arith.constant 0 : index
    %20 = vector.load %arg3[%c1, %c0_12, %c0_13] : memref<3x192x256xbf16, #tpu.memory_space<vmem>>, vector<1x192x256xbf16>
    %21 = vector.shape_cast %20 : vector<1x192x256xbf16> to vector<192x256xbf16>
    %cst_14 = arith.constant dense<0.000000e+00> : vector<256x256xf32>
    %22 = tpu.matmul %19, %21, %cst_14 {dimension_numbers = #tpu.dot_dimension_numbers<[1], [0], [0], [1], [0, 0, 1, 1], [], []>} : vector<256x192xbf16>, vector<192x256xbf16>, vector<256x256xf32> -> vector<256x256xf32>
    %c0_15 = arith.constant 0 : index
    %c0_16 = arith.constant 0 : index
    %c0_17 = arith.constant 0 : index
    %c0_18 = arith.constant 0 : index
    %23 = vector.load %arg6[%c0_15, %c0_16, %c0_17, %c0_18] : memref<1x16x16x256xf32, #tpu.memory_space<vmem>>, vector<1x16x16x256xf32>
    %24 = vector.shape_cast %23 : vector<1x16x16x256xf32> to vector<16x16x256xf32>
    %25 = vector.shape_cast %22 : vector<256x256xf32> to vector<16x16x256xf32>
    %26 = arith.addf %24, %25 : vector<16x16x256xf32>
    %c0_19 = arith.constant 0 : index
    %c0_20 = arith.constant 0 : index
    %c0_21 = arith.constant 0 : index
    %c0_22 = arith.constant 0 : index
    %27 = vector.load %arg6[%c0_19, %c0_20, %c0_21, %c0_22] : memref<1x16x16x256xf32, #tpu.memory_space<vmem>>, vector<1x16x16x256xf32>
    %28 = vector.shape_cast %27 : vector<1x16x16x256xf32> to vector<16x16x256xf32>
    %29 = vector.shape_cast %26 : vector<16x16x256xf32> to vector<1x16x16x256xf32>
    tpu.vector_store %arg6[%c0_19, %c0_20, %c0_21, %c0_22], %29 {strides = array<i32>} : memref<1x16x16x256xf32, #tpu.memory_space<vmem>>, vector<1x16x16x256xf32>,
    %30 = vector.extract_strided_slice %5 {offsets = [2, 0, 0], sizes = [16, 16, 192], strides = [1, 1, 1]} : vector<18x16x192xbf16> to vector<16x16x192xbf16>
    %31 = vector.shape_cast %30 : vector<16x16x192xbf16> to vector<256x192xbf16>
    %c2 = arith.constant 2 : index
    %c0_23 = arith.constant 0 : index
    %c0_24 = arith.constant 0 : index
    %32 = vector.load %arg3[%c2, %c0_23, %c0_24] : memref<3x192x256xbf16, #tpu.memory_space<vmem>>, vector<1x192x256xbf16>
    %33 = vector.shape_cast %32 : vector<1x192x256xbf16> to vector<192x256xbf16>
    %cst_25 = arith.constant dense<0.000000e+00> : vector<256x256xf32>
    %34 = tpu.matmul %31, %33, %cst_25 {dimension_numbers = #tpu.dot_dimension_numbers<[1], [0], [0], [1], [0, 0, 1, 1], [], []>} : vector<256x192xbf16>, vector<192x256xbf16>, vector<256x256xf32> -> vector<256x256xf32>
    %c0_26 = arith.constant 0 : index
    %c0_27 = arith.constant 0 : index
    %c0_28 = arith.constant 0 : index
    %c0_29 = arith.constant 0 : index
    %35 = vector.load %arg6[%c0_26, %c0_27, %c0_28, %c0_29] : memref<1x16x16x256xf32, #tpu.memory_space<vmem>>, vector<1x16x16x256xf32>
    %36 = vector.shape_cast %35 : vector<1x16x16x256xf32> to vector<16x16x256xf32>
    %37 = vector.shape_cast %34 : vector<256x256xf32> to vector<16x16x256xf32>
    %38 = arith.addf %36, %37 : vector<16x16x256xf32>
    %c0_30 = arith.constant 0 : index
    %c0_31 = arith.constant 0 : index
    %39 = memref.load %arg5[%c0_30, %c0_31] : memref<1x1xf32, #tpu.memory_space<smem>>
    %cst_32 = arith.constant 0.000000e+00 : f32
    %40 = vector.broadcast %cst_32 : f32 to vector<16x16x256xf32>
    %41 = arith.cmpf ogt, %38, %40 : vector<16x16x256xf32>
    %42 = vector.broadcast %39 : f32 to vector<16x16x256xf32>
    %43 = arith.mulf %42, %38 : vector<16x16x256xf32>
    %44 = arith.select %41, %38, %43 : vector<16x16x256xi1>, vector<16x16x256xf32>
    %c0_33 = arith.constant 0 : index
    %c0_34 = arith.constant 0 : index
    %c0_35 = arith.constant 0 : index
    %c0_36 = arith.constant 0 : index
    %45 = vector.load %arg6[%c0_33, %c0_34, %c0_35, %c0_36] : memref<1x16x16x256xf32, #tpu.memory_space<vmem>>, vector<1x16x16x256xf32>
    %46 = vector.shape_cast %45 : vector<1x16x16x256xf32> to vector<16x16x256xf32>
    %47 = vector.shape_cast %44 : vector<16x16x256xf32> to vector<1x16x16x256xf32>
    tpu.vector_store %arg6[%c0_33, %c0_34, %c0_35, %c0_36], %47 {strides = array<i32>} : memref<1x16x16x256xf32, #tpu.memory_space<vmem>>, vector<1x16x16x256xf32>,
    return
  }
  func.func @transform_0(%arg0: i32, %arg1: i32) -> (i32, i32, i32, i32) {
    %c1_i32 = arith.constant 1 : i32
    %0 = arith.muli %arg0, %c1_i32 : i32
    %1 = arith.addi %0, %arg1 : i32
    %c0_i32 = arith.constant 0 : i32
    %c0_i32_0 = arith.constant 0 : i32
    %c0_i32_1 = arith.constant 0 : i32
    %c0_i32_2 = arith.constant 0 : i32
    return %1, %c0_i32, %c0_i32_0, %c0_i32_1 : i32, i32, i32, i32
  }
  func.func @transform_1(%arg0: i32, %arg1: i32) -> (i32, i32, i32) {
    %c0_i32 = arith.constant 0 : i32
    %c0_i32_0 = arith.constant 0 : i32
    %c0_i32_1 = arith.constant 0 : i32
    %c0_i32_2 = arith.constant 0 : i32
    return %c0_i32, %c0_i32_0, %c0_i32_1 : i32, i32, i32
  }
  func.func @transform_2(%arg0: i32, %arg1: i32) -> (i32, i32) {
    %c0_i32 = arith.constant 0 : i32
    %c0_i32_0 = arith.constant 0 : i32
    %c0_i32_1 = arith.constant 0 : i32
    return %c0_i32, %c0_i32_0 : i32, i32
  }
  func.func @transform_3(%arg0: i32, %arg1: i32) -> (i32, i32) {
    %c0_i32 = arith.constant 0 : i32
    %c0_i32_0 = arith.constant 0 : i32
    %c0_i32_1 = arith.constant 0 : i32
    return %c0_i32, %c0_i32_0 : i32, i32
  }
  func.func @transform_4(%arg0: i32, %arg1: i32) -> (i32, i32, i32, i32) {
    %c0_i32 = arith.constant 0 : i32
    %c0_i32_0 = arith.constant 0 : i32
    %c0_i32_1 = arith.constant 0 : i32
    return %arg0, %arg1, %c0_i32, %c0_i32_0 : i32, i32, i32, i32
  }
}

</mosaic_0001>

<bundles_post_ra>
// kernel: shufblock_forward.1
= control target key start
LH: loop header
LB: loop body
LE: loop exit
PB: predicated region body
PF: predicated region fallthrough
CT: control target
= control target key end

     0   :  { %s5615_s0 = inlined_call_operand.vmem [shape: bf16[2,18,18,64], index: 0, kind: input, shape index: {}]   ;;  %s5616_s1 = inlined_call_operand.vmem [shape: bf16[3,192,256], index: 1, kind: input, shape index: {}]   ;;  %s5617_s2 = inlined_call_operand.hbm [shape: f32[1,256], index: 2, kind: input, shape index: {}]   ;;  %s5618_s3 = inlined_call_operand.<no memory space> [shape: f32[1,1], index: 3, kind: input, shape index: {}]   ;;  %s5619_s4 = inlined_call_operand.vmem [shape: f32[2,16,16,256], index: 4, kind: output, shape index: {}]  }
   0x1   :  { %9 = sst [smem:[#allocation2]] %s5618_s3 }
   0x2   :  { %10 = vsyncpa [#allocation4], 0  ;;  %s3843_s17 = smov 0   ;;  %s3845_s18 = smov 0  }
   0x3   :  { %s3847_s19 = smov 0  }
   0x4 LB: > { %s3111_s3 = sadd.s32 4294967295, %s3811_s19   ;;  %s28_s20 = sadd.s32 1, %s3807_s18  ;;  %s3811_s19 = sphi %s3847_s19, %s16_s19   ;;  %s3807_s18 = sphi %s3845_s18, %s5735_s18   ;;  %s3803_s17 = sphi %s3843_s17, %s5734_s17  }
   0x5   : > { %p30_p0 = scmp.ge.s32.totalorder %s28_s20, 2  ;;  %p3113_p1 = scmp.ge.s32.totalorder %s3811_s19, 1 }
   0x6   : > { %p152_p2 = scmp.lt.s32.totalorder %s3811_s19, 3  ;;  %p3727_p4 = scmp.eq.s32.totalorder %s3111_s3, 0 }
   0x7   : > { %s5737_s20 = smov (%p30_p0, %s28_s20), 0  ;;  %s167_s23 = sshll.u32 %s5617_s2, 4  ;;  %s168_s23 = int_to_ptr.hbm [resolvable:$true] %s167_s23 }
   0x8   : > { %p153_p3 = pnand %p3113_p1, %p152_p2  ;;  %s3813_s24 = smov [#allocation3]  }
   0x9   : > { %s169_s25 = sshll.u32 %s3813_s24, 4  ;;  %s170_s25 = int_to_ptr.vmem [resolvable:$true] %s169_s25 }
   0xa   : > { %p3723_p5 = pneg %p153_p3  ;;  %195 = sbr.rel (%p153_p3) target bundleno = 1048 (0x418), region = 36 }
   0xc   : > { %p3724_p6 = pnand %p3727_p4, %p3723_p5 }
   0xe   : > { %3726 = dma.hbm_to_vmem [thread:$0]  (!%p3724_p6), %s168_s23, 32, %s170_s25, [#allocation4]  }
   0xf   : > { %3798 = dma.done.wait (%p3727_p4), [#allocation4], 32  }
  0x10   : > { %3800 = vsyncadd (%p3727_p4), [#allocation4], 4294967264  ;;  %p229_p7 = scmp.lt.s32.totalorder %s3803_s17, 1  ;;  %v3283_v0 = vld [vmem:[%s5616_s1 + $0xb0] sm:$0xf]  ;;  %vm698_vm1 = vcmask 1046528  }
  0x11   : > { %v3669_v1 = vld [vmem:[%s5616_s1 + $0xb4] sm:$0xf0]  ;;  %v3668_v2 = vld [vmem:[%s5616_s1 + $0xb4] sm:$0xf]  ;;  %v3285_v4 = vld [vmem:[%s5616_s1 + $0xb8] sm:$0xf0] }
  0x12   : > { %s5739_s17 = smov (!%p229_p7, %s3803_s17), 1  ;;  %v3284_v3 = vor.u32 %v3669_v1, %v3283_v0  ;;  %v3275_v5 = vld [vmem:[%s5616_s1 + $0xa0] sm:$0xf]  ;;  %v3667_v6 = vld [vmem:[%s5616_s1 + $0xa4] sm:$0xf0]  ;;  %v3288_v7 = vor.u32 %v3668_v2, %v3285_v4  ;;  %s3814_s14 = smov 64  }
  0x13   : > { %s3718_s26 = smul.u32 216, %s5739_s17  ;;  %v3666_v8 = vld [vmem:[%s5616_s1 + $0xa4] sm:$0xf]  ;;  %v3277_v9 = vld [vmem:[%s5616_s1 + $0xa8] sm:$0xf0]  ;;  %v3276_v11 = vor.u32 %v3667_v6, %v3275_v5  ;;  %vm753_vm2 = vcmask 523264  }
  0x14   : > { %1099 = vmatpush.bf16.msra.mxu1 %v3284_v3  ;;  %1277 = vmatpush.bf16.msra.mxu3 %v3288_v7  ;;  %v3280_v13 = vor.u32 %v3666_v8, %v3277_v9  ;;  %v3267_v17 = vld [vmem:[%s5616_s1 + $0x90] sm:$0xf]  ;;  %v3665_v18 = vld [vmem:[%s5616_s1 + $0x94] sm:$0xf0]  ;;  %vm445_vm0 = vsmask.f32 7424 }
  0x15   : > { %s3871_s29 = scalar_lea.vmem %s5615_s0, %s3718_s26  ;;  %v3664_v19 = vld [vmem:[%s5616_s1 + $0x94] sm:$0xf]  ;;  %v3269_v20 = vld [vmem:[%s5616_s1 + $0x98] sm:$0xf0]  ;;  %v3259_v23 = vld [vmem:[%s5616_s1 + $0x80] sm:$0xf]  ;;  %v3268_v26 = vor.u32 %v3665_v18, %v3267_v17 }
  0x16   : > { %v3898_v10 = vld [vmem:[%s3871_s29] sm:$0xff]  ;;  %v249_v12 = vld [vmem:[%s3871_s29 + $0x8] sm:$0x1]  ;;  %v3922_v25 = vld [vmem:[%s3871_s29 + $0xc] sm:$0xff]  ;;  %v3272_v32 = vor.u32 %v3664_v19, %v3269_v20  ;;  %s3627_s11 = sshll.u32 %s5739_s17, 9 }
  0x17   : > { %v409_v14 = vunpack.c.l.b16 %v249_v12  ;;  %v447_v15 = vshrl.u32 %v3898_v10, 16  ;;  %v449_v16 = vshll.u32 %v3898_v10, 16  ;;  %v3663_v24 = vld [vmem:[%s5616_s1 + $0x84] sm:$0xf0]  ;;  %v252_v27 = vld [vmem:[%s3871_s29 + $0x14] sm:$0x1]  ;;  %s4541_s15 = scalar_lea.vmem %s5619_s4, %s3627_s11 }
  0x18   : > { %1100 = vmatpush.bf16.msra.mxu1 %v3276_v11  ;;  %v3926_v28 = vld [vmem:[%s3871_s29 + $0x18] sm:$0xff]  ;;  %v255_v29 = vld [vmem:[%s3871_s29 + $0x20] sm:$0x1]  ;;  %1278 = vmatpush.bf16.msra.mxu3 %v3280_v13  ;;  %v410_v33 = vunpack.c.l.b16 %v252_v27  ;;  %v3260_v34 = vor.u32 %v3663_v24, %v3259_v23  ;;  %v3662_v35 = vld [vmem:[%s5616_s1 + $0x84] sm:$0xf]  ;;  %v699_v37 = vrot.slane %v3898_v10, 1 }
  0x19   : > { %v427_v21 = vpack.c.b16 %v409_v14, %v409_v14  ;;  %v451_v22 = vrot.slane %v449_v16, 1  ;;  %v3261_v36 = vld [vmem:[%s5616_s1 + $0x88] sm:$0xf0]  ;;  %v461_v38 = vshll.u32 %v3922_v25, 16  ;;  %v411_v39 = vunpack.c.l.b16 %v255_v29  ;;  %v3949_v60 = vld [vmem:[%s3871_s29 + $0x24] sm:$0xff]  ;;  %v3973_v16 = vld [vmem:[%s3871_s29 + $0x30] sm:$0xff] }
  0x1a   : > { %v428_v42 = vpack.c.b16 %v410_v33, %v410_v33  ;;  %v459_v43 = vshrl.u32 %v3922_v25, 16  ;;  %v471_v46 = vshrl.u32 %v3926_v28, 16  ;;  %v473_v47 = vshll.u32 %v3926_v28, 16  ;;  %v258_v61 = vld [vmem:[%s3871_s29 + $0x2c] sm:$0x1] }
  0x1b   : > { %v452_v30 = vor.u32 %v451_v22, %v447_v15  ;;  %v454_v31 = vshll.u32 %v427_v21, 16  ;;  %v700_v41 = vrot.slane %v427_v21, 1  ;;  %v463_v44 = vrot.slane %v461_v38, 1  ;;  %v261_v13 = vld [vmem:[%s3871_s29 + $0x38] sm:$0x1] }
  0x1c   : > { %1101 = vmatpush.bf16.msra.mxu1 %v3268_v26  ;;  %v429_v45 = vpack.c.b16 %v411_v39, %v411_v39  ;;  %1279 = vmatpush.bf16.msra.mxu3 %v3272_v32  ;;  %v3264_v49 = vor.u32 %v3662_v35, %v3261_v36  ;;  %v466_v50 = vshll.u32 %v428_v42, 16  ;;  %v475_v51 = vrot.slane %v473_v47, 1  ;;  %v3251_v18 = vld [vmem:[%s5616_s1 + $0x70] sm:$0xf]  ;;  %v3661_v19 = vld [vmem:[%s5616_s1 + $0x74] sm:$0xf0] }
  0x1d   : > { %v456_v40 = vrot.slane %v454_v31, 1  ;;  %v464_v53 = vor.u32 %v463_v44, %v459_v43  ;;  %v701_v55 = vsel %vm698_vm1, %v699_v37, %v700_v41  ;;  %v412_v62 = vunpack.c.l.b16 %v258_v61  ;;  %v3660_v20 = vld [vmem:[%s5616_s1 + $0x74] sm:$0xf]  ;;  %v3253_v22 = vld [vmem:[%s5616_s1 + $0x78] sm:$0xf0] }
  0x1e   : > { %v478_v52 = vshll.u32 %v429_v45, 16  ;;  %v468_v54 = vrot.slane %v466_v50, 1  ;;  %v476_v56 = vor.u32 %v475_v51, %v471_v46  ;;  %v483_v63 = vshrl.u32 %v3949_v60, 16  ;;  %v264_v36 = vld [vmem:[%s3871_s29 + $0x44] sm:$0x1] }
  0x1f   : > { %v457_v48 = vsel %vm445_vm0, %v452_v30, %v456_v40  ;;  %v485_v0 = vshll.u32 %v3949_v60, 16  ;;  %v430_v1 = vpack.c.b16 %v412_v62, %v412_v62  ;;  %v702_v6 = vrot.slane %v3922_v25, 1  ;;  %v3243_v37 = vld [vmem:[%s5616_s1 + $0x60] sm:$0xf]  ;;  %v3659_v38 = vld [vmem:[%s5616_s1 + $0x64] sm:$0xf0] }
  0x20   : > { %662 = vrot.lane.b32.xlu0 %v457_v48, %s3814_s14  ;;  %1102 = vmatpush.bf16.msra.mxu1 %v3260_v34  ;;  %v480_v57 = vrot.slane %v478_v52, 1  ;;  %v469_v59 = vsel %vm445_vm0, %v464_v53, %v468_v54  ;;  %v703_v7 = vrot.slane %v428_v42, 1  ;;  %v706_v11 = vrot.slane %v429_v45, 1  ;;  %v3658_v39 = vld [vmem:[%s5616_s1 + $0x64] sm:$0xf]  ;;  %v4030_v48 = vld [vmem:[%s3871_s29 + $0x48] sm:$0xff] }
  0x21   : > { %1280 = vmatpush.bf16.msra.mxu3 %v3264_v49  ;;  %v487_v2 = vrot.slane %v485_v0, 1  ;;  %v490_v3 = vshll.u32 %v430_v1, 16  ;;  %v705_v12 = vrot.slane %v3926_v28, 1  ;;  %v413_v14 = vunpack.c.l.b16 %v261_v13  ;;  %v3245_v42 = vld [vmem:[%s5616_s1 + $0x68] sm:$0xf0]  ;;  %v4033_v49 = vld [vmem:[%s3871_s29 + $0x3c] sm:$0xff] }
  0x22   : > { %v481_v58 = vsel %vm445_vm0, %v476_v56, %v480_v57  ;;  %v3959_v9 = vsel %vm698_vm1, %v702_v6, %v703_v7  ;;  %v3252_v21 = vor.u32 %v3661_v19, %v3251_v18  ;;  %v495_v23 = vshrl.u32 %v3973_v16, 16  ;;  %v3235_v43 = vld [vmem:[%s5616_s1 + $0x50] sm:$0xf]  ;;  %v3657_v44 = vld [vmem:[%s5616_s1 + $0x54] sm:$0xf0] }
  0x23   : > { %3289 = vmatmul.msk.bf16.vlgmr.msra.gmra.mxu1 %vm753_vm2, %v701_v55  ;;  %666 = vrot.lane.b32.xlu1 %v481_v58, %s3814_s14  ;;  %v488_v4 = vor.u32 %v487_v2, %v483_v63  ;;  %v492_v5 = vrot.slane %v490_v3, 1  ;;  %v3968_v15 = vsel %vm698_vm1, %v705_v12, %v706_v11  ;;  %v3975_v17 = vpack.c.b16 %v413_v14, %v413_v14  ;;  %v3656_v46 = vld [vmem:[%s5616_s1 + $0x54] sm:$0xf]  ;;  %v3237_v47 = vld [vmem:[%s5616_s1 + $0x58] sm:$0xf0] }
  0x24   : > { %3305 = vmatmul.msk.bf16.vlgmr.msra.gmra.mxu3 %vm753_vm2, %v701_v55  ;;  %v497_v24 = vshll.u32 %v3973_v16, 16  ;;  %v3256_v27 = vor.u32 %v3660_v20, %v3253_v22  ;;  %1006 = vmatpush.bf16.msra.mxu0 %v3252_v21  ;;  %v709_v33 = vrot.slane %v430_v1, 1  ;;  %v708_v34 = vrot.slane %v3949_v60, 1  ;;  %v267_v51 = vld [vmem:[%s3871_s29 + $0x50] sm:$0x1] }
  0x25   : > { %v493_v8 = vsel %vm445_vm0, %v488_v4, %v492_v5  ;;  %v502_v26 = vshll.u32 %v3975_v17, 16  ;;  %v414_v40 = vunpack.c.l.b16 %v264_v36  ;;  %v3244_v41 = vor.u32 %v3659_v38, %v3243_v37  ;;  %v3227_v56 = vld [vmem:[%s5616_s1 + $0x40] sm:$0xf]  ;;  %v3655_v57 = vld [vmem:[%s5616_s1 + $0x44] sm:$0xf0] }
  0x26   : > { %v499_v29 = vrot.slane %v497_v24, 1  ;;  %1184 = vmatpush.bf16.msra.mxu2 %v3256_v27  ;;  %v3998_v35 = vsel %vm698_vm1, %v708_v34, %v709_v33  ;;  %v3248_v45 = vor.u32 %v3658_v39, %v3245_v42  ;;  %v3236_v50 = vor.u32 %v3657_v44, %v3235_v43  ;;  %v3229_v61 = vld [vmem:[%s5616_s1 + $0x48] sm:$0xf0]  ;;  %v3219_v11 = vld [vmem:[%s5616_s1 + $0x30] sm:$0xf]  ;;  %v4108_v39 = vld [vmem:[%s3871_s29 + $0x54] sm:$0xff] }
  0x27   : > { %v504_v30 = vrot.slane %v502_v26, 1  ;;  %v3240_v52 = vor.u32 %v3656_v46, %v3237_v47  ;;  %v415_v53 = vunpack.c.l.b16 %v267_v51  ;;  %v519_v54 = vshrl.u32 %v4030_v48, 16  ;;  %v3653_v12 = vld [vmem:[%s5616_s1 + $0x34] sm:$0xf0]  ;;  %v3652_v14 = vld [vmem:[%s5616_s1 + $0x34] sm:$0xf] }
  0x28   : > { %664 = vrot.lane.b32.xlu0 %v469_v59, %s3814_s14  ;;  %v500_v31 = vor.u32 %v499_v29, %v495_v23  ;;  %1007 = vmatpush.bf16.msra.mxu0 %v3244_v41  ;;  %v521_v55 = vshll.u32 %v4030_v48, 16  ;;  %v4044_v58 = vpack.c.b16 %v414_v40, %v414_v40  ;;  %v3654_v59 = vld [vmem:[%s5616_s1 + $0x44] sm:$0xf]  ;;  %v507_v0 = vshrl.u32 %v4033_v49, 16  ;;  %v3211_v27 = vld [vmem:[%s5616_s1 + $0x20] sm:$0xf] }
  0x29   : > { %v4052_v62 = vpack.c.b16 %v415_v53, %v415_v53  ;;  %v509_v1 = vshll.u32 %v4033_v49, 16  ;;  %v711_v2 = vrot.slane %v3973_v16, 1  ;;  %v712_v3 = vrot.slane %v3975_v17, 1  ;;  %v3221_v17 = vld [vmem:[%s5616_s1 + $0x38] sm:$0xf0] }
  0x2a   : > { %v505_v32 = vsel %vm445_vm0, %v500_v31, %v504_v30  ;;  %1185 = vmatpush.bf16.msra.mxu2 %v3248_v45  ;;  %v523_v63 = vrot.slane %v521_v55, 1  ;;  %v3228_v4 = vor.u32 %v3655_v57, %v3227_v56  ;;  %v514_v5 = vshll.u32 %v4044_v58, 16  ;;  %v3651_v29 = vld [vmem:[%s5616_s1 + $0x24] sm:$0xf0]  ;;  %v3650_v30 = vld [vmem:[%s5616_s1 + $0x24] sm:$0xf] }
  0x2b   : > { %668 = vrot.lane.b32.xlu1 %v493_v8, %s3814_s14  ;;  %670 = vrot.lane.b32.xlu2 %v505_v32, %s3814_s14  ;;  %v526_v7 = vshll.u32 %v4052_v62, 16  ;;  %v3232_v8 = vor.u32 %v3654_v59, %v3229_v61  ;;  %v511_v13 = vrot.slane %v509_v1, 1  ;;  %v3220_v21 = vor.u32 %v3653_v12, %v3219_v11  ;;  %v3213_v32 = vld [vmem:[%s5616_s1 + $0x28] sm:$0xf0]  ;;  %v3203_v33 = vld [vmem:[%s5616_s1 + $0x10] sm:$0xf] }
  0x2c   : > { %1008 = vmatpush.bf16.msra.mxu0 %v3236_v50  ;;  %v524_v6 = vor.u32 %v523_v63, %v519_v54  ;;  %v516_v18 = vrot.slane %v514_v5, 1  ;;  %v4073_v22 = vsel %vm698_vm1, %v711_v2, %v712_v3  ;;  %v3224_v24 = vor.u32 %v3652_v14, %v3221_v17  ;;  %v3649_v34 = vld [vmem:[%s5616_s1 + $0x14] sm:$0xf0]  ;;  %v3648_v37 = vld [vmem:[%s5616_s1 + $0x14] sm:$0xf] }
  0x2d   : > { %v528_v19 = vrot.slane %v526_v7, 1  ;;  %v512_v20 = vor.u32 %v511_v13, %v507_v0  ;;  %v3212_v31 = vor.u32 %v3651_v29, %v3211_v27  ;;  %v3216_v36 = vor.u32 %v3650_v30, %v3213_v32  ;;  %v3205_v38 = vld [vmem:[%s5616_s1 + $0x18] sm:$0xf0]  ;;  %v3195_v46 = vld [vmem:[%s5616_s1] sm:$0xf] }
  0x2e   : > { %1186 = vmatpush.bf16.msra.mxu2 %v3240_v52  ;;  %v3204_v40 = vor.u32 %v3649_v34, %v3203_v33  ;;  %v270_v41 = vld [vmem:[%s3871_s29 + $0x5c] sm:$0x1]  ;;  %v3208_v42 = vor.u32 %v3648_v37, %v3205_v38  ;;  %v531_v44 = vshrl.u32 %v4108_v39, 16  ;;  %v533_v45 = vshll.u32 %v4108_v39, 16  ;;  %v3647_v47 = vld [vmem:[%s5616_s1 + $0x4] sm:$0xf0] }
  0x2f   : > { %v529_v23 = vsel %vm445_vm0, %v524_v6, %v528_v19  ;;  %v517_v26 = vsel %vm445_vm0, %v512_v20, %v516_v18  ;;  %v416_v43 = vunpack.c.l.b16 %v270_v41  ;;  %v3646_v50 = vld [vmem:[%s5616_s1 + $0x4] sm:$0xf]  ;;  %v3197_v51 = vld [vmem:[%s5616_s1 + $0x8] sm:$0xf0]  ;;  %v714_v54 = vrot.slane %v4033_v49, 1 }
  0x30   : > { %1009 = vmatpush.bf16.msra.mxu0 %v3228_v4  ;;  %674 = vrot.lane.b32.xlu0 %v529_v23, %s3814_s14  ;;  %v535_v53 = vrot.slane %v533_v45, 1  ;;  %v3196_v55 = vor.u32 %v3647_v47, %v3195_v46  ;;  %v715_v56 = vrot.slane %v4044_v58, 1  ;;  %v3200_v61 = vor.u32 %v3646_v50, %v3197_v51  ;;  %v3435_v2 = vld [vmem:[%s5616_s1 + $0x170] sm:$0xf]  ;;  %v3693_v58 = vld [vmem:[%s5616_s1 + $0x174] sm:$0xf0] }
  0x31   : > { %v434_v52 = vpack.c.b16 %v416_v43, %v416_v43  ;;  %v3692_v3 = vld [vmem:[%s5616_s1 + $0x174] sm:$0xf]  ;;  %v3436_v4 = vor.u32 %v3693_v58, %v3435_v2  ;;  %v3437_v5 = vld [vmem:[%s5616_s1 + $0x178] sm:$0xf0]  ;;  %v3403_v7 = vld [vmem:[%s5616_s1 + $0x130] sm:$0xf] }
  0x32   : > { %1187 = vmatpush.bf16.msra.mxu2 %v3232_v8  ;;  %v536_v57 = vor.u32 %v535_v53, %v531_v44  ;;  %v4128_v0 = vsel %vm698_vm1, %v714_v54, %v715_v56  ;;  %v3440_v6 = vor.u32 %v3692_v3, %v3437_v5  ;;  %v3685_v8 = vld [vmem:[%s5616_s1 + $0x134] sm:$0xf0]  ;;  %v3684_v11 = vld [vmem:[%s5616_s1 + $0x134] sm:$0xf]  ;;  %v3405_v13 = vld [vmem:[%s5616_s1 + $0x138] sm:$0xf0] }
  0x33   : > { %3290 = vmatmul.msk.bf16.gmra.mxu1 %vm753_vm2, %v3959_v9  ;;  %672 = vrot.lane.b32.xlu2 %v517_v26, %s3814_s14  ;;  %v538_v59 = vshll.u32 %v434_v52, 16  ;;  %v3404_v12 = vor.u32 %v3685_v8, %v3403_v7  ;;  %v3408_v14 = vor.u32 %v3684_v11, %v3405_v13  ;;  %v718_v17 = vrot.slane %v4052_v62, 1  ;;  %v276_v20 = vld [vmem:[%s3871_s29 + $0x74] sm:$0x1]  ;;  %v273_v26 = vld [vmem:[%s3871_s29 + $0x68] sm:$0x1] }
  0x34   : > { %3306 = vmatmul.msk.bf16.gmra.mxu3 %vm753_vm2, %v3959_v9  ;;  %1010 = vmatpush.bf16.msra.mxu0 %v3220_v21  ;;  %v717_v18 = vrot.slane %v4030_v48, 1  ;;  %v4171_v21 = vld [vmem:[%s3871_s29 + $0x6c] sm:$0xff]  ;;  %v418_v23 = vunpack.c.l.b16 %v276_v20  ;;  %v721_v34 = vrot.slane %v434_v52, 1  ;;  %v4181_v37 = vld [vmem:[%s3871_s29 + $0x60] sm:$0xff]  ;;  %v3683_v52 = vld [vmem:[%s5616_s1 + $0x124] sm:$0xf0] }
  0x35   : > { %v540_v63 = vrot.slane %v538_v59, 1  ;;  %1667 = vmatpush.bf16.msrb.mxu3 %v3436_v4  ;;  %1574 = vmatpush.bf16.msrb.mxu1 %v3404_v12  ;;  %v557_v62 = vshll.u32 %v4171_v21, 16  ;;  %v555_v27 = vshrl.u32 %v4171_v21, 16  ;;  %v545_v41 = vshll.u32 %v4181_v37, 16  ;;  %v3682_v53 = vld [vmem:[%s5616_s1 + $0x124] sm:$0xf] }
  0x36   : > { %1188 = vmatpush.bf16.msra.mxu2 %v3224_v24  ;;  %v4163_v19 = vsel %vm698_vm1, %v717_v18, %v718_v17  ;;  %v4173_v24 = vpack.c.b16 %v418_v23, %v418_v23  ;;  %v543_v45 = vshrl.u32 %v4181_v37, 16  ;;  %v3397_v56 = vld [vmem:[%s5616_s1 + $0x128] sm:$0xf0]  ;;  %v279_v59 = vld [vmem:[%s3871_s29 + $0x80] sm:$0x1]  ;;  %v723_v7 = vrot.slane %v4181_v37, 1 }
  0x37   : > { %v541_v1 = vsel %vm445_vm0, %v536_v57, %v540_v63  ;;  %5636 = vst [vmem:[#allocation6_spill] sm:$0xff] %v4163_v19  ;;  %v559_v29 = vrot.slane %v557_v62, 1  ;;  %v547_v46 = vrot.slane %v545_v41, 1  ;;  %v4210_v57 = vld [vmem:[%s3871_s29 + $0x78] sm:$0xff]  ;;  %v419_v63 = vunpack.c.l.b16 %v279_v59 }
  0x38   : > { %1011 = vmatpush.bf16.msra.mxu0 %v3212_v31  ;;  %676 = vrot.lane.b32.xlu1 %v541_v1, %s3814_s14  ;;  %v562_v30 = vshll.u32 %v4173_v24, 16  ;;  %v417_v31 = vunpack.c.l.b16 %v273_v26  ;;  %v569_v1 = vshll.u32 %v4210_v57, 16  ;;  %v567_v58 = vshrl.u32 %v4210_v57, 16 }
  0x39   : > { %v560_v32 = vor.u32 %v559_v29, %v555_v27  ;;  %v548_v50 = vor.u32 %v547_v46, %v543_v45  ;;  %v4215_v2 = vpack.c.b16 %v419_v63, %v419_v63  ;;  %v727_v20 = vrot.slane %v4173_v24, 1  ;;  %v3427_v24 = vld [vmem:[%s5616_s1 + $0x160] sm:$0xf]  ;;  %v285_v45 = vld [vmem:[%s3871_s29 + $0x98] sm:$0x1] }
  0x3a   : > { %1189 = vmatpush.bf16.msra.mxu2 %v3216_v36  ;;  %v564_v33 = vrot.slane %v562_v30, 1  ;;  %v720_v36 = vrot.slane %v4108_v39, 1  ;;  %v571_v3 = vrot.slane %v569_v1, 1  ;;  %v726_v62 = vrot.slane %v4171_v21, 1 }
  0x3b   : > { %v574_v4 = vshll.u32 %v4215_v2, 16  ;;  %v730_v63 = vrot.slane %v4215_v2, 1 }
  0x3c   : > { %1012 = vmatpush.bf16.msra.mxu0 %v3204_v40  ;;  %v565_v38 = vsel %vm445_vm0, %v560_v32, %v564_v33  ;;  %v435_v40 = vpack.c.b16 %v417_v31, %v417_v31  ;;  %v4187_v43 = vsel %vm698_vm1, %v720_v36, %v721_v34  ;;  %v572_v5 = vor.u32 %v571_v3, %v567_v58  ;;  %v3690_v31 = vld [vmem:[%s5616_s1 + $0x164] sm:$0xf]  ;;  %v3429_v33 = vld [vmem:[%s5616_s1 + $0x168] sm:$0xf0]  ;;  %v3387_v36 = vld [vmem:[%s5616_s1 + $0x110] sm:$0xf] }
  0x3d   : > { %680 = vrot.lane.b32.xlu0 %v565_v38, %s3814_s14  ;;  %v576_v11 = vrot.slane %v574_v4, 1  ;;  %v4252_v30 = vsel %vm698_vm1, %v726_v62, %v727_v20  ;;  %v3432_v34 = vor.u32 %v3690_v31, %v3429_v33  ;;  %v3681_v38 = vld [vmem:[%s5616_s1 + $0x114] sm:$0xf0]  ;;  %v729_v58 = vrot.slane %v4210_v57, 1  ;;  %v4301_v4 = vld [vmem:[%s3871_s29 + $0x84] sm:$0xff] }
  0x3e   : > { %1190 = vmatpush.bf16.msra.mxu2 %v3208_v42  ;;  %v550_v47 = vshll.u32 %v435_v40, 16  ;;  %v724_v8 = vrot.slane %v435_v40, 1  ;;  %v3680_v40 = vld [vmem:[%s5616_s1 + $0x114] sm:$0xf]  ;;  %v3388_v41 = vor.u32 %v3681_v38, %v3387_v36  ;;  %v581_v2 = vshll.u32 %v4301_v4, 16 }
  0x3f   : > { %v577_v12 = vsel %vm445_vm0, %v572_v5, %v576_v11  ;;  %v579_v20 = vshrl.u32 %v4301_v4, 16 }
  0x40   : > { %1013 = vmatpush.bf16.msra.mxu0 %v3196_v55  ;;  %v552_v51 = vrot.slane %v550_v47, 1  ;;  %682 = vrot.lane.b32.xlu1 %v577_v12, %s3814_s14  ;;  %v4229_v17 = vsel %vm698_vm1, %v723_v7, %v724_v8  ;;  %v421_v47 = vunpack.c.l.b16 %v285_v45  ;;  %v4315_v12 = vsel %vm698_vm1, %v729_v58, %v730_v63  ;;  %v3678_v58 = vld [vmem:[%s5616_s1 + $0x104] sm:$0xf] }
  0x42   : > { %1191 = vmatpush.bf16.msra.mxu2 %v3200_v61  ;;  %v553_v54 = vsel %vm445_vm0, %v548_v50, %v552_v51  ;;  %v3400_v61 = vor.u32 %v3682_v53, %v3397_v56  ;;  %v4294_v53 = vpack.c.b16 %v421_v47, %v421_v47 }
  0x43   : > { %3291 = vmatmul.msk.bf16.gmra.mxu1 %vm753_vm2, %v3968_v15  ;;  %678 = vrot.lane.b32.xlu2 %v553_v54, %s3814_s14 }
  0x44   : > { %3307 = vmatmul.msk.bf16.gmra.mxu3 %vm753_vm2, %v3968_v15  ;;  %1752 = vmatpush.bf16.msrb.mxu0 %v3408_v14  ;;  %v598_v56 = vshll.u32 %v4294_v53, 16 }
  0x46   : > { %1845 = vmatpush.bf16.msrb.mxu2 %v3440_v6  ;;  %v600_v3 = vrot.slane %v598_v56, 1 }
  0x48   : > { %1753 = vmatpush.bf16.msrb.mxu0 %v3400_v61 }
  0x4a   : > { %1846 = vmatpush.bf16.msrb.mxu2 %v3432_v34 }
  0x53   : > { %3292 = vmatmul.msk.bf16.gmra.mxu1 %vm753_vm2, %v3998_v35 }
  0x54   : > { %3308 = vmatmul.msk.bf16.gmra.mxu3 %vm753_vm2, %v3998_v35 }
  0x63   : > { %3293 = vmatmul.msk.bf16.gmra.mxu1 %vm753_vm2, %v4073_v22 }
  0x64   : > { %3309 = vmatmul.msk.bf16.gmra.mxu3 %vm753_vm2, %v4073_v22 }
  0x73   : > { %3294 = vmatmul.msk.bf16.gmra.mxu1 %vm753_vm2, %v4128_v0 }
  0x74   : > { %3310 = vmatmul.msk.bf16.gmra.mxu3 %vm753_vm2, %v4128_v0 }
  0x83   : > { %3295 = vmatmul.msk.bf16.gmra.mxu1 %vm753_vm2, %v4163_v19 }
  0x84   : > { %3311 = vmatmul.msk.bf16.gmra.mxu3 %vm753_vm2, %v4163_v19 }
  0x92   : > { %v663_v42 = vpop.permute.xlu0 %662 }
  0x93   : > { %v755_v44 = vsel %vm753_vm2, %v3898_v10, %v663_v42  ;;  %3296 = vmatmul.msk.bf16.gmra.mxu1 %vm753_vm2, %v4187_v43  ;;  %v3395_v10 = vld [vmem:[%s5616_s1 + $0x120] sm:$0xf]  ;;  %v3389_v42 = vld [vmem:[%s5616_s1 + $0x118] sm:$0xf0] }
  0x94   : > { %1014 = vmatmul.bf16.vlgmr.msra.gmra.mxu0 %v755_v44  ;;  %1192 = vmatmul.bf16.vlgmr.msra.gmra.mxu2 %v755_v44  ;;  %v3396_v55 = vor.u32 %v3683_v52, %v3395_v10  ;;  %v4285_v44 = vld [vmem:[%s3871_s29 + $0x90] sm:$0xff]  ;;  %v3392_v46 = vor.u32 %v3680_v40, %v3389_v42  ;;  %v282_v52 = vld [vmem:[%s3871_s29 + $0x8c] sm:$0x1] }
  0x95   : > { %3312 = vmatmul.msk.bf16.gmra.mxu3 %vm753_vm2, %v4187_v43  ;;  %v667_v23 = vpop.permute.xlu1 %666  ;;  %v593_v51 = vshll.u32 %v4285_v44, 16  ;;  %v591_v54 = vshrl.u32 %v4285_v44, 16  ;;  %v420_v59 = vunpack.c.l.b16 %v282_v52  ;;  %v732_v52 = vrot.slane %v4301_v4, 1 }
  0x96   : > { %1575 = vmatpush.bf16.msrb.mxu1 %v3396_v55  ;;  %v4245_v26 = vsel %vm753_vm2, %v3926_v28, %v667_v23  ;;  %v3691_v28 = vld [vmem:[%s5616_s1 + $0x164] sm:$0xf0]  ;;  %1754 = vmatpush.bf16.msrb.mxu0 %v3392_v46  ;;  %v583_v23 = vrot.slane %v581_v2, 1 }
  0x97   : > { %v3428_v32 = vor.u32 %v3691_v28, %v3427_v24  ;;  %v595_v55 = vrot.slane %v593_v51, 1  ;;  %v438_v8 = vpack.c.b16 %v420_v59, %v420_v59  ;;  %v288_v28 = vld [vmem:[%s3871_s29 + $0xa4] sm:$0x1]  ;;  %v671_v51 = vpop.permute.xlu2 %670 }
  0x98   : > { %v422_v33 = vunpack.c.l.b16 %v288_v28  ;;  %v4344_v56 = vsel %vm753_vm2, %v3973_v16, %v671_v51  ;;  %v3379_v16 = vld [vmem:[%s5616_s1 + $0x100] sm:$0xf] }
  0x99   : > { %1668 = vmatpush.bf16.msrb.mxu3 %v3428_v32  ;;  %v596_v61 = vor.u32 %v595_v55, %v591_v54  ;;  %v586_v62 = vshll.u32 %v438_v8, 16  ;;  %v4327_v32 = vld [vmem:[%s3871_s29 + $0x9c] sm:$0xff]  ;;  %v733_v54 = vrot.slane %v438_v8, 1 }
  0x9a   : > { %v665_v6 = vpop.permute.xlu0 %664  ;;  %1576 = vmatpush.bf16.msrb.mxu1 %v3388_v41  ;;  %v4332_v36 = vpack.c.b16 %v422_v33, %v422_v33  ;;  %v605_v38 = vshll.u32 %v4327_v32, 16  ;;  %v603_v41 = vshrl.u32 %v4327_v32, 16 }
  0x9b   : > { %v4223_v13 = vsel %vm753_vm2, %v3922_v25, %v665_v6  ;;  %v601_v5 = vsel %vm445_vm0, %v596_v61, %v600_v3  ;;  %v588_v24 = vrot.slane %v586_v62, 1  ;;  %v4351_v63 = vsel %vm698_vm1, %v732_v52, %v733_v54 }
  0x9c   : > { %686 = vrot.lane.b32.xlu0 %v601_v5, %s3814_s14  ;;  %v607_v42 = vrot.slane %v605_v38, 1  ;;  %v610_v45 = vshll.u32 %v4332_v36, 16  ;;  %v3381_v5 = vld [vmem:[%s5616_s1 + $0x108] sm:$0xf0] }
  0x9d   : > { %v669_v1 = vpop.permute.xlu1 %668  ;;  %v3384_v8 = vor.u32 %v3678_v58, %v3381_v5  ;;  %v739_v58 = vrot.slane %v4332_v36, 1  ;;  %v738_v5 = vrot.slane %v4327_v32, 1 }
  0x9e   : > { %v4306_v6 = vsel %vm753_vm2, %v3949_v60, %v669_v1  ;;  %v584_v60 = vor.u32 %v583_v23, %v579_v20  ;;  %v608_v46 = vor.u32 %v607_v42, %v603_v41  ;;  %v612_v47 = vrot.slane %v610_v45, 1  ;;  %v3679_v1 = vld [vmem:[%s5616_s1 + $0x104] sm:$0xf0] }
  0x9f   : > { %v3380_v3 = vor.u32 %v3679_v1, %v3379_v16  ;;  %1755 = vmatpush.bf16.msrb.mxu0 %v3384_v8  ;;  %v736_v23 = vrot.slane %v4294_v53, 1  ;;  %v673_v62 = vpop.permute.xlu2 %672  ;;  %v294_v53 = vld [vmem:[%s3871_s29 + $0xbc] sm:$0x1]  ;;  %v4411_v8 = vld [vmem:[%s3871_s29 + $0xa8] sm:$0xff]  ;;  %v4425_v36 = vsel %vm698_vm1, %v738_v5, %v739_v58 }
  0xa0   : > { %v4226_v14 = vpop.f32.mrf.mxu1  ;;  %v589_v31 = vsel %vm445_vm0, %v584_v60, %v588_v24  ;;  %v613_v55 = vsel %vm445_vm0, %v608_v46, %v612_v47  ;;  %v735_v60 = vrot.slane %v4285_v44, 1  ;;  %v4379_v24 = vsel %vm753_vm2, %v4033_v49, %v673_v62  ;;  %v4396_v49 = vld [vmem:[%s3871_s29 + $0xb4] sm:$0xff]  ;;  %v291_v47 = vld [vmem:[%s3871_s29 + $0xb0] sm:$0x1]  ;;  %5644 = vst [vmem:[#allocation14_spill] sm:$0xff] %v4425_v36 }
  0xa1   : > { %684 = vrot.lane.b32.xlu2 %v589_v31, %s3814_s14  ;;  %688 = vrot.lane.b32.xlu1 %v613_v55, %s3814_s14  ;;  %v424_v38 = vunpack.c.l.b16 %v294_v53  ;;  %v629_v45 = vshll.u32 %v4396_v49, 16  ;;  %v627_v51 = vshrl.u32 %v4396_v49, 16  ;;  %v423_v55 = vunpack.c.l.b16 %v291_v47 }
  0xa2   : > { %1577 = vmatpush.bf16.msrb.mxu1 %v3380_v3  ;;  %v4386_v33 = vsel %vm698_vm1, %v735_v60, %v736_v23  ;;  %v675_v3 = vpop.permute.xlu0 %674  ;;  %v615_v47 = vshrl.u32 %v4411_v8, 16 }
  0xa3   : > { %3297 = vmatmul.msk.bf16.gmra.mxu1 %vm753_vm2, %v4229_v17  ;;  %5641 = vst [vmem:[#allocation11_spill] sm:$0xff] %v4386_v33  ;;  %v4400_v42 = vpack.c.b16 %v424_v38, %v424_v38  ;;  %v631_v52 = vrot.slane %v629_v45, 1  ;;  %v4417_v62 = vsel %vm753_vm2, %v4030_v48, %v675_v3  ;;  %v441_v53 = vpack.c.b16 %v423_v55, %v423_v55  ;;  %v3419_v48 = vld [vmem:[%s5616_s1 + $0x150] sm:$0xf]  ;;  %v3688_v55 = vld [vmem:[%s5616_s1 + $0x154] sm:$0xf] }
  0xa4   : > { %1019 = vmatmul.bf16.gmra.mxu0 %v4223_v13  ;;  %1197 = vmatmul.bf16.gmra.mxu2 %v4223_v13  ;;  %v617_v38 = vshll.u32 %v4411_v8, 16 }
  0xa5   : > { %3313 = vmatmul.msk.bf16.gmra.mxu3 %vm753_vm2, %v4229_v17  ;;  %v634_v54 = vshll.u32 %v4400_v42, 16  ;;  %v632_v16 = vor.u32 %v631_v52, %v627_v51  ;;  %v622_v52 = vshll.u32 %v441_v53, 16 }
  0xa6   : > { %v619_v51 = vrot.slane %v617_v38, 1  ;;  %v3677_v38 = vld [vmem:[%s5616_s1 + $0xf4] sm:$0xf0] }
  0xa7   : > { %v4237_v18 = vpop.f32.mrf.mxu3  ;;  %v636_v1 = vrot.slane %v634_v54, 1  ;;  %v3689_v54 = vld [vmem:[%s5616_s1 + $0x154] sm:$0xf0]  ;;  %v624_v3 = vrot.slane %v622_v52, 1  ;;  %v3363_v52 = vld [vmem:[%s5616_s1 + $0xe0] sm:$0xf] }
  0xa8   : > { %v4239_v25 = vpop.f32.mrf.mxu1  ;;  %v620_v58 = vor.u32 %v619_v51, %v615_v47 }
  0xa9   : > { %v637_v23 = vsel %vm445_vm0, %v632_v16, %v636_v1  ;;  %v3420_v16 = vor.u32 %v3689_v54, %v3419_v48  ;;  %v3421_v1 = vld [vmem:[%s5616_s1 + $0x158] sm:$0xf0] }
  0xaa   : > { %692 = vrot.lane.b32.xlu0 %v637_v23, %s3814_s14  ;;  %v3424_v5 = vor.u32 %v3688_v55, %v3421_v1  ;;  %v3371_v23 = vld [vmem:[%s5616_s1 + $0xf0] sm:$0xf]  ;;  %v625_v48 = vsel %vm445_vm0, %v620_v58, %v624_v3  ;;  %v3675_v55 = vld [vmem:[%s5616_s1 + $0xe4] sm:$0xf0]  ;;  %v3676_v1 = vld [vmem:[%s5616_s1 + $0xf4] sm:$0xf] }
  0xab   : > { %1669 = vmatpush.bf16.msrb.mxu3 %v3420_v16  ;;  %v3372_v54 = vor.u32 %v3677_v38, %v3371_v23  ;;  %690 = vrot.lane.b32.xlu2 %v625_v48, %s3814_s14  ;;  %v3364_v16 = vor.u32 %v3675_v55, %v3363_v52  ;;  %v3373_v58 = vld [vmem:[%s5616_s1 + $0xf8] sm:$0xf0]  ;;  %v741_v23 = vrot.slane %v4411_v8, 1  ;;  %v742_v38 = vrot.slane %v441_v53, 1  ;;  %v3355_v48 = vld [vmem:[%s5616_s1 + $0xd0] sm:$0xf] }
  0xac   : > { %1847 = vmatpush.bf16.msrb.mxu2 %v3424_v5  ;;  %v3376_v3 = vor.u32 %v3676_v1, %v3373_v58  ;;  %v677_v5 = vpop.permute.xlu1 %676  ;;  %v3347_v58 = vld [vmem:[%s5616_s1 + $0xc0] sm:$0xf] }
  0xad   : > { %1578 = vmatpush.bf16.msrb.mxu1 %v3372_v54  ;;  %v3673_v54 = vld [vmem:[%s5616_s1 + $0xd4] sm:$0xf0]  ;;  %v4479_v55 = vsel %vm753_vm2, %v4108_v39, %v677_v5  ;;  %v4486_v53 = vsel %vm698_vm1, %v741_v23, %v742_v38  ;;  %v3411_v39 = vld [vmem:[%s5616_s1 + $0x140] sm:$0xf] }
  0xae   : > { %1756 = vmatpush.bf16.msrb.mxu0 %v3376_v3  ;;  %v3356_v52 = vor.u32 %v3673_v54, %v3355_v48  ;;  %5647 = vst [vmem:[#allocation17_spill] sm:$0xff] %v4486_v53  ;;  %v3671_v3 = vld [vmem:[%s5616_s1 + $0xc4] sm:$0xf0] }
  0xaf   : > { %v4247_v27 = vpop.f32.mrf.mxu3  ;;  %v3348_v5 = vor.u32 %v3671_v3, %v3347_v58  ;;  %v3687_v48 = vld [vmem:[%s5616_s1 + $0x144] sm:$0xf0]  ;;  %v679_v58 = vpop.permute.xlu2 %678  ;;  %v744_v3 = vrot.slane %v4396_v49, 1 }
  0xb0   : > { %v4249_v29 = vpop.f32.mrf.mxu1  ;;  %v3412_v23 = vor.u32 %v3687_v48, %v3411_v39  ;;  %v4516_v39 = vsel %vm753_vm2, %v4181_v37, %v679_v58 }
  0xb1   : > { %1579 = vmatpush.bf16.msrb.mxu1 %v3364_v16 }
  0xb2   : > { %1670 = vmatpush.bf16.msrb.mxu3 %v3412_v23 }
  0xb3   : > { %3298 = vmatmul.msk.bf16.gmra.mxu1 %vm753_vm2, %v4252_v30 }
  0xb4   : > { %1024 = vmatmul.bf16.gmra.mxu0 %v4245_v26  ;;  %1202 = vmatmul.bf16.gmra.mxu2 %v4245_v26 }
  0xb5   : > { %3314 = vmatmul.msk.bf16.gmra.mxu3 %vm753_vm2, %v4252_v30  ;;  %1580 = vmatpush.bf16.msrb.mxu1 %v3356_v52  ;;  %v745_v52 = vrot.slane %v4400_v42, 1 }
  0xb7   : > { %v4288_v50 = vpop.f32.mrf.mxu3  ;;  %v4523_v23 = vsel %vm698_vm1, %v744_v3, %v745_v52 }
  0xb8   : > { %v4291_v10 = vpop.f32.mrf.mxu1  ;;  %5650 = vst [vmem:[#allocation20_spill] sm:$0xff] %v4523_v23 }
  0xb9   : > { %1581 = vmatpush.bf16.msrb.mxu1 %v3348_v5 }
  0xbf   : > { %v4308_v7 = vpop.f32.mrf.mxu3 }
  0xc0   : > { %v4312_v11 = vpop.f32.mrf.mxu1 }
  0xc3   : > { %3299 = vmatmul.msk.bf16.gmra.mxu1 %vm753_vm2, %v4315_v12 }
  0xc4   : > { %1029 = vmatmul.bf16.gmra.mxu0 %v4306_v6  ;;  %1207 = vmatmul.bf16.gmra.mxu2 %v4306_v6 }
  0xc5   : > { %3315 = vmatmul.msk.bf16.gmra.mxu3 %vm753_vm2, %v4315_v12 }
  0xc7   : > { %v4330_v34 = vpop.f32.mrf.mxu3 }
  0xc8   : > { %v4335_v40 = vpop.f32.mrf.mxu1 }
  0xc9   : > { %5637 = vst [vmem:[#allocation7_spill] sm:$0xff] %v4335_v40 }
  0xcf   : > { %v4346_v59 = vpop.f32.mrf.mxu3 }
  0xd0   : > { %v4348_v61 = vpop.f32.mrf.mxu1 }
  0xd1   : > { %5638 = vst [vmem:[#allocation8_spill] sm:$0xff] %v4348_v61 }
  0xd3   : > { %3300 = vmatmul.msk.bf16.gmra.mxu1 %vm753_vm2, %v4351_v63 }
  0xd4   : > { %1034 = vmatmul.bf16.gmra.mxu0 %v4344_v56  ;;  %1212 = vmatmul.bf16.gmra.mxu2 %v4344_v56 }
  0xd5   : > { %3316 = vmatmul.msk.bf16.gmra.mxu3 %vm753_vm2, %v4351_v63 }
  0xd7   : > { %v4371_v2 = vpop.f32.mrf.mxu3 }
  0xd8   : > { %v4373_v20 = vpop.f32.mrf.mxu1 }
  0xd9   : > { %5639 = vst [vmem:[#allocation9_spill] sm:$0xff] %v4373_v20 }
  0xdf   : > { %v4381_v28 = vpop.f32.mrf.mxu3 }
  0xe0   : > { %v4383_v31 = vpop.f32.mrf.mxu1 }
  0xe1   : > { %5640 = vst [vmem:[#allocation10_spill] sm:$0xff] %v4383_v31 }
  0xe3   : > { %3301 = vmatmul.msk.bf16.gmra.mxu1 %vm753_vm2, %v4386_v33 }
  0xe4   : > { %1039 = vmatmul.bf16.gmra.mxu0 %v4379_v24  ;;  %1217 = vmatmul.bf16.gmra.mxu2 %v4379_v24 }
  0xe5   : > { %3317 = vmatmul.msk.bf16.gmra.mxu3 %vm753_vm2, %v4386_v33 }
  0xe7   : > { %v4398_v41 = vpop.f32.mrf.mxu3 }
  0xe8   : > { %v4403_v46 = vpop.f32.mrf.mxu1 }
  0xe9   : > { %5642 = vst [vmem:[#allocation12_spill] sm:$0xff] %v4403_v46 }
  0xef   : > { %v4419_v60 = vpop.f32.mrf.mxu3 }
  0xf0   : > { %v4422_v45 = vpop.f32.mrf.mxu1 }
  0xf1   : > { %5643 = vst [vmem:[#allocation13_spill] sm:$0xff] %v4422_v45 }
  0xf3   : > { %3302 = vmatmul.msk.bf16.gmra.mxu1 %vm753_vm2, %v4425_v36 }
  0xf4   : > { %1044 = vmatmul.bf16.gmra.mxu0 %v4417_v62  ;;  %1222 = vmatmul.bf16.gmra.mxu2 %v4417_v62 }
  0xf5   : > { %3318 = vmatmul.msk.bf16.gmra.mxu3 %vm753_vm2, %v4425_v36 }
  0xf7   : > { %v4454_v47 = vpop.f32.mrf.mxu3 }
  0xf8   : > { %v4456_v51 = vpop.f32.mrf.mxu1 }
  0xf9   : > { %5645 = vst [vmem:[#allocation15_spill] sm:$0xff] %v4456_v51  ;;  %v4525_v51 = vld [vmem:[#allocation3] sm:$0x3] }
  0xfa   : > { %v4530_v42 = vperm.slane %v4525_v51, 1 }
  0xff   : > { %v4481_v1 = vpop.f32.mrf.mxu3 }
 0x100   : > { %v4483_v16 = vpop.f32.mrf.mxu1 }
 0x101   : > { %5646 = vst [vmem:[#allocation16_spill] sm:$0xff] %v4483_v16 }
 0x103   : > { %3303 = vmatmul.msk.bf16.gmra.mxu1 %vm753_vm2, %v4486_v53 }
 0x104   : > { %1049 = vmatmul.bf16.gmra.mxu0 %v4479_v55  ;;  %1227 = vmatmul.bf16.gmra.mxu2 %v4479_v55 }
 0x105   : > { %3319 = vmatmul.msk.bf16.gmra.mxu3 %vm753_vm2, %v4486_v53  ;;  %v681_v53 = vpop.permute.xlu0 %680 }
 0x107   : > { %v4506_v38 = vpop.f32.mrf.mxu3 }
 0x108   : > { %v4508_v54 = vpop.f32.mrf.mxu1 }
 0x109   : > { %5648 = vst [vmem:[#allocation18_spill] sm:$0xff] %v4508_v54 }
 0x10f   : > { %v4518_v48 = vpop.f32.mrf.mxu3 }
 0x110   : > { %v4520_v5 = vpop.f32.mrf.mxu1 }
 0x111   : > { %v4512_v16 = vpop.f32.mrf.mxu0  ;;  %5649 = vst [vmem:[#allocation19_spill] sm:$0xff] %v4520_v5 }
 0x113   : > { %3304 = vmatmul.msk.bf16.gmra.mxu1 %vm753_vm2, %v4523_v23 }
 0x114   : > { %1054 = vmatmul.bf16.gmra.mxu0 %v4516_v39  ;;  %1232 = vmatmul.bf16.gmra.mxu2 %v4516_v39 }
 0x115   : > { %3320 = vmatmul.msk.bf16.gmra.mxu3 %vm753_vm2, %v4523_v23  ;;  %v3365_v23 = vld [vmem:[%s5616_s1 + $0xe8] sm:$0xf0] }
 0x117   : > { %v1193_v37 = vpop.f32.mrf.mxu2 }
 0x118   : > { %v1194_v52 = vadd.f32 %v1193_v37, %v4530_v42  ;;  %v4545_v3 = vpop.f32.mrf.mxu3  ;;  %v4548_v54 = vpop.f32.mrf.mxu1  ;;  %v3674_v37 = vld [vmem:[%s5616_s1 + $0xe4] sm:$0xf] }
 0x119   : > { %v4543_v58 = vpop.f32.mrf.mxu0  ;;  %5651 = vst [vmem:[#allocation21_spill] sm:$0xff] %v4548_v54  ;;  %v3368_v45 = vor.u32 %v3674_v37, %v3365_v23  ;;  %v683_v23 = vpop.permute.xlu1 %682 }
 0x11a   : > { %v1283_v5 = vadd.f32 %v4237_v18, %v1194_v52  ;;  %v4562_v18 = vsel %vm753_vm2, %v4171_v21, %v681_v53  ;;  %v4589_v20 = vsel %vm753_vm2, %v4210_v57, %v683_v23  ;;  %v3413_v57 = vld [vmem:[%s5616_s1 + $0x148] sm:$0xf0] }
 0x11b   : > { %1757 = vmatpush.bf16.msrb.mxu0 %v3368_v45 }
 0x11c   : > { %1363 = vst [vmem:[%s4541_s15 + $0x8] sm:$0xff] %v1283_v5 }
 0x11f   : > { %v1195_v46 = vpop.f32.mrf.mxu2 }
 0x120   : > { %v1196_v31 = vadd.f32 %v1195_v46, %v4530_v42  ;;  %v4564_v5 = vpop.f32.mrf.mxu3  ;;  %v4567_v54 = vpop.f32.mrf.mxu1 }
 0x121   : > { %v4558_v36 = vpop.f32.mrf.mxu0  ;;  %5652 = vst [vmem:[#allocation22_spill] sm:$0xff] %v4567_v54 }
 0x122   : > { %v1285_v52 = vadd.f32 %v4247_v27, %v1196_v31 }
 0x123   : > { %1582 = vmatmul.bf16.vlgmr.msrb.gmra.mxu1 %v4223_v13 }
 0x124   : > { %1365 = vst [vmem:[%s4541_s15 + $0x18] sm:$0xff] %v1285_v52  ;;  %1059 = vmatmul.bf16.gmra.mxu0 %v4562_v18  ;;  %1237 = vmatmul.bf16.gmra.mxu2 %v4562_v18 }
 0x125   : > { %3441 = vmatmul.msk.bf16.vlgmr.msrb.gmra.mxu3 %vm753_vm2, %v3959_v9 }
 0x127   : > { %v1198_v46 = vpop.f32.mrf.mxu2 }
 0x128   : > { %v1199_v21 = vadd.f32 %v1198_v46, %v4530_v42  ;;  %v4578_v53 = vpop.f32.mrf.mxu3  ;;  %v4581_v31 = vpop.f32.mrf.mxu1 }
 0x129   : > { %v4576_v45 = vpop.f32.mrf.mxu0  ;;  %5653 = vst [vmem:[#allocation23_spill] sm:$0xff] %v4581_v31 }
 0x12a   : > { %v1288_v27 = vadd.f32 %v4288_v50, %v1199_v21  ;;  %v3686_v50 = vld [vmem:[%s5616_s1 + $0x144] sm:$0xf] }
 0x12b   : > { %v3416_v21 = vor.u32 %v3686_v50, %v3413_v57  ;;  %v3672_v50 = vld [vmem:[%s5616_s1 + $0xd4] sm:$0xf]  ;;  %v3357_v57 = vld [vmem:[%s5616_s1 + $0xd8] sm:$0xf0] }
 0x12c   : > { %1367 = vst [vmem:[%s4541_s15 + $0x28] sm:$0xff] %v1288_v27 }
 0x12d   : > { %1848 = vmatpush.bf16.msrb.mxu2 %v3416_v21  ;;  %v3360_v21 = vor.u32 %v3672_v50, %v3357_v57 }
 0x12f   : > { %v1200_v37 = vpop.f32.mrf.mxu2  ;;  %1758 = vmatpush.bf16.msrb.mxu0 %v3360_v21  ;;  %v687_v21 = vpop.permute.xlu0 %686 }
 0x130   : > { %v1201_v52 = vadd.f32 %v1200_v37, %v4530_v42  ;;  %v4591_v46 = vpop.f32.mrf.mxu3  ;;  %v4594_v33 = vpop.f32.mrf.mxu1 }
 0x131   : > { %v4585_v54 = vpop.f32.mrf.mxu0  ;;  %5654 = vst [vmem:[#allocation24_spill] sm:$0xff] %v4594_v33 }
 0x132   : > { %v1290_v61 = vadd.f32 %v4308_v7, %v1201_v52 }
 0x133   : > { %1587 = vmatmul.bf16.gmra.mxu1 %v4245_v26 }
 0x134   : > { %1369 = vst [vmem:[%s4541_s15 + $0x38] sm:$0xff] %v1290_v61  ;;  %1064 = vmatmul.bf16.gmra.mxu0 %v4589_v20  ;;  %1242 = vmatmul.bf16.gmra.mxu2 %v4589_v20 }
 0x135   : > { %3442 = vmatmul.msk.bf16.gmra.mxu3 %vm753_vm2, %v3968_v15 }
 0x137   : > { %v1203_v7 = vpop.f32.mrf.mxu2 }
 0x138   : > { %v1204_v61 = vadd.f32 %v1203_v7, %v4530_v42  ;;  %v4611_v23 = vpop.f32.mrf.mxu3  ;;  %v4614_v52 = vpop.f32.mrf.mxu1 }
 0x139   : > { %v4609_v27 = vpop.f32.mrf.mxu0  ;;  %5656 = vst [vmem:[#allocation26_spill] sm:$0xff] %v4614_v52  ;;  %v685_v7 = vpop.permute.xlu2 %684 }
 0x13a   : > { %5655 = vst [vmem:[#allocation25_spill] sm:$0xff] %v4609_v27  ;;  %v1293_v37 = vadd.f32 %v4330_v34, %v1204_v61  ;;  %v4628_v34 = vsel %vm753_vm2, %v4301_v4, %v685_v7 }
 0x13c   : > { %1371 = vst [vmem:[%s4541_s15 + $0x48] sm:$0xff] %v1293_v37 }
 0x13f   : > { %v1205_v33 = vpop.f32.mrf.mxu2 }
 0x140   : > { %v1206_v31 = vadd.f32 %v1205_v33, %v4530_v42  ;;  %v4630_v61 = vpop.f32.mrf.mxu3  ;;  %v4633_v52 = vpop.f32.mrf.mxu1 }
 0x141   : > { %v4624_v40 = vpop.f32.mrf.mxu0  ;;  %5658 = vst [vmem:[#allocation28_spill] sm:$0xff] %v4633_v52 }
 0x142   : > { %5657 = vst [vmem:[#allocation27_spill] sm:$0xff] %v4624_v40  ;;  %v1295_v37 = vadd.f32 %v4346_v59, %v1206_v31  ;;  %v4655_v40 = vsel %vm753_vm2, %v4285_v44, %v687_v21  ;;  %v3670_v21 = vld [vmem:[%s5616_s1 + $0xc4] sm:$0xf] }
 0x143   : > { %1592 = vmatmul.bf16.gmra.mxu1 %v4306_v6 }
 0x144   : > { %1373 = vst [vmem:[%s4541_s15 + $0x58] sm:$0xff] %v1295_v37  ;;  %1069 = vmatmul.bf16.gmra.mxu0 %v4628_v34  ;;  %1247 = vmatmul.bf16.gmra.mxu2 %v4628_v34 }
 0x145   : > { %3443 = vmatmul.msk.bf16.gmra.mxu3 %vm753_vm2, %v3998_v35 }
 0x147   : > { %v1208_v33 = vpop.f32.mrf.mxu2 }
 0x148   : > { %v1209_v4 = vadd.f32 %v1208_v33, %v4530_v42  ;;  %v4644_v57 = vpop.f32.mrf.mxu3  ;;  %v4647_v31 = vpop.f32.mrf.mxu1 }
 0x149   : > { %v4642_v50 = vpop.f32.mrf.mxu0  ;;  %5660 = vst [vmem:[#allocation30_spill] sm:$0xff] %v4647_v31 }
 0x14a   : > { %5659 = vst [vmem:[#allocation29_spill] sm:$0xff] %v4642_v50  ;;  %v1298_v59 = vadd.f32 %v4371_v2, %v1209_v4 }
 0x14c   : > { %1375 = vst [vmem:[%s4541_s15 + $0x68] sm:$0xff] %v1298_v59 }
 0x14f   : > { %v1210_v7 = vpop.f32.mrf.mxu2 }
 0x150   : > { %v1211_v37 = vadd.f32 %v1210_v7, %v4530_v42  ;;  %v4657_v33 = vpop.f32.mrf.mxu3  ;;  %v4660_v27 = vpop.f32.mrf.mxu1  ;;  %v3349_v7 = vld [vmem:[%s5616_s1 + $0xc8] sm:$0xf0] }
 0x151   : > { %v4651_v52 = vpop.f32.mrf.mxu0  ;;  %5662 = vst [vmem:[#allocation32_spill] sm:$0xff] %v4660_v27 }
 0x152   : > { %5661 = vst [vmem:[#allocation31_spill] sm:$0xff] %v4651_v52  ;;  %v1300_v50 = vadd.f32 %v4381_v28, %v1211_v37  ;;  %v3352_v37 = vor.u32 %v3670_v21, %v3349_v7 }
 0x153   : > { %1597 = vmatmul.bf16.gmra.mxu1 %v4344_v56 }
 0x154   : > { %1377 = vst [vmem:[%s4541_s15 + $0x78] sm:$0xff] %v1300_v50  ;;  %1074 = vmatmul.bf16.gmra.mxu0 %v4655_v40  ;;  %1252 = vmatmul.bf16.gmra.mxu2 %v4655_v40 }
 0x155   : > { %3444 = vmatmul.msk.bf16.gmra.mxu3 %vm753_vm2, %v4073_v22  ;;  %1759 = vmatpush.bf16.msrb.mxu0 %v3352_v37  ;;  %v691_v37 = vpop.permute.xlu2 %690 }
 0x157   : > { %v1213_v2 = vpop.f32.mrf.mxu2 }
 0x158   : > { %v1214_v44 = vadd.f32 %v1213_v2, %v4530_v42  ;;  %v4671_v59 = vpop.f32.mrf.mxu3  ;;  %v4674_v50 = vpop.f32.mrf.mxu1 }
 0x159   : > { %v4669_v4 = vpop.f32.mrf.mxu0  ;;  %5664 = vst [vmem:[#allocation34_spill] sm:$0xff] %v4674_v50  ;;  %v689_v2 = vpop.permute.xlu1 %688 }
 0x15a   : > { %5663 = vst [vmem:[#allocation33_spill] sm:$0xff] %v4669_v4  ;;  %v1303_v28 = vadd.f32 %v4398_v41, %v1214_v44  ;;  %v4688_v41 = vsel %vm753_vm2, %v4327_v32, %v689_v2 }
 0x15b   : > { %5666 = vst [vmem:[#allocation36_spill] sm:$0xff] %v4688_v41 }
 0x15c   : > { %1379 = vst [vmem:[%s4541_s15 + $0x88] sm:$0xff] %v1303_v28 }
 0x15f   : > { %v1215_v27 = vpop.f32.mrf.mxu2 }
 0x160   : > { %v1216_v31 = vadd.f32 %v1215_v27, %v4530_v42  ;;  %v4690_v44 = vpop.f32.mrf.mxu3  ;;  %v4693_v50 = vpop.f32.mrf.mxu1 }
 0x161   : > { %v4684_v4 = vpop.f32.mrf.mxu0  ;;  %5667 = vst [vmem:[#allocation37_spill] sm:$0xff] %v4693_v50 }
 0x162   : > { %5665 = vst [vmem:[#allocation35_spill] sm:$0xff] %v4684_v4  ;;  %v1305_v28 = vadd.f32 %v4419_v60, %v1216_v31  ;;  %v4715_v4 = vsel %vm753_vm2, %v4411_v8, %v691_v37  ;;  %v3717_v8 = vld [vmem:[%s5616_s1 + $0x234] sm:$0xf0] }
 0x163   : > { %1602 = vmatmul.bf16.gmra.mxu1 %v4379_v24  ;;  %5671 = vst [vmem:[#allocation41_spill] sm:$0xff] %v4715_v4 }
 0x164   : > { %1381 = vst [vmem:[%s4541_s15 + $0x98] sm:$0xff] %v1305_v28  ;;  %1079 = vmatmul.bf16.gmra.mxu0 %v4688_v41  ;;  %1257 = vmatmul.bf16.gmra.mxu2 %v4688_v41 }
 0x165   : > { %3445 = vmatmul.msk.bf16.gmra.mxu3 %vm753_vm2, %v4128_v0 }
 0x167   : > { %v1218_v27 = vpop.f32.mrf.mxu2 }
 0x168   : > { %v1219_v32 = vadd.f32 %v1218_v27, %v4530_v42  ;;  %v4704_v7 = vpop.f32.mrf.mxu3  ;;  %v4707_v31 = vpop.f32.mrf.mxu1 }
 0x169   : > { %v4702_v21 = vpop.f32.mrf.mxu0  ;;  %5669 = vst [vmem:[#allocation39_spill] sm:$0xff] %v4707_v31  ;;  %v297_v31 = vld [vmem:[%s3871_s29 + $0xc8] sm:$0x1] }
 0x16a   : > { %5668 = vst [vmem:[#allocation38_spill] sm:$0xff] %v4702_v21  ;;  %v1308_v60 = vadd.f32 %v4454_v47, %v1219_v32  ;;  %v3587_v47 = vld [vmem:[%s5616_s1 + $0x230] sm:$0xf]  ;;  %v3716_v32 = vld [vmem:[%s5616_s1 + $0x234] sm:$0xf] }
 0x16c   : > { %1383 = vst [vmem:[%s4541_s15 + $0xa8] sm:$0xff] %v1308_v60 }
 0x16f   : > { %v1220_v2 = vpop.f32.mrf.mxu2 }
 0x170   : > { %v1221_v28 = vadd.f32 %v1220_v2, %v4530_v42  ;;  %v4717_v27 = vpop.f32.mrf.mxu3  ;;  %v4720_v52 = vpop.f32.mrf.mxu1 }
 0x171   : > { %v4711_v50 = vpop.f32.mrf.mxu0  ;;  %5672 = vst [vmem:[#allocation42_spill] sm:$0xff] %v4720_v52 }
 0x172   : > { %5670 = vst [vmem:[#allocation40_spill] sm:$0xff] %v4711_v50  ;;  %v1310_v21 = vadd.f32 %v4481_v1, %v1221_v28  ;;  %v3588_v1 = vor.u32 %v3717_v8, %v3587_v47  ;;  %v4750_v50 = vld [vmem:[%s3871_s29 + $0xc0] sm:$0xff] }
 0x173   : > { %1607 = vmatmul.bf16.gmra.mxu1 %v4417_v62  ;;  %5676 = vst [vmem:[#allocation46_spill] sm:$0xff] %v4750_v50 }
 0x174   : > { %1385 = vst [vmem:[%s4541_s15 + $0xb8] sm:$0xff] %v1310_v21  ;;  %1084 = vmatmul.bf16.gmra.mxu0 %v4715_v4  ;;  %1262 = vmatmul.bf16.gmra.mxu2 %v4715_v4  ;;  %v3589_v21 = vld [vmem:[%s5616_s1 + $0x238] sm:$0xf0]  ;;  %v425_v4 = vunpack.c.l.b16 %v297_v31  ;;  %v641_v31 = vshll.u32 %v4750_v50, 16 }
 0x175   : > { %3446 = vmatmul.msk.bf16.gmra.mxu3 %vm753_vm2, %v4163_v19  ;;  %v3592_v60 = vor.u32 %v3716_v32, %v3589_v21  ;;  %v3709_v32 = vld [vmem:[%s5616_s1 + $0x1f4] sm:$0xf0] }
 0x176   : > { %2363 = vmatpush.bf16.msra.mxu3 %v3588_v1  ;;  %v3555_v1 = vld [vmem:[%s5616_s1 + $0x1f0] sm:$0xf] }
 0x177   : > { %v1223_v37 = vpop.f32.mrf.mxu2  ;;  %2541 = vmatpush.bf16.msra.mxu2 %v3592_v60  ;;  %v3556_v21 = vor.u32 %v3709_v32, %v3555_v1  ;;  %v3557_v60 = vld [vmem:[%s5616_s1 + $0x1f8] sm:$0xf0]  ;;  %v643_v1 = vrot.slane %v641_v31, 1 }
 0x178   : > { %v1224_v2 = vadd.f32 %v1223_v37, %v4530_v42  ;;  %v4743_v47 = vpop.f32.mrf.mxu3  ;;  %v4746_v52 = vpop.f32.mrf.mxu1  ;;  %v4765_v37 = vpack.c.b16 %v425_v4, %v425_v4 }
 0x179   : > { %v4741_v28 = vpop.f32.mrf.mxu0  ;;  %5674 = vst [vmem:[#allocation44_spill] sm:$0xff] %v4743_v47  ;;  %2270 = vmatpush.bf16.msra.mxu1 %v3556_v21 }
 0x17a   : > { %5673 = vst [vmem:[#allocation43_spill] sm:$0xff] %v4741_v28  ;;  %v1313_v8 = vadd.f32 %v4506_v38, %v1224_v2  ;;  %v3708_v38 = vld [vmem:[%s5616_s1 + $0x1f4] sm:$0xf]  ;;  %v693_v2 = vpop.permute.xlu0 %692  ;;  %v639_v28 = vshrl.u32 %v4750_v50, 16  ;;  %v646_v32 = vshll.u32 %v4765_v37, 16 }
 0x17b   : > { %5675 = vst [vmem:[#allocation45_spill] sm:$0xff] %v4746_v52  ;;  %v4775_v4 = vsel %vm753_vm2, %v4396_v49, %v693_v2 }
 0x17c   : > { %1387 = vst [vmem:[%s4541_s15 + $0xc8] sm:$0xff] %v1313_v8  ;;  %v3560_v8 = vor.u32 %v3708_v38, %v3557_v60  ;;  %v644_v38 = vor.u32 %v643_v1, %v639_v28  ;;  %v648_v60 = vrot.slane %v646_v32, 1 }
 0x17e   : > { %2448 = vmatpush.bf16.msra.mxu0 %v3560_v8  ;;  %v649_v31 = vsel %vm445_vm0, %v644_v38, %v648_v60 }
 0x17f   : > { %v1225_v52 = vpop.f32.mrf.mxu2  ;;  %694 = vrot.lane.b32.xlu1 %v649_v31, %s3814_s14 }
 0x180   : > { %v1226_v47 = vadd.f32 %v1225_v52, %v4530_v42  ;;  %v4777_v19 = vpop.f32.mrf.mxu3  ;;  %v4780_v50 = vpop.f32.mrf.mxu1 }
 0x181   : > { %v4771_v41 = vpop.f32.mrf.mxu0  ;;  %5677 = vst [vmem:[#allocation47_spill] sm:$0xff] %v4780_v50 }
 0x182   : > { %v1315_v21 = vadd.f32 %v4518_v48, %v1226_v47 }
 0x183   : > { %1612 = vmatmul.bf16.gmra.mxu1 %v4479_v55 }
 0x184   : > { %1389 = vst [vmem:[%s4541_s15 + $0xd8] sm:$0xff] %v1315_v21  ;;  %1089 = vmatmul.bf16.gmra.mxu0 %v4775_v4  ;;  %1267 = vmatmul.bf16.gmra.mxu2 %v4775_v4 }
 0x185   : > { %3447 = vmatmul.msk.bf16.gmra.mxu3 %vm753_vm2, %v4187_v43 }
 0x187   : > { %v1228_v49 = vpop.f32.mrf.mxu2 }
 0x188   : > { %v1229_v48 = vadd.f32 %v1228_v49, %v4530_v42  ;;  %v4793_v28 = vpop.f32.mrf.mxu3  ;;  %v4796_v2 = vpop.f32.mrf.mxu1 }
 0x189   : > { %v4791_v52 = vpop.f32.mrf.mxu0  ;;  %5678 = vst [vmem:[#allocation48_spill] sm:$0xff] %v4796_v2 }
 0x18a   : > { %v1318_v47 = vadd.f32 %v4545_v3, %v1229_v48 }
 0x18c   : > { %1391 = vst [vmem:[%s4541_s15 + $0xe8] sm:$0xff] %v1318_v47 }
 0x18f   : > { %v1230_v8 = vpop.f32.mrf.mxu2 }
 0x190   : > { %v1231_v1 = vadd.f32 %v1230_v8, %v4530_v42  ;;  %v4802_v38 = vpop.f32.mrf.mxu3  ;;  %v4805_v21 = vpop.f32.mrf.mxu1 }
 0x191   : > { %v4800_v32 = vpop.f32.mrf.mxu0  ;;  %5679 = vst [vmem:[#allocation49_spill] sm:$0xff] %v4805_v21 }
 0x192   : > { %v1320_v60 = vadd.f32 %v4564_v5, %v1231_v1  ;;  %v3706_v1 = vld [vmem:[%s5616_s1 + $0x1e4] sm:$0xf] }
 0x193   : > { %1617 = vmatmul.bf16.gmra.mxu1 %v4516_v39 }
 0x194   : > { %1393 = vst [vmem:[%s4541_s15 + $0xf8] sm:$0xff] %v1320_v60  ;;  %1760 = vmatmul.bf16.vlgmr.msrb.gmra.mxu0 %v4223_v13  ;;  %3457 = vmatmul.msk.bf16.vlgmr.msrb.gmra.mxu2 %vm753_vm2, %v3959_v9  ;;  %v3547_v9 = vld [vmem:[%s5616_s1 + $0x1e0] sm:$0xf]  ;;  %v3707_v13 = vld [vmem:[%s5616_s1 + $0x1e4] sm:$0xf0] }
 0x195   : > { %3448 = vmatmul.msk.bf16.gmra.mxu3 %vm753_vm2, %v4229_v17  ;;  %v3548_v8 = vor.u32 %v3707_v13, %v3547_v9  ;;  %v4841_v9 = vperm.slane %v4525_v51, 0 }
 0x197   : > { %v1233_v3 = vpop.f32.mrf.mxu2  ;;  %2271 = vmatpush.bf16.msra.mxu1 %v3548_v8  ;;  %v1016_v8 = vadd.f32 %v4512_v16, %v4841_v9  ;;  %v1018_v16 = vadd.f32 %v4543_v58, %v4841_v9  ;;  %v1021_v58 = vadd.f32 %v4558_v36, %v4841_v9  ;;  %v3581_v36 = vld [vmem:[%s5616_s1 + $0x228] sm:$0xf0] }
 0x198   : > { %v1234_v31 = vadd.f32 %v1233_v3, %v4530_v42  ;;  %v4817_v48 = vpop.f32.mrf.mxu3  ;;  %v4820_v47 = vpop.f32.mrf.mxu1 }
 0x199   : > { %v4815_v49 = vpop.f32.mrf.mxu0  ;;  %5680 = vst [vmem:[#allocation50_spill] sm:$0xff] %v4820_v47 }
 0x19a   : > { %v1323_v5 = vadd.f32 %v4578_v53, %v1234_v31  ;;  %v3549_v53 = vld [vmem:[%s5616_s1 + $0x1e8] sm:$0xf0] }
 0x19b   : > { %v3552_v60 = vor.u32 %v3706_v1, %v3549_v53 }
 0x19c   : > { %1395 = vst [vmem:[%s4541_s15 + $0x108] sm:$0xff] %v1323_v5 }
 0x19d   : > { %2449 = vmatpush.bf16.msra.mxu0 %v3552_v60  ;;  %v1105_v60 = vadd.f32 %v4226_v14, %v1016_v8  ;;  %v1107_v14 = vadd.f32 %v4239_v25, %v1018_v16  ;;  %v3579_v25 = vld [vmem:[%s5616_s1 + $0x220] sm:$0xf] }
 0x19f   : > { %v1235_v3 = vpop.f32.mrf.mxu2 }
 0x1a0   : > { %v1236_v31 = vadd.f32 %v1235_v3, %v4530_v42  ;;  %v4838_v47 = vpop.f32.mrf.mxu3  ;;  %v1583_v21 = vpop.f32.mrf.mxu1 }
 0x1a1   : > { %v4836_v5 = vpop.f32.mrf.mxu0 }
 0x1a2   : > { %5681 = vst [vmem:[#allocation51_spill] sm:$0xff] %v4836_v5  ;;  %v1325_v13 = vadd.f32 %v4591_v46, %v1236_v31 }
 0x1a3   : > { %1622 = vmatmul.bf16.gmra.mxu1 %v4562_v18 }
 0x1a4   : > { %1397 = vst [vmem:[%s4541_s15 + $0x118] sm:$0xff] %v1325_v13  ;;  %1765 = vmatmul.bf16.gmra.mxu0 %v4245_v26  ;;  %3458 = vmatmul.msk.bf16.gmra.mxu2 %vm753_vm2, %v3968_v15 }
 0x1a5   : > { %3449 = vmatmul.msk.bf16.gmra.mxu3 %vm753_vm2, %v4252_v30 }
 0x1a7   : > { %v1238_v51 = vpop.f32.mrf.mxu2 }
 0x1a8   : > { %v1239_v46 = vadd.f32 %v1238_v51, %v4530_v42  ;;  %v1672_v53 = vpop.f32.mrf.mxu3  ;;  %v1585_v13 = vpop.f32.mrf.mxu1 }
 0x1a9   : > { %v4854_v1 = vpop.f32.mrf.mxu0  ;;  %v1673_v31 = vadd.f32 %v1672_v53, %v1583_v21 }
 0x1aa   : > { %5682 = vst [vmem:[#allocation52_spill] sm:$0xff] %v4854_v1  ;;  %v1328_v3 = vadd.f32 %v4611_v23, %v1239_v46 }
 0x1ab   : > { %v1994_v2 = vadd.f32 %v1673_v31, %v1105_v60 }
 0x1ac   : > { %1399 = vst [vmem:[%s4541_s15 + $0x128] sm:$0xff] %v1328_v3 }
 0x1ad   : > { %2058 = vst [vmem:[%s4541_s15] sm:$0xff] %v1994_v2 }
 0x1af   : > { %v1240_v50 = vpop.f32.mrf.mxu2 }
 0x1b0   : > { %v1241_v51 = vadd.f32 %v1240_v50, %v4530_v42  ;;  %v1674_v1 = vpop.f32.mrf.mxu3  ;;  %v1588_v21 = vpop.f32.mrf.mxu1 }
 0x1b1   : > { %v4863_v5 = vpop.f32.mrf.mxu0  ;;  %v1675_v23 = vadd.f32 %v1674_v1, %v1585_v13  ;;  %v3714_v1 = vld [vmem:[%s5616_s1 + $0x224] sm:$0xf]  ;;  %v1110_v13 = vadd.f32 %v4249_v29, %v1021_v58  ;;  %v3704_v29 = vld [vmem:[%s5616_s1 + $0x1d4] sm:$0xf] }
 0x1b2   : > { %v1330_v8 = vadd.f32 %v4630_v61, %v1241_v51  ;;  %v3715_v61 = vld [vmem:[%s5616_s1 + $0x224] sm:$0xf0]  ;;  %v3584_v60 = vor.u32 %v3714_v1, %v3581_v36 }
 0x1b3   : > { %v1996_v46 = vadd.f32 %v1675_v23, %v1107_v14  ;;  %1627 = vmatmul.bf16.gmra.mxu1 %v4589_v20  ;;  %v3580_v2 = vor.u32 %v3715_v61, %v3579_v25  ;;  %v3539_v23 = vld [vmem:[%s5616_s1 + $0x1d0] sm:$0xf] }
 0x1b4   : > { %1401 = vst [vmem:[%s4541_s15 + $0x138] sm:$0xff] %v1330_v8  ;;  %1770 = vmatmul.bf16.gmra.mxu0 %v4306_v6  ;;  %3459 = vmatmul.msk.bf16.gmra.mxu2 %vm753_vm2, %v3998_v35 }
 0x1b5   : > { %2060 = vst [vmem:[%s4541_s15 + $0x10] sm:$0xff] %v1996_v46  ;;  %3450 = vmatmul.msk.bf16.gmra.mxu3 %vm753_vm2, %v4315_v12  ;;  %2542 = vmatpush.bf16.msra.mxu2 %v3584_v60  ;;  %v3705_v46 = vld [vmem:[%s5616_s1 + $0x1d4] sm:$0xf0] }
 0x1b6   : > { %2364 = vmatpush.bf16.msra.mxu3 %v3580_v2  ;;  %v3540_v25 = vor.u32 %v3705_v46, %v3539_v23 }
 0x1b7   : > { %v1243_v50 = vpop.f32.mrf.mxu2 }
 0x1b8   : > { %v1244_v53 = vadd.f32 %v1243_v50, %v4530_v42  ;;  %v1677_v31 = vpop.f32.mrf.mxu3  ;;  %v1590_v14 = vpop.f32.mrf.mxu1  ;;  %2272 = vmatpush.bf16.msra.mxu1 %v3540_v25 }
 0x1b9   : > { %v4890_v3 = vpop.f32.mrf.mxu0  ;;  %v1678_v51 = vadd.f32 %v1677_v31, %v1588_v21  ;;  %v1023_v21 = vadd.f32 %v4576_v45, %v4841_v9 }
 0x1ba   : > { %v1333_v16 = vadd.f32 %v4644_v57, %v1244_v53  ;;  %v3541_v57 = vld [vmem:[%s5616_s1 + $0x1d8] sm:$0xf0] }
 0x1bb   : > { %v1998_v8 = vadd.f32 %v1678_v51, %v1110_v13  ;;  %v3544_v58 = vor.u32 %v3704_v29, %v3541_v57  ;;  %v1112_v36 = vadd.f32 %v4291_v10, %v1023_v21  ;;  %v1026_v13 = vadd.f32 %v4585_v54, %v4841_v9  ;;  %v5683_v54 = vld [vmem:[#allocation25_spill] sm:$0xff] }
 0x1bc   : > { %1403 = vst [vmem:[%s4541_s15 + $0x148] sm:$0xff] %v1333_v16  ;;  %v1028_v29 = vadd.f32 %v5683_v54, %v4841_v9  ;;  %v3531_v54 = vld [vmem:[%s5616_s1 + $0x1c0] sm:$0xf] }
 0x1bd   : > { %2062 = vst [vmem:[%s4541_s15 + $0x20] sm:$0xff] %v1998_v8  ;;  %2450 = vmatpush.bf16.msra.mxu0 %v3544_v58 }
 0x1bf   : > { %v1245_v61 = vpop.f32.mrf.mxu2 }
 0x1c0   : > { %v1246_v50 = vadd.f32 %v1245_v61, %v4530_v42  ;;  %v1679_v1 = vpop.f32.mrf.mxu3  ;;  %v1593_v31 = vpop.f32.mrf.mxu1 }
 0x1c1   : > { %v4911_v2 = vpop.f32.mrf.mxu0  ;;  %v1680_v60 = vadd.f32 %v1679_v1, %v1590_v14  ;;  %v1115_v14 = vadd.f32 %v4312_v11, %v1026_v13 }
 0x1c2   : > { %v1335_v53 = vadd.f32 %v4657_v33, %v1246_v50  ;;  %v5684_v50 = vld [vmem:[#allocation7_spill] sm:$0xff] }
 0x1c3   : > { %v2000_v45 = vadd.f32 %v1680_v60, %v1112_v36  ;;  %1632 = vmatmul.bf16.gmra.mxu1 %v4628_v34  ;;  %v1117_v11 = vadd.f32 %v5684_v50, %v1028_v29  ;;  %v5685_v60 = vld [vmem:[#allocation27_spill] sm:$0xff] }
 0x1c4   : > { %1405 = vst [vmem:[%s4541_s15 + $0x158] sm:$0xff] %v1335_v53  ;;  %1775 = vmatmul.bf16.gmra.mxu0 %v4344_v56  ;;  %3460 = vmatmul.msk.bf16.gmra.mxu2 %vm753_vm2, %v4073_v22  ;;  %v3703_v29 = vld [vmem:[%s5616_s1 + $0x1c4] sm:$0xf0] }
 0x1c5   : > { %2064 = vst [vmem:[%s4541_s15 + $0x30] sm:$0xff] %v2000_v45  ;;  %3451 = vmatmul.msk.bf16.gmra.mxu3 %vm753_vm2, %v4351_v63  ;;  %v5686_v45 = vld [vmem:[#allocation11_spill] sm:$0xff] }
 0x1c7   : > { %v1248_v10 = vpop.f32.mrf.mxu2 }
 0x1c8   : > { %v1249_v33 = vadd.f32 %v1248_v10, %v4530_v42  ;;  %v1682_v51 = vpop.f32.mrf.mxu3  ;;  %v1595_v46 = vpop.f32.mrf.mxu1 }
 0x1c9   : > { %v4926_v16 = vpop.f32.mrf.mxu0  ;;  %v1683_v23 = vadd.f32 %v1682_v51, %v1593_v31  ;;  %v1031_v31 = vadd.f32 %v5685_v60, %v4841_v9  ;;  %v5687_v51 = vld [vmem:[#allocation8_spill] sm:$0xff]  ;;  %v5689_v60 = vld [vmem:[#allocation9_spill] sm:$0xff] }
 0x1ca   : > { %v1338_v8 = vadd.f32 %v4671_v59, %v1249_v33 }
 0x1cb   : > { %v2002_v25 = vadd.f32 %v1683_v23, %v1115_v14  ;;  %v1120_v14 = vadd.f32 %v5687_v51, %v1031_v31 }
 0x1cc   : > { %1407 = vst [vmem:[%s4541_s15 + $0x168] sm:$0xff] %v1338_v8 }
 0x1cd   : > { %2066 = vst [vmem:[%s4541_s15 + $0x40] sm:$0xff] %v2002_v25 }
 0x1cf   : > { %v1250_v57 = vpop.f32.mrf.mxu2 }
 0x1d0   : > { %v1251_v21 = vadd.f32 %v1250_v57, %v4530_v42  ;;  %v1684_v61 = vpop.f32.mrf.mxu3  ;;  %v1598_v36 = vpop.f32.mrf.mxu1  ;;  %v3532_v57 = vor.u32 %v3703_v29, %v3531_v54  ;;  %v5693_v54 = vld [vmem:[#allocation14_spill] sm:$0xff] }
 0x1d1   : > { %v4935_v58 = vpop.f32.mrf.mxu0  ;;  %v1685_v59 = vadd.f32 %v1684_v61, %v1595_v46  ;;  %v5688_v61 = vld [vmem:[#allocation29_spill] sm:$0xff] }
 0x1d2   : > { %v1340_v1 = vadd.f32 %v4690_v44, %v1251_v21  ;;  %v3702_v21 = vld [vmem:[%s5616_s1 + $0x1c4] sm:$0xf]  ;;  %v1033_v50 = vadd.f32 %v5688_v61, %v4841_v9  ;;  %2273 = vmatpush.bf16.msra.mxu1 %v3532_v57  ;;  %v5695_v61 = vld [vmem:[#allocation44_spill] sm:$0xff] }
 0x1d3   : > { %v2004_v53 = vadd.f32 %v1685_v59, %v1117_v11  ;;  %1637 = vmatmul.bf16.gmra.mxu1 %v4655_v40 }
 0x1d4   : > { %1409 = vst [vmem:[%s4541_s15 + $0x178] sm:$0xff] %v1340_v1  ;;  %1780 = vmatmul.bf16.gmra.mxu0 %v4379_v24  ;;  %3461 = vmatmul.msk.bf16.gmra.mxu2 %vm753_vm2, %v4128_v0  ;;  %v1122_v31 = vadd.f32 %v5689_v60, %v1033_v50 }
 0x1d5   : > { %2068 = vst [vmem:[%s4541_s15 + $0x50] sm:$0xff] %v2004_v53  ;;  %3452 = vmatmul.msk.bf16.gmra.mxu3 %vm753_vm2, %v5686_v45 }
 0x1d7   : > { %v1253_v44 = vpop.f32.mrf.mxu2 }
 0x1d8   : > { %v1254_v13 = vadd.f32 %v1253_v44, %v4530_v42  ;;  %v1687_v33 = vpop.f32.mrf.mxu3  ;;  %v1600_v46 = vpop.f32.mrf.mxu1 }
 0x1d9   : > { %v4950_v10 = vpop.f32.mrf.mxu0  ;;  %v1688_v23 = vadd.f32 %v1687_v33, %v1598_v36 }
 0x1da   : > { %v1343_v8 = vadd.f32 %v4704_v7, %v1254_v13  ;;  %v3533_v7 = vld [vmem:[%s5616_s1 + $0x1c8] sm:$0xf0] }
 0x1db   : > { %v2006_v25 = vadd.f32 %v1688_v23, %v1120_v14  ;;  %v3536_v11 = vor.u32 %v3702_v21, %v3533_v7  ;;  %v5690_v14 = vld [vmem:[#allocation6_spill] sm:$0xff]  ;;  %v5692_v23 = vld [vmem:[#allocation31_spill] sm:$0xff] }
 0x1dc   : > { %1411 = vst [vmem:[%s4541_s15 + $0x188] sm:$0xff] %v1343_v8  ;;  %v5691_v8 = vld [vmem:[#allocation36_spill] sm:$0xff]  ;;  %v5694_v21 = vld [vmem:[#allocation10_spill] sm:$0xff] }
 0x1dd   : > { %2070 = vst [vmem:[%s4541_s15 + $0x60] sm:$0xff] %v2006_v25  ;;  %2451 = vmatpush.bf16.msra.mxu0 %v3536_v11  ;;  %v1036_v25 = vadd.f32 %v5692_v23, %v4841_v9  ;;  %v5698_v23 = vld [vmem:[#allocation12_spill] sm:$0xff] }
 0x1df   : > { %v1255_v1 = vpop.f32.mrf.mxu2  ;;  %v1125_v7 = vadd.f32 %v5694_v21, %v1036_v25  ;;  %v5699_v21 = vld [vmem:[#allocation41_spill] sm:$0xff] }
 0x1e0   : > { %v1256_v59 = vadd.f32 %v1255_v1, %v4530_v42  ;;  %v1689_v53 = vpop.f32.mrf.mxu3  ;;  %v1603_v33 = vpop.f32.mrf.mxu1 }
 0x1e1   : > { %v4971_v36 = vpop.f32.mrf.mxu0  ;;  %v1690_v13 = vadd.f32 %v1689_v53, %v1600_v46  ;;  %v5696_v53 = vld [vmem:[#allocation33_spill] sm:$0xff] }
 0x1e2   : > { %v1345_v44 = vadd.f32 %v4717_v27, %v1256_v59  ;;  %v1038_v60 = vadd.f32 %v5696_v53, %v4841_v9  ;;  %v3712_v53 = vld [vmem:[%s5616_s1 + $0x214] sm:$0xf] }
 0x1e3   : > { %v2008_v51 = vadd.f32 %v1690_v13, %v1122_v31  ;;  %1642 = vmatmul.bf16.gmra.mxu1 %v5691_v8 }
 0x1e4   : > { %1413 = vst [vmem:[%s4541_s15 + $0x198] sm:$0xff] %v1345_v44  ;;  %1785 = vmatmul.bf16.gmra.mxu0 %v4417_v62  ;;  %3462 = vmatmul.msk.bf16.gmra.mxu2 %vm753_vm2, %v5690_v14  ;;  %v1127_v25 = vadd.f32 %v5698_v23, %v1038_v60  ;;  %v3573_v60 = vld [vmem:[%s5616_s1 + $0x218] sm:$0xf0]  ;;  %v3701_v23 = vld [vmem:[%s5616_s1 + $0x1b4] sm:$0xf0] }
 0x1e5   : > { %2072 = vst [vmem:[%s4541_s15 + $0x70] sm:$0xff] %v2008_v51  ;;  %3453 = vmatmul.msk.bf16.gmra.mxu3 %vm753_vm2, %v5693_v54 }
 0x1e7   : > { %v1258_v27 = vpop.f32.mrf.mxu2 }
 0x1e8   : > { %v1259_v46 = vadd.f32 %v1258_v27, %v4530_v42  ;;  %v1692_v57 = vpop.f32.mrf.mxu3  ;;  %v1605_v1 = vpop.f32.mrf.mxu1 }
 0x1e9   : > { %v4986_v29 = vpop.f32.mrf.mxu0  ;;  %v1693_v11 = vadd.f32 %v1692_v57, %v1603_v33 }
 0x1ea   : > { %v1348_v50 = vadd.f32 %v5695_v61, %v1259_v46 }
 0x1eb   : > { %v2010_v59 = vadd.f32 %v1693_v11, %v1125_v7  ;;  %v5700_v7 = vld [vmem:[#allocation35_spill] sm:$0xff]  ;;  %v3713_v11 = vld [vmem:[%s5616_s1 + $0x214] sm:$0xf0] }
 0x1ec   : > { %1415 = vst [vmem:[%s4541_s15 + $0x1a8] sm:$0xff] %v1348_v50  ;;  %v1041_v61 = vadd.f32 %v5700_v7, %v4841_v9  ;;  %v5701_v50 = vld [vmem:[#allocation17_spill] sm:$0xff] }
 0x1ed   : > { %2074 = vst [vmem:[%s4541_s15 + $0x80] sm:$0xff] %v2010_v59 }
 0x1ef   : > { %v1260_v31 = vpop.f32.mrf.mxu2 }
 0x1f0   : > { %v1261_v44 = vadd.f32 %v1260_v31, %v4530_v42  ;;  %v1694_v51 = vpop.f32.mrf.mxu3  ;;  %v1608_v33 = vpop.f32.mrf.mxu1  ;;  %v3523_v31 = vld [vmem:[%s5616_s1 + $0x1b0] sm:$0xf] }
 0x1f1   : > { %v4995_v13 = vpop.f32.mrf.mxu0  ;;  %v1695_v46 = vadd.f32 %v1694_v51, %v1605_v1  ;;  %v3576_v51 = vor.u32 %v3712_v53, %v3573_v60  ;;  %v3699_v53 = vld [vmem:[%s5616_s1 + $0x1a4] sm:$0xf0] }
 0x1f2   : > { %5697 = vst [vmem:[#allocation25_spill] sm:$0xff] %v4995_v13  ;;  %v1350_v27 = vadd.f32 %v4777_v19, %v1261_v44  ;;  %v3571_v19 = vld [vmem:[%s5616_s1 + $0x210] sm:$0xf] }
 0x1f3   : > { %v2012_v57 = vadd.f32 %v1695_v46, %v1127_v25  ;;  %1647 = vmatmul.bf16.gmra.mxu1 %v5699_v21  ;;  %v3572_v59 = vor.u32 %v3713_v11, %v3571_v19  ;;  %v3524_v46 = vor.u32 %v3701_v23, %v3523_v31  ;;  %2543 = vmatpush.bf16.msra.mxu2 %v3576_v51  ;;  %v5703_v31 = vld [vmem:[#allocation38_spill] sm:$0xff]  ;;  %v3507_v51 = vld [vmem:[%s5616_s1 + $0x190] sm:$0xf]  ;;  %v3697_v23 = vld [vmem:[%s5616_s1 + $0x194] sm:$0xf0] }
 0x1f4   : > { %1417 = vst [vmem:[%s4541_s15 + $0x1b8] sm:$0xff] %v1350_v27  ;;  %1790 = vmatmul.bf16.gmra.mxu0 %v4479_v55  ;;  %3463 = vmatmul.msk.bf16.gmra.mxu2 %vm753_vm2, %v4187_v43 }
 0x1f5   : > { %2076 = vst [vmem:[%s4541_s15 + $0x90] sm:$0xff] %v2012_v57  ;;  %3454 = vmatmul.msk.bf16.gmra.mxu3 %vm753_vm2, %v5701_v50  ;;  %v5702_v57 = vld [vmem:[#allocation13_spill] sm:$0xff]  ;;  %2274 = vmatpush.bf16.msra.mxu1 %v3524_v46  ;;  %v3508_v46 = vor.u32 %v3697_v23, %v3507_v51  ;;  %v5705_v51 = vld [vmem:[#allocation40_spill] sm:$0xff] }
 0x1f6   : > { %2365 = vmatpush.bf16.msra.mxu3 %v3572_v59  ;;  %v1130_v7 = vadd.f32 %v5702_v57, %v1041_v61  ;;  %v3700_v61 = vld [vmem:[%s5616_s1 + $0x1b4] sm:$0xf]  ;;  %v1046_v23 = vadd.f32 %v5705_v51, %v4841_v9  ;;  %v5710_v51 = vld [vmem:[#allocation46_spill] sm:$0xff] }
 0x1f7   : > { %v1263_v1 = vpop.f32.mrf.mxu2 }
 0x1f8   : > { %v1264_v44 = vadd.f32 %v1263_v1, %v4530_v42  ;;  %v1697_v27 = vpop.f32.mrf.mxu3  ;;  %v1610_v13 = vpop.f32.mrf.mxu1  ;;  %v3515_v1 = vld [vmem:[%s5616_s1 + $0x1a0] sm:$0xf] }
 0x1f9   : > { %v5028_v25 = vpop.f32.mrf.mxu0  ;;  %v1698_v11 = vadd.f32 %v1697_v27, %v1608_v33  ;;  %v3516_v60 = vor.u32 %v3699_v53, %v3515_v1 }
 0x1fa   : > { %v1353_v19 = vadd.f32 %v4793_v28, %v1264_v44  ;;  %v3525_v28 = vld [vmem:[%s5616_s1 + $0x1b8] sm:$0xf0]  ;;  %v1043_v44 = vadd.f32 %v5703_v31, %v4841_v9 }
 0x1fb   : > { %v2014_v59 = vadd.f32 %v1698_v11, %v1130_v7  ;;  %v3528_v33 = vor.u32 %v3700_v61, %v3525_v28  ;;  %2275 = vmatpush.bf16.msra.mxu1 %v3516_v60  ;;  %v5704_v11 = vld [vmem:[#allocation15_spill] sm:$0xff]  ;;  %v3499_v28 = vld [vmem:[%s5616_s1 + $0x180] sm:$0xf] }
 0x1fc   : > { %1419 = vst [vmem:[%s4541_s15 + $0x1c8] sm:$0xff] %v1353_v19  ;;  %v1132_v1 = vadd.f32 %v5704_v11, %v1043_v44  ;;  %v3695_v60 = vld [vmem:[%s5616_s1 + $0x184] sm:$0xf0] }
 0x1fd   : > { %2078 = vst [vmem:[%s4541_s15 + $0xa0] sm:$0xff] %v2014_v59  ;;  %2452 = vmatpush.bf16.msra.mxu0 %v3528_v33  ;;  %v3563_v33 = vld [vmem:[%s5616_s1 + $0x200] sm:$0xf]  ;;  %v3500_v31 = vor.u32 %v3695_v60, %v3499_v28 }
 0x1ff   : > { %v1265_v27 = vpop.f32.mrf.mxu2  ;;  %2276 = vmatpush.bf16.msra.mxu1 %v3508_v46 }
 0x200   : > { %v1266_v57 = vadd.f32 %v1265_v27, %v4530_v42  ;;  %v1699_v19 = vpop.f32.mrf.mxu3  ;;  %v1613_v61 = vpop.f32.mrf.mxu1  ;;  %v5706_v27 = vld [vmem:[#allocation20_spill] sm:$0xff] }
 0x201   : > { %v5055_v7 = vpop.f32.mrf.mxu0  ;;  %v1700_v59 = vadd.f32 %v1699_v19, %v1610_v13 }
 0x202   : > { %v1355_v53 = vadd.f32 %v4802_v38, %v1266_v57  ;;  %v3711_v38 = vld [vmem:[%s5616_s1 + $0x204] sm:$0xf0] }
 0x203   : > { %v2016_v13 = vadd.f32 %v1700_v59, %v1132_v1  ;;  %v3564_v44 = vor.u32 %v3711_v38, %v3563_v33  ;;  %1652 = vmatmul.bf16.gmra.mxu1 %v4775_v4  ;;  %v5708_v1 = vld [vmem:[#allocation16_spill] sm:$0xff]  ;;  %v5709_v38 = vld [vmem:[#allocation43_spill] sm:$0xff] }
 0x204   : > { %1421 = vst [vmem:[%s4541_s15 + $0x1d8] sm:$0xff] %v1355_v53  ;;  %1795 = vmatmul.bf16.gmra.mxu0 %v4516_v39  ;;  %3464 = vmatmul.msk.bf16.gmra.mxu2 %vm753_vm2, %v4229_v17  ;;  %v1135_v53 = vadd.f32 %v5708_v1, %v1046_v23 }
 0x205   : > { %2080 = vst [vmem:[%s4541_s15 + $0xb0] sm:$0xff] %v2016_v13  ;;  %3455 = vmatmul.msk.bf16.gmra.mxu3 %vm753_vm2, %v5706_v27  ;;  %2277 = vmatpush.bf16.msra.mxu1 %v3500_v31  ;;  %v1048_v13 = vadd.f32 %v5709_v38, %v4841_v9 }
 0x206   : > { %2366 = vmatpush.bf16.msra.mxu3 %v3564_v44  ;;  %v695_v44 = vpop.permute.xlu1 %694 }
 0x207   : > { %v1268_v46 = vpop.f32.mrf.mxu2 }
 0x208   : > { %v1269_v57 = vadd.f32 %v1268_v46, %v4530_v42  ;;  %v1702_v11 = vpop.f32.mrf.mxu3  ;;  %v1615_v60 = vpop.f32.mrf.mxu1  ;;  %v747_v46 = vrot.slane %v5710_v51, 1 }
 0x209   : > { %v5082_v19 = vpop.f32.mrf.mxu0  ;;  %v1703_v28 = vadd.f32 %v1702_v11, %v1613_v61  ;;  %v5711_v61 = vld [vmem:[#allocation18_spill] sm:$0xff] }
 0x20a   : > { %5707 = vst [vmem:[#allocation7_spill] sm:$0xff] %v5082_v19  ;;  %v1358_v59 = vadd.f32 %v4817_v48, %v1269_v57  ;;  %v748_v19 = vrot.slane %v4765_v37, 1  ;;  %v1137_v57 = vadd.f32 %v5711_v61, %v1048_v13 }
 0x20b   : > { %v2018_v33 = vadd.f32 %v1703_v28, %v1135_v53  ;;  %v5097_v28 = vsel %vm753_vm2, %v5710_v51, %v695_v44 }
 0x20c   : > { %1423 = vst [vmem:[%s4541_s15 + $0x1e8] sm:$0xff] %v1358_v59 }
 0x20d   : > { %2082 = vst [vmem:[%s4541_s15 + $0xc0] sm:$0xff] %v2018_v33  ;;  %v5100_v33 = vsel %vm698_vm1, %v747_v46, %v748_v19 }
 0x20f   : > { %v1270_v31 = vpop.f32.mrf.mxu2 }
 0x210   : > { %v1271_v23 = vadd.f32 %v1270_v31, %v4530_v42  ;;  %v1704_v48 = vpop.f32.mrf.mxu3  ;;  %v1618_v59 = vpop.f32.mrf.mxu1  ;;  %v1051_v42 = vadd.f32 %v4771_v41, %v4841_v9  ;;  %v5712_v31 = vld [vmem:[#allocation19_spill] sm:$0xff]  ;;  %v3698_v41 = vld [vmem:[%s5616_s1 + $0x1a4] sm:$0xf] }
 0x211   : > { %v1761_v1 = vpop.f32.mrf.mxu0  ;;  %v1705_v53 = vadd.f32 %v1704_v48, %v1615_v60  ;;  %v1931_v60 = vld [vmem:[%s4541_s15 + $0x8] sm:$0xff] }
 0x212   : > { %v1360_v11 = vadd.f32 %v4838_v47, %v1271_v23  ;;  %v1140_v44 = vadd.f32 %v5712_v31, %v1051_v42 }
 0x213   : > { %v2020_v37 = vadd.f32 %v1705_v53, %v1137_v57  ;;  %1657 = vmatmul.bf16.gmra.mxu1 %v5097_v28  ;;  %v1053_v57 = vadd.f32 %v4791_v52, %v4841_v9  ;;  %v1056_v52 = vadd.f32 %v4800_v32, %v4841_v9  ;;  %v1058_v32 = vadd.f32 %v4815_v49, %v4841_v9  ;;  %v5716_v49 = vld [vmem:[#allocation51_spill] sm:$0xff] }
 0x214   : > { %1425 = vst [vmem:[%s4541_s15 + $0x1f8] sm:$0xff] %v1360_v11  ;;  %1800 = vmatmul.bf16.gmra.mxu0 %v4562_v18  ;;  %3465 = vmatmul.msk.bf16.gmra.mxu2 %vm753_vm2, %v4252_v30 }
 0x215   : > { %2084 = vst [vmem:[%s4541_s15 + $0xd0] sm:$0xff] %v2020_v37  ;;  %3456 = vmatmul.msk.bf16.gmra.mxu3 %vm753_vm2, %v5100_v33 }
 0x217   : > { %v1850_v47 = vpop.f32.mrf.mxu2 }
 0x218   : > { %v1851_v19 = vadd.f32 %v1850_v47, %v1761_v1  ;;  %v1707_v13 = vpop.f32.mrf.mxu3  ;;  %v1620_v23 = vpop.f32.mrf.mxu1  ;;  %v3517_v1 = vld [vmem:[%s5616_s1 + $0x1a8] sm:$0xf0]  ;;  %v5713_v47 = vld [vmem:[#allocation21_spill] sm:$0xff] }
 0x219   : > { %v1763_v38 = vpop.f32.mrf.mxu0  ;;  %v1708_v46 = vadd.f32 %v1707_v13, %v1618_v59  ;;  %v3520_v61 = vor.u32 %v3698_v41, %v3517_v1  ;;  %v1933_v59 = vld [vmem:[%s4541_s15 + $0x18] sm:$0xff]  ;;  %v5714_v41 = vld [vmem:[#allocation22_spill] sm:$0xff] }
 0x21a   : > { %v1995_v51 = vadd.f32 %v1931_v60, %v1851_v19  ;;  %v1142_v19 = vadd.f32 %v5713_v47, %v1053_v57  ;;  %v1145_v1 = vadd.f32 %v5714_v41, %v1056_v52  ;;  %v1937_v47 = vld [vmem:[%s4541_s15 + $0x38] sm:$0xff] }
 0x21b   : > { %v2022_v48 = vadd.f32 %v1708_v46, %v1140_v44  ;;  %2453 = vmatpush.bf16.msra.mxu0 %v3520_v61  ;;  %v1935_v46 = vld [vmem:[%s4541_s15 + $0x28] sm:$0xff] }
 0x21c   : > { %2059 = vst [vmem:[%s4541_s15 + $0x8] sm:$0xff] %v1995_v51 }
 0x21d   : > { %2086 = vst [vmem:[%s4541_s15 + $0xe0] sm:$0xff] %v2022_v48 }
 0x21f   : > { %v1852_v11 = vpop.f32.mrf.mxu2 }
 0x220   : > { %v1853_v53 = vadd.f32 %v1852_v11, %v1763_v38  ;;  %v1709_v42 = vpop.f32.mrf.mxu3  ;;  %v1623_v31 = vpop.f32.mrf.mxu1 }
 0x221   : > { %v1766_v37 = vpop.f32.mrf.mxu0  ;;  %v1710_v13 = vadd.f32 %v1709_v42, %v1620_v23 }
 0x222   : > { %v1997_v60 = vadd.f32 %v1933_v59, %v1853_v53 }
 0x223   : > { %v2024_v44 = vadd.f32 %v1710_v13, %v1142_v19  ;;  %2278 = vmatmul.bf16.vlgmr.msra.gmra.mxu1 %v4245_v26 }
 0x224   : > { %2061 = vst [vmem:[%s4541_s15 + $0x18] sm:$0xff] %v1997_v60  ;;  %1805 = vmatmul.bf16.gmra.mxu0 %v4589_v20  ;;  %3466 = vmatmul.msk.bf16.gmra.mxu2 %vm753_vm2, %v4315_v12  ;;  %v5715_v60 = vld [vmem:[#allocation23_spill] sm:$0xff] }
 0x225   : > { %2088 = vst [vmem:[%s4541_s15 + $0xf0] sm:$0xff] %v2024_v44  ;;  %3593 = vmatmul.msk.bf16.vlgmr.msra.gmra.mxu3 %vm753_vm2, %v3968_v15  ;;  %v1147_v13 = vadd.f32 %v5715_v60, %v1058_v32  ;;  %v3696_v60 = vld [vmem:[%s5616_s1 + $0x194] sm:$0xf] }
 0x227   : > { %v1855_v38 = vpop.f32.mrf.mxu2 }
 0x228   : > { %v1856_v51 = vadd.f32 %v1855_v38, %v1766_v37  ;;  %v1712_v48 = vpop.f32.mrf.mxu3  ;;  %v1625_v11 = vpop.f32.mrf.mxu1 }
 0x229   : > { %v1768_v23 = vpop.f32.mrf.mxu0  ;;  %v1713_v57 = vadd.f32 %v1712_v48, %v1623_v31 }
 0x22a   : > { %v1999_v61 = vadd.f32 %v1935_v46, %v1856_v51  ;;  %v1061_v51 = vadd.f32 %v5716_v49, %v4841_v9  ;;  %v3710_v46 = vld [vmem:[%s5616_s1 + $0x204] sm:$0xf]  ;;  %v1941_v49 = vld [vmem:[%s4541_s15 + $0x58] sm:$0xff] }
 0x22b   : > { %v2026_v53 = vadd.f32 %v1713_v57, %v1145_v1 }
 0x22c   : > { %2063 = vst [vmem:[%s4541_s15 + $0x28] sm:$0xff] %v1999_v61  ;;  %v1939_v61 = vld [vmem:[%s4541_s15 + $0x48] sm:$0xff] }
 0x22d   : > { %2090 = vst [vmem:[%s4541_s15 + $0x100] sm:$0xff] %v2026_v53  ;;  %v5717_v53 = vld [vmem:[#allocation24_spill] sm:$0xff] }
 0x22e   : > { %v1150_v32 = vadd.f32 %v5717_v53, %v1061_v51 }
 0x22f   : > { %v1857_v59 = vpop.f32.mrf.mxu2 }
 0x230   : > { %v1858_v42 = vadd.f32 %v1857_v59, %v1768_v23  ;;  %v1714_v19 = vpop.f32.mrf.mxu3  ;;  %v1628_v38 = vpop.f32.mrf.mxu1  ;;  %v3565_v23 = vld [vmem:[%s5616_s1 + $0x208] sm:$0xf0] }
 0x231   : > { %v1771_v37 = vpop.f32.mrf.mxu0  ;;  %v1715_v52 = vadd.f32 %v1714_v19, %v1625_v11  ;;  %v3568_v41 = vor.u32 %v3710_v46, %v3565_v23  ;;  %v5719_v23 = vld [vmem:[#allocation26_spill] sm:$0xff] }
 0x232   : > { %v2001_v44 = vadd.f32 %v1937_v47, %v1858_v42 }
 0x233   : > { %v2028_v31 = vadd.f32 %v1715_v52, %v1147_v13  ;;  %2283 = vmatmul.bf16.gmra.mxu1 %v4306_v6  ;;  %2544 = vmatpush.bf16.msra.mxu2 %v3568_v41 }
 0x234   : > { %2065 = vst [vmem:[%s4541_s15 + $0x38] sm:$0xff] %v2001_v44  ;;  %1810 = vmatmul.bf16.gmra.mxu0 %v4628_v34  ;;  %3467 = vmatmul.msk.bf16.gmra.mxu2 %vm753_vm2, %v4351_v63  ;;  %v5718_v44 = vld [vmem:[#allocation52_spill] sm:$0xff] }
 0x235   : > { %2092 = vst [vmem:[%s4541_s15 + $0x110] sm:$0xff] %v2028_v31  ;;  %3594 = vmatmul.msk.bf16.gmra.mxu3 %vm753_vm2, %v3998_v35  ;;  %v1063_v52 = vadd.f32 %v5718_v44, %v4841_v9 }
 0x237   : > { %v1860_v48 = vpop.f32.mrf.mxu2 }
 0x238   : > { %v1861_v1 = vadd.f32 %v1860_v48, %v1771_v37  ;;  %v1717_v11 = vpop.f32.mrf.mxu3  ;;  %v1630_v47 = vpop.f32.mrf.mxu1  ;;  %v3509_v37 = vld [vmem:[%s5616_s1 + $0x198] sm:$0xf0]  ;;  %v1152_v48 = vadd.f32 %v5719_v23, %v1063_v52  ;;  %v5721_v23 = vld [vmem:[#allocation30_spill] sm:$0xff] }
 0x239   : > { %v1773_v57 = vpop.f32.mrf.mxu0  ;;  %v1718_v42 = vadd.f32 %v1717_v11, %v1628_v38  ;;  %v3512_v13 = vor.u32 %v3696_v60, %v3509_v37 }
 0x23a   : > { %v2003_v59 = vadd.f32 %v1939_v61, %v1861_v1 }
 0x23b   : > { %v2030_v19 = vadd.f32 %v1718_v42, %v1150_v32  ;;  %2454 = vmatpush.bf16.msra.mxu0 %v3512_v13 }
 0x23c   : > { %2067 = vst [vmem:[%s4541_s15 + $0x48] sm:$0xff] %v2003_v59  ;;  %v1943_v59 = vld [vmem:[%s4541_s15 + $0x68] sm:$0xff] }
 0x23d   : > { %2094 = vst [vmem:[%s4541_s15 + $0x120] sm:$0xff] %v2030_v19  ;;  %v5720_v19 = vld [vmem:[#allocation28_spill] sm:$0xff] }
 0x23f   : > { %v1862_v31 = vpop.f32.mrf.mxu2 }
 0x240   : > { %v1863_v38 = vadd.f32 %v1862_v31, %v1773_v57  ;;  %v1719_v46 = vpop.f32.mrf.mxu3  ;;  %v1633_v61 = vpop.f32.mrf.mxu1  ;;  %v1066_v57 = vadd.f32 %v4863_v5, %v4841_v9  ;;  %v1068_v5 = vadd.f32 %v4890_v3, %v4841_v9  ;;  %v1071_v3 = vadd.f32 %v4911_v2, %v4841_v9  ;;  %v3694_v2 = vld [vmem:[%s5616_s1 + $0x184] sm:$0xf] }
 0x241   : > { %v1776_v51 = vpop.f32.mrf.mxu0  ;;  %v1720_v1 = vadd.f32 %v1719_v46, %v1630_v47 }
 0x242   : > { %v2005_v41 = vadd.f32 %v1941_v49, %v1863_v38  ;;  %v1155_v60 = vadd.f32 %v5720_v19, %v1066_v57  ;;  %v1945_v49 = vld [vmem:[%s4541_s15 + $0x78] sm:$0xff] }
 0x243   : > { %v2032_v11 = vadd.f32 %v1720_v1, %v1152_v48  ;;  %2288 = vmatmul.bf16.gmra.mxu1 %v4344_v56  ;;  %v1157_v48 = vadd.f32 %v5721_v23, %v1068_v5 }
 0x244   : > { %2069 = vst [vmem:[%s4541_s15 + $0x58] sm:$0xff] %v2005_v41  ;;  %1815 = vmatmul.bf16.gmra.mxu0 %v4655_v40  ;;  %3468 = vmatmul.msk.bf16.gmra.mxu2 %vm753_vm2, %v5686_v45 }
 0x245   : > { %2096 = vst [vmem:[%s4541_s15 + $0x130] sm:$0xff] %v2032_v11  ;;  %3595 = vmatmul.msk.bf16.gmra.mxu3 %vm753_vm2, %v4073_v22 }
 0x247   : > { %v1865_v53 = vpop.f32.mrf.mxu2 }
 0x248   : > { %v1866_v32 = vadd.f32 %v1865_v53, %v1776_v51  ;;  %v1722_v47 = vpop.f32.mrf.mxu3  ;;  %v1635_v44 = vpop.f32.mrf.mxu1 }
 0x249   : > { %v1778_v42 = vpop.f32.mrf.mxu0  ;;  %v1723_v13 = vadd.f32 %v1722_v47, %v1633_v61  ;;  %v5722_v47 = vld [vmem:[#allocation32_spill] sm:$0xff] }
 0x24a   : > { %v2007_v37 = vadd.f32 %v1943_v59, %v1866_v32  ;;  %v1947_v32 = vld [vmem:[%s4541_s15 + $0x88] sm:$0xff]  ;;  %v1160_v19 = vadd.f32 %v5722_v47, %v1071_v3  ;;  %v5724_v47 = vld [vmem:[#allocation37_spill] sm:$0xff] }
 0x24b   : > { %v2034_v52 = vadd.f32 %v1723_v13, %v1155_v60 }
 0x24c   : > { %2071 = vst [vmem:[%s4541_s15 + $0x68] sm:$0xff] %v2007_v37 }
 0x24d   : > { %2098 = vst [vmem:[%s4541_s15 + $0x140] sm:$0xff] %v2034_v52  ;;  %v3501_v52 = vld [vmem:[%s5616_s1 + $0x188] sm:$0xf0] }
 0x24e   : > { %v3504_v5 = vor.u32 %v3694_v2, %v3501_v52 }
 0x24f   : > { %v1867_v31 = vpop.f32.mrf.mxu2 }
 0x250   : > { %v1868_v38 = vadd.f32 %v1867_v31, %v1778_v42  ;;  %v1724_v46 = vpop.f32.mrf.mxu3  ;;  %v1638_v11 = vpop.f32.mrf.mxu1  ;;  %v1073_v31 = vadd.f32 %v4926_v16, %v4841_v9  ;;  %2455 = vmatpush.bf16.msra.mxu0 %v3504_v5  ;;  %v1076_v16 = vadd.f32 %v4935_v58, %v4841_v9  ;;  %v1078_v58 = vadd.f32 %v4950_v10, %v4841_v9  ;;  %v1953_v5 = vld [vmem:[%s4541_s15 + $0xb8] sm:$0xff] }
 0x251   : > { %v1781_v51 = vpop.f32.mrf.mxu0  ;;  %v1725_v1 = vadd.f32 %v1724_v46, %v1635_v44  ;;  %v1081_v10 = vadd.f32 %v4971_v36, %v4841_v9  ;;  %v1083_v36 = vadd.f32 %v4986_v29, %v4841_v9  ;;  %v5728_v29 = vld [vmem:[#allocation25_spill] sm:$0xff] }
 0x252   : > { %v2009_v41 = vadd.f32 %v1945_v49, %v1868_v38 }
 0x253   : > { %v2036_v61 = vadd.f32 %v1725_v1, %v1157_v48  ;;  %2293 = vmatmul.bf16.gmra.mxu1 %v4379_v24  ;;  %v5723_v48 = vld [vmem:[#allocation34_spill] sm:$0xff] }
 0x254   : > { %2073 = vst [vmem:[%s4541_s15 + $0x78] sm:$0xff] %v2009_v41  ;;  %1820 = vmatmul.bf16.gmra.mxu0 %v5691_v8  ;;  %3469 = vmatmul.msk.bf16.gmra.mxu2 %vm753_vm2, %v5693_v54  ;;  %v1162_v41 = vadd.f32 %v5723_v48, %v1073_v31 }
 0x255   : > { %2100 = vst [vmem:[%s4541_s15 + $0x150] sm:$0xff] %v2036_v61  ;;  %3596 = vmatmul.msk.bf16.gmra.mxu3 %vm753_vm2, %v4128_v0 }
 0x257   : > { %v1870_v57 = vpop.f32.mrf.mxu2 }
 0x258   : > { %v1871_v53 = vadd.f32 %v1870_v57, %v1781_v51  ;;  %v1727_v42 = vpop.f32.mrf.mxu3  ;;  %v1640_v13 = vpop.f32.mrf.mxu1  ;;  %v1949_v51 = vld [vmem:[%s4541_s15 + $0x98] sm:$0xff] }
 0x259   : > { %v1783_v59 = vpop.f32.mrf.mxu0  ;;  %v1728_v37 = vadd.f32 %v1727_v42, %v1638_v11 }
 0x25a   : > { %v2011_v60 = vadd.f32 %v1947_v32, %v1871_v53  ;;  %v1951_v32 = vld [vmem:[%s4541_s15 + $0xa8] sm:$0xff] }
 0x25b   : > { %v2038_v44 = vadd.f32 %v1728_v37, %v1160_v19  ;;  %v1165_v19 = vadd.f32 %v5724_v47, %v1076_v16 }
 0x25c   : > { %2075 = vst [vmem:[%s4541_s15 + $0x88] sm:$0xff] %v2011_v60 }
 0x25d   : > { %2102 = vst [vmem:[%s4541_s15 + $0x160] sm:$0xff] %v2038_v44 }
 0x25f   : > { %v1872_v38 = vpop.f32.mrf.mxu2 }
 0x260   : > { %v1873_v49 = vadd.f32 %v1872_v38, %v1783_v59  ;;  %v1729_v23 = vpop.f32.mrf.mxu3  ;;  %v1643_v61 = vpop.f32.mrf.mxu1 }
 0x261   : > { %v1786_v46 = vpop.f32.mrf.mxu0  ;;  %v1730_v11 = vadd.f32 %v1729_v23, %v1640_v13 }
 0x262   : > { %v2013_v1 = vadd.f32 %v1949_v51, %v1873_v49  ;;  %v5725_v49 = vld [vmem:[#allocation39_spill] sm:$0xff] }
 0x263   : > { %v2040_v3 = vadd.f32 %v1730_v11, %v1162_v41  ;;  %2298 = vmatmul.bf16.gmra.mxu1 %v4417_v62  ;;  %v1167_v51 = vadd.f32 %v5725_v49, %v1078_v58  ;;  %v5727_v58 = vld [vmem:[#allocation45_spill] sm:$0xff]  ;;  %v1086_v49 = vadd.f32 %v5728_v29, %v4841_v9 }
 0x264   : > { %2077 = vst [vmem:[%s4541_s15 + $0x98] sm:$0xff] %v2013_v1  ;;  %1825 = vmatmul.bf16.gmra.mxu0 %v5699_v21  ;;  %3470 = vmatmul.msk.bf16.gmra.mxu2 %vm753_vm2, %v5701_v50  ;;  %v5731_v29 = vld [vmem:[#allocation49_spill] sm:$0xff] }
 0x265   : > { %2104 = vst [vmem:[%s4541_s15 + $0x170] sm:$0xff] %v2040_v3  ;;  %3597 = vmatmul.msk.bf16.gmra.mxu3 %vm753_vm2, %v5690_v14 }
 0x267   : > { %v1875_v57 = vpop.f32.mrf.mxu2 }
 0x268   : > { %v1876_v53 = vadd.f32 %v1875_v57, %v1786_v46  ;;  %v1732_v42 = vpop.f32.mrf.mxu3  ;;  %v1645_v13 = vpop.f32.mrf.mxu1  ;;  %v5726_v57 = vld [vmem:[#allocation42_spill] sm:$0xff] }
 0x269   : > { %v1788_v59 = vpop.f32.mrf.mxu0  ;;  %v1733_v37 = vadd.f32 %v1732_v42, %v1643_v61  ;;  %v1955_v61 = vld [vmem:[%s4541_s15 + $0xc8] sm:$0xff] }
 0x26a   : > { %v2015_v60 = vadd.f32 %v1951_v32, %v1876_v53  ;;  %v1170_v53 = vadd.f32 %v5726_v57, %v1081_v10  ;;  %v5729_v10 = vld [vmem:[#allocation47_spill] sm:$0xff]  ;;  %v1088_v57 = vadd.f32 %v5028_v25, %v4841_v9  ;;  %v1091_v25 = vadd.f32 %v5055_v7, %v4841_v9 }
 0x26b   : > { %v2042_v44 = vadd.f32 %v1733_v37, %v1165_v19  ;;  %v1957_v37 = vld [vmem:[%s4541_s15 + $0xd8] sm:$0xff] }
 0x26c   : > { %2079 = vst [vmem:[%s4541_s15 + $0xa8] sm:$0xff] %v2015_v60 }
 0x26d   : > { %2106 = vst [vmem:[%s4541_s15 + $0x180] sm:$0xff] %v2042_v44 }
 0x26f   : > { %v1877_v2 = vpop.f32.mrf.mxu2 }
 0x270   : > { %v1878_v52 = vadd.f32 %v1877_v2, %v1788_v59  ;;  %v1734_v38 = vpop.f32.mrf.mxu3  ;;  %v1648_v48 = vpop.f32.mrf.mxu1  ;;  %v1172_v2 = vadd.f32 %v5727_v58, %v1083_v36  ;;  %v5730_v36 = vld [vmem:[#allocation48_spill] sm:$0xff] }
 0x271   : > { %v1791_v31 = vpop.f32.mrf.mxu0  ;;  %v1735_v23 = vadd.f32 %v1734_v38, %v1645_v13 }
 0x272   : > { %v2017_v46 = vadd.f32 %v1953_v5, %v1878_v52 }
 0x273   : > { %v2044_v41 = vadd.f32 %v1735_v23, %v1167_v51  ;;  %2303 = vmatmul.bf16.gmra.mxu1 %v4479_v55  ;;  %v1959_v23 = vld [vmem:[%s4541_s15 + $0xe8] sm:$0xff] }
 0x274   : > { %2081 = vst [vmem:[%s4541_s15 + $0xb8] sm:$0xff] %v2017_v46  ;;  %1830 = vmatmul.bf16.gmra.mxu0 %v4775_v4  ;;  %3471 = vmatmul.msk.bf16.gmra.mxu2 %vm753_vm2, %v5706_v27 }
 0x275   : > { %2108 = vst [vmem:[%s4541_s15 + $0x190] sm:$0xff] %v2044_v41  ;;  %3598 = vmatmul.msk.bf16.gmra.mxu3 %vm753_vm2, %v4187_v43 }
 0x277   : > { %v1880_v1 = vpop.f32.mrf.mxu2 }
 0x278   : > { %v1881_v11 = vadd.f32 %v1880_v1, %v1791_v31  ;;  %v1737_v16 = vpop.f32.mrf.mxu3  ;;  %v1650_v42 = vpop.f32.mrf.mxu1  ;;  %v1175_v1 = vadd.f32 %v5729_v10, %v1086_v49  ;;  %v1180_v49 = vadd.f32 %v5731_v29, %v1091_v25 }
 0x279   : > { %v1793_v3 = vpop.f32.mrf.mxu0  ;;  %v1738_v59 = vadd.f32 %v1737_v16, %v1648_v48 }
 0x27a   : > { %v2019_v32 = vadd.f32 %v1955_v61, %v1881_v11 }
 0x27b   : > { %v2046_v47 = vadd.f32 %v1738_v59, %v1170_v53  ;;  %v1961_v59 = vld [vmem:[%s4541_s15 + $0xf8] sm:$0xff] }
 0x27c   : > { %2083 = vst [vmem:[%s4541_s15 + $0xc8] sm:$0xff] %v2019_v32 }
 0x27d   : > { %2110 = vst [vmem:[%s4541_s15 + $0x1a0] sm:$0xff] %v2046_v47 }
 0x27f   : > { %v1882_v19 = vpop.f32.mrf.mxu2 }
 0x280   : > { %v1883_v60 = vadd.f32 %v1882_v19, %v1793_v3  ;;  %v1739_v44 = vpop.f32.mrf.mxu3  ;;  %v1653_v31 = vpop.f32.mrf.mxu1  ;;  %v1177_v19 = vadd.f32 %v5730_v36, %v1088_v57 }
 0x281   : > { %v1796_v13 = vpop.f32.mrf.mxu0  ;;  %v1740_v5 = vadd.f32 %v1739_v44, %v1650_v42 }
 0x282   : > { %v2021_v52 = vadd.f32 %v1957_v37, %v1883_v60 }
 0x283   : > { %v2048_v38 = vadd.f32 %v1740_v5, %v1172_v2  ;;  %2308 = vmatmul.bf16.gmra.mxu1 %v4516_v39  ;;  %v1963_v5 = vld [vmem:[%s4541_s15 + $0x108] sm:$0xff] }
 0x284   : > { %2085 = vst [vmem:[%s4541_s15 + $0xd8] sm:$0xff] %v2021_v52  ;;  %1835 = vmatmul.bf16.gmra.mxu0 %v5097_v28  ;;  %3472 = vmatmul.msk.bf16.gmra.mxu2 %vm753_vm2, %v5100_v33  ;;  %v300_v52 = vld [vmem:[%s3871_s29 + $0xd4] sm:$0x1] }
 0x285   : > { %2112 = vst [vmem:[%s4541_s15 + $0x1b0] sm:$0xff] %v2048_v38  ;;  %3599 = vmatmul.msk.bf16.gmra.mxu3 %vm753_vm2, %v4229_v17  ;;  %v5283_v38 = vld [vmem:[%s3871_s29 + $0xcc] sm:$0xff]  ;;  %s2754_s29 = sld [smem:[#allocation2]] }
 0x286   : > { %v651_v10 = vshrl.u32 %v5283_v38, 16 }
 0x287   : > { %v1885_v51 = vpop.f32.mrf.mxu2 }
 0x288   : > { %v1886_v46 = vadd.f32 %v1885_v51, %v1796_v13  ;;  %v1742_v41 = vpop.f32.mrf.mxu3  ;;  %v1655_v3 = vpop.f32.mrf.mxu1 }
 0x289   : > { %v1798_v48 = vpop.f32.mrf.mxu0  ;;  %v1743_v61 = vadd.f32 %v1742_v41, %v1653_v31 }
 0x28a   : > { %v2023_v11 = vadd.f32 %v1959_v23, %v1886_v46 }
 0x28b   : > { %v2050_v16 = vadd.f32 %v1743_v61, %v1175_v1  ;;  %v5732_v61 = vld [vmem:[#allocation7_spill] sm:$0xff]  ;;  %v5309_v29 = vstv %s2754_s29 }
 0x28c   : > { %2087 = vst [vmem:[%s4541_s15 + $0xe8] sm:$0xff] %v2023_v11 }
 0x28d   : > { %2114 = vst [vmem:[%s4541_s15 + $0x1c0] sm:$0xff] %v2050_v16 }
 0x28f   : > { %v1887_v53 = vpop.f32.mrf.mxu2 }
 0x290   : > { %v1888_v32 = vadd.f32 %v1887_v53, %v1798_v48  ;;  %v1744_v47 = vpop.f32.mrf.mxu3  ;;  %v1658_v13 = vpop.f32.mrf.mxu1  ;;  %v653_v48 = vshll.u32 %v5283_v38, 16 }
 0x291   : > { %v1801_v42 = vpop.f32.mrf.mxu0  ;;  %v1745_v37 = vadd.f32 %v1744_v47, %v1655_v3  ;;  %v1093_v3 = vadd.f32 %v5732_v61, %v4841_v9 }
 0x292   : > { %v2025_v60 = vadd.f32 %v1961_v59, %v1888_v32  ;;  %v655_v1 = vrot.slane %v653_v48, 1  ;;  %v1965_v59 = vld [vmem:[%s4541_s15 + $0x118] sm:$0xff] }
 0x293   : > { %v2052_v44 = vadd.f32 %v1745_v37, %v1177_v19  ;;  %2313 = vmatmul.bf16.gmra.mxu1 %v4562_v18  ;;  %v5733_v19 = vld [vmem:[#allocation50_spill] sm:$0xff]  ;;  %v1969_v48 = vld [vmem:[%s4541_s15 + $0x138] sm:$0xff] }
 0x294   : > { %2089 = vst [vmem:[%s4541_s15 + $0xf8] sm:$0xff] %v2025_v60  ;;  %2456 = vmatmul.bf16.vlgmr.msra.gmra.mxu0 %v4245_v26  ;;  %3609 = vmatmul.msk.bf16.vlgmr.msra.gmra.mxu2 %vm753_vm2, %v3968_v15  ;;  %v426_v15 = vunpack.c.l.b16 %v300_v52  ;;  %v656_v57 = vor.u32 %v655_v1, %v651_v10  ;;  %v1182_v60 = vadd.f32 %v5733_v19, %v1093_v3  ;;  %v2628_v3 = vld [vmem:[%s4541_s15 + $0x10] sm:$0xff] }
 0x295   : > { %2116 = vst [vmem:[%s4541_s15 + $0x1d0] sm:$0xff] %v2052_v44  ;;  %3600 = vmatmul.msk.bf16.gmra.mxu3 %vm753_vm2, %v4252_v30 }
 0x296   : > { %v5286_v23 = vpack.c.b16 %v426_v15, %v426_v15 }
 0x297   : > { %v1890_v58 = vpop.f32.mrf.mxu2 }
 0x298   : > { %v1891_v2 = vadd.f32 %v1890_v58, %v1801_v42  ;;  %v1747_v26 = vpop.f32.mrf.mxu3  ;;  %v1660_v46 = vpop.f32.mrf.mxu1  ;;  %v658_v11 = vshll.u32 %v5286_v23, 16 }
 0x299   : > { %v1803_v31 = vpop.f32.mrf.mxu0  ;;  %v1748_v7 = vadd.f32 %v1747_v26, %v1658_v13 }
 0x29a   : > { %v2027_v51 = vadd.f32 %v1963_v5, %v1891_v2  ;;  %v660_v53 = vrot.slane %v658_v11, 1  ;;  %v1967_v2 = vld [vmem:[%s4541_s15 + $0x128] sm:$0xff] }
 0x29b   : > { %v2054_v41 = vadd.f32 %v1748_v7, %v1180_v49 }
 0x29c   : > { %2091 = vst [vmem:[%s4541_s15 + $0x108] sm:$0xff] %v2027_v51  ;;  %v661_v36 = vsel %vm445_vm0, %v656_v57, %v660_v53 }
 0x29d   : > { %2118 = vst [vmem:[%s4541_s15 + $0x1e0] sm:$0xff] %v2054_v41  ;;  %696 = vrot.lane.b32.xlu2 %v661_v36, %s3814_s14 }
 0x29f   : > { %v1892_v16 = vpop.f32.mrf.mxu2 }
 0x2a0   : > { %v1893_v32 = vadd.f32 %v1892_v16, %v1803_v31  ;;  %v1749_v47 = vpop.f32.mrf.mxu3  ;;  %v2279_v44 = vpop.f32.mrf.mxu1 }
 0x2a1   : > { %v1806_v42 = vpop.f32.mrf.mxu0  ;;  %v1750_v13 = vadd.f32 %v1749_v47, %v1660_v46 }
 0x2a2   : > { %v2029_v37 = vadd.f32 %v1965_v59, %v1893_v32 }
 0x2a3   : > { %v2056_v9 = vadd.f32 %v1750_v13, %v1182_v60  ;;  %2318 = vmatmul.bf16.gmra.mxu1 %v4589_v20  ;;  %v2630_v60 = vld [vmem:[%s4541_s15 + $0x20] sm:$0xff] }
 0x2a4   : > { %2093 = vst [vmem:[%s4541_s15 + $0x118] sm:$0xff] %v2029_v37  ;;  %2461 = vmatmul.bf16.gmra.mxu0 %v4306_v6  ;;  %3610 = vmatmul.msk.bf16.gmra.mxu2 %vm753_vm2, %v3998_v35  ;;  %v2626_v6 = vld [vmem:[%s4541_s15] sm:$0xff] }
 0x2a5   : > { %2120 = vst [vmem:[%s4541_s15 + $0x1f0] sm:$0xff] %v2056_v9  ;;  %3601 = vmatmul.msk.bf16.gmra.mxu3 %vm753_vm2, %v4315_v12 }
 0x2a7   : > { %v1895_v25 = vpop.f32.mrf.mxu2 }
 0x2a8   : > { %v1896_v58 = vadd.f32 %v1895_v25, %v1806_v42  ;;  %v2368_v5 = vpop.f32.mrf.mxu3  ;;  %v2281_v15 = vpop.f32.mrf.mxu1 }
 0x2a9   : > { %v1808_v52 = vpop.f32.mrf.mxu0  ;;  %v2369_v26 = vadd.f32 %v2368_v5, %v2279_v44 }
 0x2aa   : > { %v2031_v31 = vadd.f32 %v1967_v2, %v1896_v58  ;;  %v1973_v58 = vld [vmem:[%s4541_s15 + $0x158] sm:$0xff] }
 0x2ab   : > { %v2690_v35 = vadd.f32 %v2626_v6, %v2369_v26 }
 0x2ac   : > { %2095 = vst [vmem:[%s4541_s15 + $0x128] sm:$0xff] %v2031_v31 }
 0x2ad   : > { %vm2755_vm3 = vcmp.gt.f32.partialorder %v2690_v35, 0.0  ;;  %v2820_v49 = vmul.f32 %v5309_v29, %v2690_v35 }
 0x2af   : > { %v1897_v51 = vpop.f32.mrf.mxu2  ;;  %v2884_v7 = vsel %vm2755_vm3, %v2690_v35, %v2820_v49 }
 0x2b0   : > { %v1898_v46 = vadd.f32 %v1897_v51, %v1808_v52  ;;  %2948 = vst [vmem:[%s4541_s15] sm:$0xff] %v2884_v7  ;;  %v2370_v10 = vpop.f32.mrf.mxu3  ;;  %v2284_v61 = vpop.f32.mrf.mxu1 }
 0x2b1   : > { %v1811_v41 = vpop.f32.mrf.mxu0  ;;  %v2371_v11 = vadd.f32 %v2370_v10, %v2281_v15  ;;  %v2632_v15 = vld [vmem:[%s4541_s15 + $0x30] sm:$0xff] }
 0x2b2   : > { %v2033_v1 = vadd.f32 %v1969_v48, %v1898_v46 }
 0x2b3   : > { %v2692_v16 = vadd.f32 %v2628_v3, %v2371_v11  ;;  %2323 = vmatmul.bf16.gmra.mxu1 %v4628_v34 }
 0x2b4   : > { %2097 = vst [vmem:[%s4541_s15 + $0x138] sm:$0xff] %v2033_v1  ;;  %2466 = vmatmul.bf16.gmra.mxu0 %v4344_v56  ;;  %3611 = vmatmul.msk.bf16.gmra.mxu2 %vm753_vm2, %v4073_v22  ;;  %v1971_v56 = vld [vmem:[%s4541_s15 + $0x148] sm:$0xff]  ;;  %v2634_v1 = vld [vmem:[%s4541_s15 + $0x40] sm:$0xff] }
 0x2b5   : > { %vm2757_vm4 = vcmp.gt.f32.partialorder %v2692_v16, 0.0  ;;  %v2822_v57 = vmul.f32 %v5309_v29, %v2692_v16  ;;  %3602 = vmatmul.msk.bf16.gmra.mxu3 %vm753_vm2, %v4351_v63 }
 0x2b7   : > { %v1900_v53 = vpop.f32.mrf.mxu2  ;;  %v2886_v32 = vsel %vm2757_vm4, %v2692_v16, %v2822_v57 }
 0x2b8   : > { %v1901_v59 = vadd.f32 %v1900_v53, %v1811_v41  ;;  %2950 = vst [vmem:[%s4541_s15 + $0x10] sm:$0xff] %v2886_v32  ;;  %v2373_v47 = vpop.f32.mrf.mxu3  ;;  %v2286_v19 = vpop.f32.mrf.mxu1  ;;  %v1977_v53 = vld [vmem:[%s4541_s15 + $0x178] sm:$0xff] }
 0x2b9   : > { %v1813_v42 = vpop.f32.mrf.mxu0  ;;  %v2374_v22 = vadd.f32 %v2373_v47, %v2284_v61 }
 0x2ba   : > { %v2035_v36 = vadd.f32 %v1971_v56, %v1901_v59 }
 0x2bb   : > { %v2694_v37 = vadd.f32 %v2630_v60, %v2374_v22 }
 0x2bc   : > { %2099 = vst [vmem:[%s4541_s15 + $0x148] sm:$0xff] %v2035_v36  ;;  %v2636_v36 = vld [vmem:[%s4541_s15 + $0x50] sm:$0xff] }
 0x2bd   : > { %vm2759_vm5 = vcmp.gt.f32.partialorder %v2694_v37, 0.0  ;;  %v2824_v13 = vmul.f32 %v5309_v29, %v2694_v37 }
 0x2bf   : > { %v1902_v44 = vpop.f32.mrf.mxu2  ;;  %v2888_v9 = vsel %vm2759_vm5, %v2694_v37, %v2824_v13 }
 0x2c0   : > { %v1903_v25 = vadd.f32 %v1902_v44, %v1813_v42  ;;  %2952 = vst [vmem:[%s4541_s15 + $0x20] sm:$0xff] %v2888_v9  ;;  %v2375_v52 = vpop.f32.mrf.mxu3  ;;  %v2289_v26 = vpop.f32.mrf.mxu1 }
 0x2c1   : > { %v1816_v2 = vpop.f32.mrf.mxu0  ;;  %v2376_v31 = vadd.f32 %v2375_v52, %v2286_v19 }
 0x2c2   : > { %v2037_v5 = vadd.f32 %v1973_v58, %v1903_v25 }
 0x2c3   : > { %v2696_v6 = vadd.f32 %v2632_v15, %v2376_v31  ;;  %2328 = vmatmul.bf16.gmra.mxu1 %v4655_v40 }
 0x2c4   : > { %2101 = vst [vmem:[%s4541_s15 + $0x158] sm:$0xff] %v2037_v5  ;;  %2471 = vmatmul.bf16.gmra.mxu0 %v4379_v24  ;;  %3612 = vmatmul.msk.bf16.gmra.mxu2 %vm753_vm2, %v4128_v0  ;;  %v1975_v24 = vld [vmem:[%s4541_s15 + $0x168] sm:$0xff] }
 0x2c5   : > { %vm2761_vm6 = vcmp.gt.f32.partialorder %v2696_v6, 0.0  ;;  %v2826_v35 = vmul.f32 %v5309_v29, %v2696_v6  ;;  %3603 = vmatmul.msk.bf16.gmra.mxu3 %vm753_vm2, %v5686_v45 }
 0x2c7   : > { %v1905_v49 = vpop.f32.mrf.mxu2  ;;  %v2890_v51 = vsel %vm2761_vm6, %v2696_v6, %v2826_v35  ;;  %v1981_v6 = vld [vmem:[%s4541_s15 + $0x198] sm:$0xff] }
 0x2c8   : > { %v1906_v7 = vadd.f32 %v1905_v49, %v1816_v2  ;;  %2954 = vst [vmem:[%s4541_s15 + $0x30] sm:$0xff] %v2890_v51  ;;  %v2378_v48 = vpop.f32.mrf.mxu3  ;;  %v2291_v10 = vpop.f32.mrf.mxu1  ;;  %v2638_v2 = vld [vmem:[%s4541_s15 + $0x60] sm:$0xff] }
 0x2c9   : > { %v1818_v46 = vpop.f32.mrf.mxu0  ;;  %v2379_v0 = vadd.f32 %v2378_v48, %v2289_v26 }
 0x2ca   : > { %v2039_v41 = vadd.f32 %v1975_v24, %v1906_v7 }
 0x2cb   : > { %v2698_v11 = vadd.f32 %v2634_v1, %v2379_v0 }
 0x2cc   : > { %2103 = vst [vmem:[%s4541_s15 + $0x168] sm:$0xff] %v2039_v41 }
 0x2cd   : > { %vm2763_vm7 = vcmp.gt.f32.partialorder %v2698_v11, 0.0  ;;  %v2828_v61 = vmul.f32 %v5309_v29, %v2698_v11 }
 0x2cf   : > { %v1907_v3 = vpop.f32.mrf.mxu2  ;;  %v2892_v16 = vsel %vm2763_vm7, %v2698_v11, %v2828_v61  ;;  %v1983_v11 = vld [vmem:[%s4541_s15 + $0x1a8] sm:$0xff] }
 0x2d0   : > { %v1908_v57 = vadd.f32 %v1907_v3, %v1818_v46  ;;  %2956 = vst [vmem:[%s4541_s15 + $0x40] sm:$0xff] %v2892_v16  ;;  %v2380_v59 = vpop.f32.mrf.mxu3  ;;  %v2294_v47 = vpop.f32.mrf.mxu1  ;;  %v2640_v46 = vld [vmem:[%s4541_s15 + $0x70] sm:$0xff] }
 0x2d1   : > { %v1821_v32 = vpop.f32.mrf.mxu0  ;;  %v2381_v42 = vadd.f32 %v2380_v59, %v2291_v10 }
 0x2d2   : > { %v2041_v56 = vadd.f32 %v1977_v53, %v1908_v57  ;;  %v2642_v57 = vld [vmem:[%s4541_s15 + $0x80] sm:$0xff] }
 0x2d3   : > { %v2700_v22 = vadd.f32 %v2636_v36, %v2381_v42  ;;  %2333 = vmatmul.bf16.gmra.mxu1 %v5691_v8 }
 0x2d4   : > { %2105 = vst [vmem:[%s4541_s15 + $0x178] sm:$0xff] %v2041_v56  ;;  %2476 = vmatmul.bf16.gmra.mxu0 %v4417_v62  ;;  %3613 = vmatmul.msk.bf16.gmra.mxu2 %vm753_vm2, %v5690_v14  ;;  %v1979_v62 = vld [vmem:[%s4541_s15 + $0x188] sm:$0xff] }
 0x2d5   : > { %vm2765_vm8 = vcmp.gt.f32.partialorder %v2700_v22, 0.0  ;;  %v2830_v19 = vmul.f32 %v5309_v29, %v2700_v22  ;;  %3604 = vmatmul.msk.bf16.gmra.mxu3 %vm753_vm2, %v5693_v54 }
 0x2d7   : > { %v1910_v60 = vpop.f32.mrf.mxu2  ;;  %v2894_v37 = vsel %vm2765_vm8, %v2700_v22, %v2830_v19 }
 0x2d8   : > { %v1911_v13 = vadd.f32 %v1910_v60, %v1821_v32  ;;  %2958 = vst [vmem:[%s4541_s15 + $0x50] sm:$0xff] %v2894_v37  ;;  %v2383_v9 = vpop.f32.mrf.mxu3  ;;  %v2296_v58 = vpop.f32.mrf.mxu1  ;;  %v2644_v60 = vld [vmem:[%s4541_s15 + $0x90] sm:$0xff] }
 0x2d9   : > { %v1823_v44 = vpop.f32.mrf.mxu0  ;;  %v2384_v14 = vadd.f32 %v2383_v9, %v2294_v47 }
 0x2da   : > { %v2043_v25 = vadd.f32 %v1979_v62, %v1911_v13 }
 0x2db   : > { %v2702_v52 = vadd.f32 %v2638_v2, %v2384_v14 }
 0x2dc   : > { %2107 = vst [vmem:[%s4541_s15 + $0x188] sm:$0xff] %v2043_v25 }
 0x2dd   : > { %vm2767_vm9 = vcmp.gt.f32.partialorder %v2702_v52, 0.0  ;;  %v2832_v5 = vmul.f32 %v5309_v29, %v2702_v52 }
 0x2df   : > { %v1912_v31 = vpop.f32.mrf.mxu2  ;;  %v2896_v26 = vsel %vm2767_vm9, %v2702_v52, %v2832_v5 }
 0x2e0   : > { %v1913_v15 = vadd.f32 %v1912_v31, %v1823_v44  ;;  %2960 = vst [vmem:[%s4541_s15 + $0x60] sm:$0xff] %v2896_v26  ;;  %v2385_v49 = vpop.f32.mrf.mxu3  ;;  %v2299_v24 = vpop.f32.mrf.mxu1 }
 0x2e1   : > { %v1826_v35 = vpop.f32.mrf.mxu0  ;;  %v2386_v7 = vadd.f32 %v2385_v49, %v2296_v58 }
 0x2e2   : > { %v2045_v51 = vadd.f32 %v1981_v6, %v1913_v15 }
 0x2e3   : > { %v2704_v48 = vadd.f32 %v2640_v46, %v2386_v7  ;;  %2338 = vmatmul.bf16.gmra.mxu1 %v5699_v21 }
 0x2e4   : > { %2109 = vst [vmem:[%s4541_s15 + $0x198] sm:$0xff] %v2045_v51  ;;  %2481 = vmatmul.bf16.gmra.mxu0 %v4479_v55  ;;  %3614 = vmatmul.msk.bf16.gmra.mxu2 %vm753_vm2, %v4187_v43  ;;  %v2648_v51 = vld [vmem:[%s4541_s15 + $0xb0] sm:$0xff] }
 0x2e5   : > { %vm2769_vm10 = vcmp.gt.f32.partialorder %v2704_v48, 0.0  ;;  %v2834_v41 = vmul.f32 %v5309_v29, %v2704_v48  ;;  %3605 = vmatmul.msk.bf16.gmra.mxu3 %vm753_vm2, %v5701_v50 }
 0x2e7   : > { %v1915_v0 = vpop.f32.mrf.mxu2  ;;  %v2898_v10 = vsel %vm2769_vm10, %v2704_v48, %v2834_v41 }
 0x2e8   : > { %v1916_v1 = vadd.f32 %v1915_v0, %v1826_v35  ;;  %2962 = vst [vmem:[%s4541_s15 + $0x70] sm:$0xff] %v2898_v10  ;;  %v2388_v61 = vpop.f32.mrf.mxu3  ;;  %v2301_v16 = vpop.f32.mrf.mxu1 }
 0x2e9   : > { %v1828_v55 = vpop.f32.mrf.mxu0  ;;  %v2389_v43 = vadd.f32 %v2388_v61, %v2299_v24 }
 0x2ea   : > { %v2047_v3 = vadd.f32 %v1983_v11, %v1916_v1  ;;  %v2650_v11 = vld [vmem:[%s4541_s15 + $0xc0] sm:$0xff] }
 0x2eb   : > { %v2706_v53 = vadd.f32 %v2642_v57, %v2389_v43  ;;  %v751_v43 = vrot.slane %v5286_v23, 1 }
 0x2ec   : > { %2111 = vst [vmem:[%s4541_s15 + $0x1a8] sm:$0xff] %v2047_v3  ;;  %v750_v3 = vrot.slane %v5283_v38, 1 }
 0x2ed   : > { %vm2771_vm11 = vcmp.gt.f32.partialorder %v2706_v53, 0.0  ;;  %v2836_v32 = vmul.f32 %v5309_v29, %v2706_v53 }
 0x2ef   : > { %v1917_v59 = vpop.f32.mrf.mxu2  ;;  %v2900_v56 = vsel %vm2771_vm11, %v2706_v53, %v2836_v32 }
 0x2f0   : > { %v5377_v42 = vadd.f32 %v1917_v59, %v1828_v55  ;;  %2964 = vst [vmem:[%s4541_s15 + $0x80] sm:$0xff] %v2900_v56  ;;  %v2390_v36 = vpop.f32.mrf.mxu3  ;;  %v2304_v19 = vpop.f32.mrf.mxu1 }
 0x2f1   : > { %v1831_v47 = vpop.f32.mrf.mxu0  ;;  %v2391_v22 = vadd.f32 %v2390_v36, %v2301_v16 }
 0x2f3   : > { %v2708_v37 = vadd.f32 %v2644_v60, %v2391_v22  ;;  %2343 = vmatmul.bf16.gmra.mxu1 %v4775_v4  ;;  %v2652_v22 = vld [vmem:[%s4541_s15 + $0xd0] sm:$0xff] }
 0x2f4   : > { %2486 = vmatmul.bf16.gmra.mxu0 %v4516_v39  ;;  %3615 = vmatmul.msk.bf16.gmra.mxu2 %vm753_vm2, %v4229_v17  ;;  %v2646_v17 = vld [vmem:[%s4541_s15 + $0xa0] sm:$0xff] }
 0x2f5   : > { %vm2773_vm12 = vcmp.gt.f32.partialorder %v2708_v37, 0.0  ;;  %v2838_v13 = vmul.f32 %v5309_v29, %v2708_v37  ;;  %3606 = vmatmul.msk.bf16.gmra.mxu3 %vm753_vm2, %v5706_v27 }
 0x2f7   : > { %v1920_v62 = vpop.f32.mrf.mxu2  ;;  %v2902_v44 = vsel %vm2773_vm12, %v2708_v37, %v2838_v13  ;;  %v697_v16 = vpop.permute.xlu2 %696 }
 0x2f8   : > { %v5388_v9 = vadd.f32 %v1920_v62, %v1831_v47  ;;  %2966 = vst [vmem:[%s4541_s15 + $0x90] sm:$0xff] %v2902_v44  ;;  %v2393_v39 = vpop.f32.mrf.mxu3  ;;  %v2306_v58 = vpop.f32.mrf.mxu1  ;;  %v5416_v36 = vsel %vm753_vm2, %v5283_v38, %v697_v16  ;;  %v2627_v62 = vld [vmem:[%s4541_s15 + $0x8] sm:$0xff] }
 0x2f9   : > { %v1833_v25 = vpop.f32.mrf.mxu0  ;;  %v2394_v14 = vadd.f32 %v2393_v39, %v2304_v19  ;;  %v5420_v19 = vsel %vm698_vm1, %v750_v3, %v751_v43 }
 0x2fb   : > { %v2710_v2 = vadd.f32 %v2646_v17, %v2394_v14  ;;  %v2654_v14 = vld [vmem:[%s4541_s15 + $0xe0] sm:$0xff] }
 0x2fd   : > { %vm2775_vm13 = vcmp.gt.f32.partialorder %v2710_v2, 0.0  ;;  %v2840_v52 = vmul.f32 %v5309_v29, %v2710_v2 }
 0x2ff   : > { %v1922_v5 = vpop.f32.mrf.mxu2  ;;  %v2904_v31 = vsel %vm2775_vm13, %v2710_v2, %v2840_v52 }
 0x300   : > { %v5393_v26 = vadd.f32 %v1922_v5, %v1833_v25  ;;  %2968 = vst [vmem:[%s4541_s15 + $0xa0] sm:$0xff] %v2904_v31  ;;  %v2395_v6 = vpop.f32.mrf.mxu3  ;;  %v2309_v49 = vpop.f32.mrf.mxu1 }
 0x301   : > { %v1836_v15 = vpop.f32.mrf.mxu0  ;;  %v2396_v35 = vadd.f32 %v2395_v6, %v2306_v58  ;;  %v2629_v6 = vld [vmem:[%s4541_s15 + $0x18] sm:$0xff] }
 0x303   : > { %v2712_v7 = vadd.f32 %v2648_v51, %v2396_v35  ;;  %2348 = vmatmul.bf16.gmra.mxu1 %v5097_v28 }
 0x304   : > { %2491 = vmatmul.bf16.gmra.mxu0 %v4562_v18  ;;  %3616 = vmatmul.msk.bf16.gmra.mxu2 %vm753_vm2, %v4252_v30 }
 0x305   : > { %vm2777_vm14 = vcmp.gt.f32.partialorder %v2712_v7, 0.0  ;;  %v2842_v24 = vmul.f32 %v5309_v29, %v2712_v7  ;;  %3607 = vmatmul.msk.bf16.gmra.mxu3 %vm753_vm2, %v5100_v33 }
 0x307   : > { %v1925_v46 = vpop.f32.mrf.mxu2  ;;  %v2906_v48 = vsel %vm2777_vm14, %v2712_v7, %v2842_v24 }
 0x308   : > { %v5404_v41 = vadd.f32 %v1925_v46, %v1836_v15  ;;  %2970 = vst [vmem:[%s4541_s15 + $0xb0] sm:$0xff] %v2906_v48  ;;  %v2398_v10 = vpop.f32.mrf.mxu3  ;;  %v2311_v1 = vpop.f32.mrf.mxu1  ;;  %v2656_v46 = vld [vmem:[%s4541_s15 + $0xf0] sm:$0xff] }
 0x309   : > { %v1838_v0 = vpop.f32.mrf.mxu0  ;;  %v2399_v18 = vadd.f32 %v2398_v10, %v2309_v49 }
 0x30b   : > { %v2714_v30 = vadd.f32 %v2650_v11, %v2399_v18 }
 0x30d   : > { %vm2779_vm15 = vcmp.gt.f32.partialorder %v2714_v30, 0.0  ;;  %v2844_v55 = vmul.f32 %v5309_v29, %v2714_v30 }
 0x30f   : > { %v1927_v61 = vpop.f32.mrf.mxu2  ;;  %v2908_v57 = vsel %vm2779_vm15, %v2714_v30, %v2844_v55  ;;  %v2631_v55 = vld [vmem:[%s4541_s15 + $0x28] sm:$0xff] }
 0x310   : > { %v5411_v53 = vadd.f32 %v1927_v61, %v1838_v0  ;;  %2972 = vst [vmem:[%s4541_s15 + $0xc0] sm:$0xff] %v2908_v57  ;;  %v2400_v59 = vpop.f32.mrf.mxu3  ;;  %v2314_v47 = vpop.f32.mrf.mxu1  ;;  %v2658_v57 = vld [vmem:[%s4541_s15 + $0x100] sm:$0xff] }
 0x311   : > { %v2457_v32 = vpop.f32.mrf.mxu0  ;;  %v2401_v56 = vadd.f32 %v2400_v59, %v2311_v1 }
 0x313   : > { %v2716_v23 = vadd.f32 %v2652_v22, %v2401_v56  ;;  %2353 = vmatmul.bf16.gmra.mxu1 %v5416_v36 }
 0x314   : > { %2496 = vmatmul.bf16.gmra.mxu0 %v4589_v20  ;;  %3617 = vmatmul.msk.bf16.gmra.mxu2 %vm753_vm2, %v4315_v12 }
 0x315   : > { %vm2781_vm0 = vcmp.gt.f32.partialorder %v2716_v23, 0.0  ;;  %v2846_v60 = vmul.f32 %v5309_v29, %v2716_v23  ;;  %3608 = vmatmul.msk.bf16.gmra.mxu3 %vm753_vm2, %v5420_v19 }
 0x317   : > { %v2546_v38 = vpop.f32.mrf.mxu2  ;;  %v2910_v37 = vsel %vm2781_vm0, %v2716_v23, %v2846_v60  ;;  %v2633_v60 = vld [vmem:[%s4541_s15 + $0x38] sm:$0xff] }
 0x318   : > { %v2547_v13 = vadd.f32 %v2546_v38, %v2457_v32  ;;  %2974 = vst [vmem:[%s4541_s15 + $0xd0] sm:$0xff] %v2910_v37  ;;  %v2403_v20 = vpop.f32.mrf.mxu3  ;;  %v2316_v39 = vpop.f32.mrf.mxu1 }
 0x319   : > { %v2459_v44 = vpop.f32.mrf.mxu0  ;;  %v2404_v12 = vadd.f32 %v2403_v20, %v2314_v47  ;;  %v2660_v20 = vld [vmem:[%s4541_s15 + $0x110] sm:$0xff] }
 0x31a   : > { %v2691_v25 = vadd.f32 %v2627_v62, %v2547_v13 }
 0x31b   : > { %v2718_v17 = vadd.f32 %v2654_v14, %v2404_v12 }
 0x31c   : > { %vm2756_vm1 = vcmp.gt.f32.partialorder %v2691_v25, 0.0  ;;  %v2821_v58 = vmul.f32 %v5309_v29, %v2691_v25 }
 0x31d   : > { %vm2783_vm3 = vcmp.gt.f32.partialorder %v2718_v17, 0.0  ;;  %v2848_v52 = vmul.f32 %v5309_v29, %v2718_v17 }
 0x31e   : > { %v2885_v2 = vsel %vm2756_vm1, %v2691_v25, %v2821_v58 }
 0x31f   : > { %2949 = vst [vmem:[%s4541_s15 + $0x8] sm:$0xff] %v2885_v2  ;;  %v2548_v5 = vpop.f32.mrf.mxu2  ;;  %v2912_v31 = vsel %vm2783_vm3, %v2718_v17, %v2848_v52  ;;  %v2635_v52 = vld [vmem:[%s4541_s15 + $0x48] sm:$0xff] }
 0x320   : > { %v2549_v15 = vadd.f32 %v2548_v5, %v2459_v44  ;;  %2976 = vst [vmem:[%s4541_s15 + $0xe0] sm:$0xff] %v2912_v31  ;;  %v2405_v49 = vpop.f32.mrf.mxu3  ;;  %v2319_v24 = vpop.f32.mrf.mxu1 }
 0x321   : > { %v2462_v35 = vpop.f32.mrf.mxu0  ;;  %v2406_v7 = vadd.f32 %v2405_v49, %v2316_v39 }
 0x322   : > { %v2693_v51 = vadd.f32 %v2629_v6, %v2549_v15 }
 0x323   : > { %v2720_v0 = vadd.f32 %v2656_v46, %v2406_v7 }
 0x324   : > { %vm2758_vm4 = vcmp.gt.f32.partialorder %v2693_v51, 0.0  ;;  %v2823_v48 = vmul.f32 %v5309_v29, %v2693_v51  ;;  %2501 = vmatmul.bf16.gmra.mxu0 %v4628_v34  ;;  %3618 = vmatmul.msk.bf16.gmra.mxu2 %vm753_vm2, %v4351_v63 }
 0x325   : > { %vm2785_vm5 = vcmp.gt.f32.partialorder %v2720_v0, 0.0  ;;  %v2850_v18 = vmul.f32 %v5309_v29, %v2720_v0 }
 0x326   : > { %v2887_v10 = vsel %vm2758_vm4, %v2693_v51, %v2823_v48 }
 0x327   : > { %2951 = vst [vmem:[%s4541_s15 + $0x18] sm:$0xff] %v2887_v10  ;;  %v2551_v1 = vpop.f32.mrf.mxu2  ;;  %v2914_v11 = vsel %vm2785_vm5, %v2720_v0, %v2850_v18  ;;  %v2637_v0 = vld [vmem:[%s4541_s15 + $0x58] sm:$0xff] }
 0x328   : > { %v2552_v30 = vadd.f32 %v2551_v1, %v2462_v35  ;;  %2978 = vst [vmem:[%s4541_s15 + $0xf0] sm:$0xff] %v2914_v11  ;;  %v2408_v3 = vpop.f32.mrf.mxu3  ;;  %v2321_v16 = vpop.f32.mrf.mxu1  ;;  %v2662_v35 = vld [vmem:[%s4541_s15 + $0x120] sm:$0xff] }
 0x329   : > { %v2464_v61 = vpop.f32.mrf.mxu0  ;;  %v2409_v43 = vadd.f32 %v2408_v3, %v2319_v24 }
 0x32a   : > { %v2695_v34 = vadd.f32 %v2631_v55, %v2552_v30  ;;  %v2664_v55 = vld [vmem:[%s4541_s15 + $0x130] sm:$0xff] }
 0x32b   : > { %v2722_v32 = vadd.f32 %v2658_v57, %v2409_v43 }
 0x32c   : > { %vm2760_vm6 = vcmp.gt.f32.partialorder %v2695_v34, 0.0  ;;  %v2825_v63 = vmul.f32 %v5309_v29, %v2695_v34 }
 0x32d   : > { %vm2787_vm7 = vcmp.gt.f32.partialorder %v2722_v32, 0.0  ;;  %v2852_v56 = vmul.f32 %v5309_v29, %v2722_v32 }
 0x32e   : > { %v2889_v59 = vsel %vm2760_vm6, %v2695_v34, %v2825_v63 }
 0x32f   : > { %2953 = vst [vmem:[%s4541_s15 + $0x28] sm:$0xff] %v2889_v59  ;;  %v2553_v47 = vpop.f32.mrf.mxu2  ;;  %v2916_v22 = vsel %vm2787_vm7, %v2722_v32, %v2852_v56  ;;  %v2639_v32 = vld [vmem:[%s4541_s15 + $0x68] sm:$0xff] }
 0x330   : > { %v2554_v23 = vadd.f32 %v2553_v47, %v2464_v61  ;;  %2980 = vst [vmem:[%s4541_s15 + $0x100] sm:$0xff] %v2916_v22  ;;  %v2410_v37 = vpop.f32.mrf.mxu3  ;;  %v2324_v44 = vpop.f32.mrf.mxu1 }
 0x331   : > { %v2467_v38 = vpop.f32.mrf.mxu0  ;;  %v2411_v62 = vadd.f32 %v2410_v37, %v2321_v16 }
 0x332   : > { %v2697_v13 = vadd.f32 %v2633_v60, %v2554_v23  ;;  %v2666_v23 = vld [vmem:[%s4541_s15 + $0x140] sm:$0xff] }
 0x333   : > { %v2724_v12 = vadd.f32 %v2660_v20, %v2411_v62  ;;  %v2641_v20 = vld [vmem:[%s4541_s15 + $0x78] sm:$0xff] }
 0x334   : > { %vm2762_vm8 = vcmp.gt.f32.partialorder %v2697_v13, 0.0  ;;  %v2827_v25 = vmul.f32 %v5309_v29, %v2697_v13  ;;  %2506 = vmatmul.bf16.gmra.mxu0 %v4655_v40  ;;  %3619 = vmatmul.msk.bf16.gmra.mxu2 %vm753_vm2, %v5686_v45 }
 0x335   : > { %vm2789_vm9 = vcmp.gt.f32.partialorder %v2724_v12, 0.0  ;;  %v2854_v14 = vmul.f32 %v5309_v29, %v2724_v12 }
 0x336   : > { %v2891_v39 = vsel %vm2762_vm8, %v2697_v13, %v2827_v25 }
 0x337   : > { %2955 = vst [vmem:[%s4541_s15 + $0x38] sm:$0xff] %v2891_v39  ;;  %v2556_v58 = vpop.f32.mrf.mxu2  ;;  %v2918_v17 = vsel %vm2789_vm9, %v2724_v12, %v2854_v14 }
 0x338   : > { %v2557_v2 = vadd.f32 %v2556_v58, %v2467_v38  ;;  %2982 = vst [vmem:[%s4541_s15 + $0x110] sm:$0xff] %v2918_v17  ;;  %v2413_v31 = vpop.f32.mrf.mxu3  ;;  %v2326_v6 = vpop.f32.mrf.mxu1  ;;  %v2668_v17 = vld [vmem:[%s4541_s15 + $0x150] sm:$0xff] }
 0x339   : > { %v2469_v5 = vpop.f32.mrf.mxu0  ;;  %v2414_v15 = vadd.f32 %v2413_v31, %v2324_v44 }
 0x33a   : > { %v2699_v40 = vadd.f32 %v2635_v52, %v2557_v2 }
 0x33b   : > { %v2726_v49 = vadd.f32 %v2662_v35, %v2414_v15  ;;  %v2643_v35 = vld [vmem:[%s4541_s15 + $0x88] sm:$0xff] }
 0x33c   : > { %vm2764_vm10 = vcmp.gt.f32.partialorder %v2699_v40, 0.0  ;;  %v2829_v45 = vmul.f32 %v5309_v29, %v2699_v40 }
 0x33d   : > { %vm2791_vm11 = vcmp.gt.f32.partialorder %v2726_v49, 0.0  ;;  %v2856_v7 = vmul.f32 %v5309_v29, %v2726_v49 }
 0x33e   : > { %v2893_v51 = vsel %vm2764_vm10, %v2699_v40, %v2829_v45 }
 0x33f   : > { %2957 = vst [vmem:[%s4541_s15 + $0x48] sm:$0xff] %v2893_v51  ;;  %v2558_v24 = vpop.f32.mrf.mxu2  ;;  %v2920_v46 = vsel %vm2791_vm11, %v2726_v49, %v2856_v7 }
 0x340   : > { %v2559_v48 = vadd.f32 %v2558_v24, %v2469_v5  ;;  %2984 = vst [vmem:[%s4541_s15 + $0x120] sm:$0xff] %v2920_v46  ;;  %v2415_v18 = vpop.f32.mrf.mxu3  ;;  %v2329_v30 = vpop.f32.mrf.mxu1  ;;  %v2670_v24 = vld [vmem:[%s4541_s15 + $0x160] sm:$0xff] }
 0x341   : > { %v2472_v10 = vpop.f32.mrf.mxu0  ;;  %v2416_v11 = vadd.f32 %v2415_v18, %v2326_v6 }
 0x342   : > { %v2701_v1 = vadd.f32 %v2637_v0, %v2559_v48 }
 0x343   : > { %v2728_v3 = vadd.f32 %v2664_v55, %v2416_v11  ;;  %v2645_v11 = vld [vmem:[%s4541_s15 + $0x98] sm:$0xff] }
 0x344   : > { %vm2766_vm12 = vcmp.gt.f32.partialorder %v2701_v1, 0.0  ;;  %v2831_v61 = vmul.f32 %v5309_v29, %v2701_v1  ;;  %2511 = vmatmul.bf16.gmra.mxu0 %v5691_v8  ;;  %3620 = vmatmul.msk.bf16.gmra.mxu2 %vm753_vm2, %v5693_v54 }
 0x345   : > { %vm2793_vm13 = vcmp.gt.f32.partialorder %v2728_v3, 0.0  ;;  %v2858_v43 = vmul.f32 %v5309_v29, %v2728_v3 }
 0x346   : > { %v2895_v34 = vsel %vm2766_vm12, %v2701_v1, %v2831_v61 }
 0x347   : > { %2959 = vst [vmem:[%s4541_s15 + $0x58] sm:$0xff] %v2895_v34  ;;  %v2561_v16 = vpop.f32.mrf.mxu2  ;;  %v2922_v57 = vsel %vm2793_vm13, %v2728_v3, %v2858_v43  ;;  %v2672_v43 = vld [vmem:[%s4541_s15 + $0x170] sm:$0xff] }
 0x348   : > { %v2562_v63 = vadd.f32 %v2561_v16, %v2472_v10  ;;  %2986 = vst [vmem:[%s4541_s15 + $0x130] sm:$0xff] %v2922_v57  ;;  %v2418_v56 = vpop.f32.mrf.mxu3  ;;  %v2331_v22 = vpop.f32.mrf.mxu1 }
 0x349   : > { %v2474_v59 = vpop.f32.mrf.mxu0  ;;  %v2419_v47 = vadd.f32 %v2418_v56, %v2329_v30 }
 0x34a   : > { %v2703_v8 = vadd.f32 %v2639_v32, %v2562_v63 }
 0x34b   : > { %v2730_v60 = vadd.f32 %v2666_v23, %v2419_v47  ;;  %v2647_v47 = vld [vmem:[%s4541_s15 + $0xa8] sm:$0xff] }
 0x34c   : > { %vm2768_vm14 = vcmp.gt.f32.partialorder %v2703_v8, 0.0  ;;  %v2833_v54 = vmul.f32 %v5309_v29, %v2703_v8 }
 0x34d   : > { %vm2795_vm15 = vcmp.gt.f32.partialorder %v2730_v60, 0.0  ;;  %v2860_v37 = vmul.f32 %v5309_v29, %v2730_v60 }
 0x34e   : > { %v2897_v38 = vsel %vm2768_vm14, %v2703_v8, %v2833_v54 }
 0x34f   : > { %2961 = vst [vmem:[%s4541_s15 + $0x68] sm:$0xff] %v2897_v38  ;;  %v2563_v13 = vpop.f32.mrf.mxu2  ;;  %v2924_v62 = vsel %vm2795_vm15, %v2730_v60, %v2860_v37  ;;  %v2674_v38 = vld [vmem:[%s4541_s15 + $0x180] sm:$0xff] }
 0x350   : > { %v2564_v44 = vadd.f32 %v2563_v13, %v2474_v59  ;;  %2988 = vst [vmem:[%s4541_s15 + $0x140] sm:$0xff] %v2924_v62  ;;  %v2420_v12 = vpop.f32.mrf.mxu3  ;;  %v2334_v58 = vpop.f32.mrf.mxu1 }
 0x351   : > { %v2477_v25 = vpop.f32.mrf.mxu0  ;;  %v2421_v14 = vadd.f32 %v2420_v12, %v2331_v22  ;;  %v2649_v12 = vld [vmem:[%s4541_s15 + $0xb8] sm:$0xff] }
 0x352   : > { %v2705_v39 = vadd.f32 %v2641_v20, %v2564_v44 }
 0x353   : > { %v2732_v52 = vadd.f32 %v2668_v17, %v2421_v14 }
 0x354   : > { %vm2770_vm0 = vcmp.gt.f32.partialorder %v2705_v39, 0.0  ;;  %v2835_v2 = vmul.f32 %v5309_v29, %v2705_v39  ;;  %2516 = vmatmul.bf16.gmra.mxu0 %v5699_v21  ;;  %3621 = vmatmul.msk.bf16.gmra.mxu2 %vm753_vm2, %v5701_v50 }
 0x355   : > { %vm2797_vm1 = vcmp.gt.f32.partialorder %v2732_v52, 0.0  ;;  %v2862_v31 = vmul.f32 %v5309_v29, %v2732_v52 }
 0x356   : > { %v2899_v5 = vsel %vm2770_vm0, %v2705_v39, %v2835_v2 }
 0x357   : > { %2963 = vst [vmem:[%s4541_s15 + $0x78] sm:$0xff] %v2899_v5  ;;  %v2566_v40 = vpop.f32.mrf.mxu2  ;;  %v2926_v15 = vsel %vm2797_vm1, %v2732_v52, %v2862_v31  ;;  %v2676_v52 = vld [vmem:[%s4541_s15 + $0x190] sm:$0xff] }
 0x358   : > { %v2567_v6 = vadd.f32 %v2566_v40, %v2477_v25  ;;  %2990 = vst [vmem:[%s4541_s15 + $0x150] sm:$0xff] %v2926_v15  ;;  %v2423_v49 = vpop.f32.mrf.mxu3  ;;  %v2336_v7 = vpop.f32.mrf.mxu1 }
 0x359   : > { %v2479_v45 = vpop.f32.mrf.mxu0  ;;  %v2424_v51 = vadd.f32 %v2423_v49, %v2334_v58  ;;  %v2651_v49 = vld [vmem:[%s4541_s15 + $0xc8] sm:$0xff] }
 0x35a   : > { %v2707_v21 = vadd.f32 %v2643_v35, %v2567_v6 }
 0x35b   : > { %v2734_v46 = vadd.f32 %v2670_v24, %v2424_v51 }
 0x35c   : > { %vm2772_vm3 = vcmp.gt.f32.partialorder %v2707_v21, 0.0  ;;  %v2837_v50 = vmul.f32 %v5309_v29, %v2707_v21 }
 0x35d   : > { %vm2799_vm4 = vcmp.gt.f32.partialorder %v2734_v46, 0.0  ;;  %v2864_v0 = vmul.f32 %v5309_v29, %v2734_v46 }
 0x35e   : > { %v2901_v48 = vsel %vm2772_vm3, %v2707_v21, %v2837_v50  ;;  %v2678_v50 = vld [vmem:[%s4541_s15 + $0x1a0] sm:$0xff] }
 0x35f   : > { %2965 = vst [vmem:[%s4541_s15 + $0x88] sm:$0xff] %v2901_v48  ;;  %v2568_v10 = vpop.f32.mrf.mxu2  ;;  %v2928_v18 = vsel %vm2799_vm4, %v2734_v46, %v2864_v0 }
 0x360   : > { %v2569_v1 = vadd.f32 %v2568_v10, %v2479_v45  ;;  %2992 = vst [vmem:[%s4541_s15 + $0x160] sm:$0xff] %v2928_v18  ;;  %v2425_v55 = vpop.f32.mrf.mxu3  ;;  %v2339_v34 = vpop.f32.mrf.mxu1 }
 0x361   : > { %v2482_v30 = vpop.f32.mrf.mxu0  ;;  %v2426_v3 = vadd.f32 %v2425_v55, %v2336_v7 }
 0x362   : > { %v2709_v61 = vadd.f32 %v2645_v11, %v2569_v1  ;;  %v2653_v11 = vld [vmem:[%s4541_s15 + $0xd8] sm:$0xff] }
 0x363   : > { %v2736_v57 = vadd.f32 %v2672_v43, %v2426_v3 }
 0x364   : > { %vm2774_vm5 = vcmp.gt.f32.partialorder %v2709_v61, 0.0  ;;  %v2839_v16 = vmul.f32 %v5309_v29, %v2709_v61  ;;  %2521 = vmatmul.bf16.gmra.mxu0 %v4775_v4  ;;  %3622 = vmatmul.msk.bf16.gmra.mxu2 %vm753_vm2, %v5706_v27 }
 0x365   : > { %vm2801_vm6 = vcmp.gt.f32.partialorder %v2736_v57, 0.0  ;;  %v2866_v32 = vmul.f32 %v5309_v29, %v2736_v57 }
 0x366   : > { %v2903_v63 = vsel %vm2774_vm5, %v2709_v61, %v2839_v16 }
 0x367   : > { %2967 = vst [vmem:[%s4541_s15 + $0x98] sm:$0xff] %v2903_v63  ;;  %v2571_v59 = vpop.f32.mrf.mxu2  ;;  %v2930_v56 = vsel %vm2801_vm6, %v2736_v57, %v2866_v32 }
 0x368   : > { %v2572_v8 = vadd.f32 %v2571_v59, %v2482_v30  ;;  %2994 = vst [vmem:[%s4541_s15 + $0x170] sm:$0xff] %v2930_v56  ;;  %v2428_v23 = vpop.f32.mrf.mxu3  ;;  %v2341_v60 = vpop.f32.mrf.mxu1 }
 0x369   : > { %v2484_v22 = vpop.f32.mrf.mxu0  ;;  %v2429_v54 = vadd.f32 %v2428_v23, %v2339_v34  ;;  %v2680_v34 = vld [vmem:[%s4541_s15 + $0x1b0] sm:$0xff] }
 0x36a   : > { %v2711_v4 = vadd.f32 %v2647_v47, %v2572_v8  ;;  %v2655_v47 = vld [vmem:[%s4541_s15 + $0xe8] sm:$0xff] }
 0x36b   : > { %v2738_v37 = vadd.f32 %v2674_v38, %v2429_v54  ;;  %v2682_v54 = vld [vmem:[%s4541_s15 + $0x1c0] sm:$0xff] }
 0x36c   : > { %vm2776_vm7 = vcmp.gt.f32.partialorder %v2711_v4, 0.0  ;;  %v2841_v27 = vmul.f32 %v5309_v29, %v2711_v4 }
 0x36d   : > { %vm2803_vm8 = vcmp.gt.f32.partialorder %v2738_v37, 0.0  ;;  %v2868_v62 = vmul.f32 %v5309_v29, %v2738_v37 }
 0x36e   : > { %v2905_v13 = vsel %vm2776_vm7, %v2711_v4, %v2841_v27 }
 0x36f   : > { %2969 = vst [vmem:[%s4541_s15 + $0xa8] sm:$0xff] %v2905_v13  ;;  %v2573_v44 = vpop.f32.mrf.mxu2  ;;  %v2932_v20 = vsel %vm2803_vm8, %v2738_v37, %v2868_v62 }
 0x370   : > { %v2574_v25 = vadd.f32 %v2573_v44, %v2484_v22  ;;  %2996 = vst [vmem:[%s4541_s15 + $0x180] sm:$0xff] %v2932_v20  ;;  %v2430_v14 = vpop.f32.mrf.mxu3  ;;  %v2344_v2 = vpop.f32.mrf.mxu1  ;;  %v2657_v20 = vld [vmem:[%s4541_s15 + $0xf8] sm:$0xff] }
 0x371   : > { %v2487_v39 = vpop.f32.mrf.mxu0  ;;  %v2431_v17 = vadd.f32 %v2430_v14, %v2341_v60 }
 0x372   : > { %v2713_v58 = vadd.f32 %v2649_v12, %v2574_v25 }
 0x373   : > { %v2740_v31 = vadd.f32 %v2676_v52, %v2431_v17 }
 0x374   : > { %vm2778_vm9 = vcmp.gt.f32.partialorder %v2713_v58, 0.0  ;;  %v2843_v5 = vmul.f32 %v5309_v29, %v2713_v58  ;;  %2526 = vmatmul.bf16.gmra.mxu0 %v5097_v28  ;;  %3623 = vmatmul.msk.bf16.gmra.mxu2 %vm753_vm2, %v5100_v33 }
 0x375   : > { %vm2805_vm10 = vcmp.gt.f32.partialorder %v2740_v31, 0.0  ;;  %v2870_v15 = vmul.f32 %v5309_v29, %v2740_v31 }
 0x376   : > { %v2907_v40 = vsel %vm2778_vm9, %v2713_v58, %v2843_v5  ;;  %v2684_v58 = vld [vmem:[%s4541_s15 + $0x1d0] sm:$0xff] }
 0x377   : > { %2971 = vst [vmem:[%s4541_s15 + $0xb8] sm:$0xff] %v2907_v40  ;;  %v2576_v6 = vpop.f32.mrf.mxu2  ;;  %v2934_v35 = vsel %vm2805_vm10, %v2740_v31, %v2870_v15 }
 0x378   : > { %v2577_v45 = vadd.f32 %v2576_v6, %v2487_v39  ;;  %2998 = vst [vmem:[%s4541_s15 + $0x190] sm:$0xff] %v2934_v35  ;;  %v2433_v51 = vpop.f32.mrf.mxu3  ;;  %v2346_v24 = vpop.f32.mrf.mxu1  ;;  %v2659_v35 = vld [vmem:[%s4541_s15 + $0x108] sm:$0xff] }
 0x379   : > { %v2489_v21 = vpop.f32.mrf.mxu0  ;;  %v2434_v7 = vadd.f32 %v2433_v51, %v2344_v2 }
 0x37a   : > { %v2715_v28 = vadd.f32 %v2651_v49, %v2577_v45 }
 0x37b   : > { %v2742_v46 = vadd.f32 %v2678_v50, %v2434_v7 }
 0x37c   : > { %vm2780_vm11 = vcmp.gt.f32.partialorder %v2715_v28, 0.0  ;;  %v2845_v33 = vmul.f32 %v5309_v29, %v2715_v28 }
 0x37d   : > { %vm2807_vm12 = vcmp.gt.f32.partialorder %v2742_v46, 0.0  ;;  %v2872_v0 = vmul.f32 %v5309_v29, %v2742_v46 }
 0x37e   : > { %v2909_v48 = vsel %vm2780_vm11, %v2715_v28, %v2845_v33  ;;  %v2686_v28 = vld [vmem:[%s4541_s15 + $0x1e0] sm:$0xff] }
 0x37f   : > { %2973 = vst [vmem:[%s4541_s15 + $0xc8] sm:$0xff] %v2909_v48  ;;  %v2578_v10 = vpop.f32.mrf.mxu2  ;;  %v2936_v18 = vsel %vm2807_vm12, %v2742_v46, %v2872_v0 }
 0x380   : > { %v2579_v1 = vadd.f32 %v2578_v10, %v2489_v21  ;;  %3000 = vst [vmem:[%s4541_s15 + $0x1a0] sm:$0xff] %v2936_v18  ;;  %v2435_v55 = vpop.f32.mrf.mxu3  ;;  %v2349_v43 = vpop.f32.mrf.mxu1  ;;  %v2661_v18 = vld [vmem:[%s4541_s15 + $0x118] sm:$0xff] }
 0x381   : > { %v2492_v30 = vpop.f32.mrf.mxu0  ;;  %v2436_v3 = vadd.f32 %v2435_v55, %v2346_v24 }
 0x382   : > { %v2717_v61 = vadd.f32 %v2653_v11, %v2579_v1 }
 0x383   : > { %v2744_v57 = vadd.f32 %v2680_v34, %v2436_v3 }
 0x384   : > { %vm2782_vm13 = vcmp.gt.f32.partialorder %v2717_v61, 0.0  ;;  %v2847_v16 = vmul.f32 %v5309_v29, %v2717_v61  ;;  %2531 = vmatmul.bf16.gmra.mxu0 %v5416_v36  ;;  %3624 = vmatmul.msk.bf16.gmra.mxu2 %vm753_vm2, %v5420_v19 }
 0x385   : > { %vm2809_vm14 = vcmp.gt.f32.partialorder %v2744_v57, 0.0  ;;  %v2874_v32 = vmul.f32 %v5309_v29, %v2744_v57 }
 0x386   : > { %v2911_v63 = vsel %vm2782_vm13, %v2717_v61, %v2847_v16  ;;  %v2688_v61 = vld [vmem:[%s4541_s15 + $0x1f0] sm:$0xff] }
 0x387   : > { %2975 = vst [vmem:[%s4541_s15 + $0xd8] sm:$0xff] %v2911_v63  ;;  %v2581_v59 = vpop.f32.mrf.mxu2  ;;  %v2938_v56 = vsel %vm2809_vm14, %v2744_v57, %v2874_v32 }
 0x388   : > { %v2582_v8 = vadd.f32 %v2581_v59, %v2492_v30  ;;  %3002 = vst [vmem:[%s4541_s15 + $0x1b0] sm:$0xff] %v2938_v56  ;;  %v2438_v23 = vpop.f32.mrf.mxu3  ;;  %v2351_v38 = vpop.f32.mrf.mxu1  ;;  %v2663_v59 = vld [vmem:[%s4541_s15 + $0x128] sm:$0xff] }
 0x389   : > { %v2494_v22 = vpop.f32.mrf.mxu0  ;;  %v2439_v36 = vadd.f32 %v2438_v23, %v2349_v43 }
 0x38a   : > { %v2719_v4 = vadd.f32 %v2655_v47, %v2582_v8 }
 0x38b   : > { %v2746_v60 = vadd.f32 %v2682_v54, %v2439_v36  ;;  %v2665_v36 = vld [vmem:[%s4541_s15 + $0x138] sm:$0xff] }
 0x38c   : > { %vm2784_vm15 = vcmp.gt.f32.partialorder %v2719_v4, 0.0  ;;  %v2849_v19 = vmul.f32 %v5309_v29, %v2719_v4 }
 0x38d   : > { %vm2811_vm2 = vcmp.gt.f32.partialorder %v2746_v60, 0.0  ;;  %v2876_v37 = vmul.f32 %v5309_v29, %v2746_v60 }
 0x38e   : > { %v2913_v27 = vsel %vm2784_vm15, %v2719_v4, %v2849_v19 }
 0x38f   : > { %2977 = vst [vmem:[%s4541_s15 + $0xe8] sm:$0xff] %v2913_v27  ;;  %v2583_v13 = vpop.f32.mrf.mxu2  ;;  %v2940_v62 = vsel %vm2811_vm2, %v2746_v60, %v2876_v37 }
 0x390   : > { %v2584_v44 = vadd.f32 %v2583_v13, %v2494_v22  ;;  %3004 = vst [vmem:[%s4541_s15 + $0x1c0] sm:$0xff] %v2940_v62  ;;  %v2440_v12 = vpop.f32.mrf.mxu3  ;;  %v2354_v52 = vpop.f32.mrf.mxu1  ;;  %v2667_v13 = vld [vmem:[%s4541_s15 + $0x148] sm:$0xff] }
 0x391   : > { %v2497_v25 = vpop.f32.mrf.mxu0  ;;  %v2441_v14 = vadd.f32 %v2440_v12, %v2351_v38 }
 0x392   : > { %v2721_v39 = vadd.f32 %v2657_v20, %v2584_v44 }
 0x393   : > { %v2748_v2 = vadd.f32 %v2684_v58, %v2441_v14  ;;  %v2669_v14 = vld [vmem:[%s4541_s15 + $0x158] sm:$0xff] }
 0x394   : > { %vm2786_vm0 = vcmp.gt.f32.partialorder %v2721_v39, 0.0  ;;  %v2851_v17 = vmul.f32 %v5309_v29, %v2721_v39 }
 0x395   : > { %vm2813_vm1 = vcmp.gt.f32.partialorder %v2748_v2, 0.0  ;;  %v2878_v31 = vmul.f32 %v5309_v29, %v2748_v2 }
 0x396   : > { %v2915_v5 = vsel %vm2786_vm0, %v2721_v39, %v2851_v17 }
 0x397   : > { %2979 = vst [vmem:[%s4541_s15 + $0xf8] sm:$0xff] %v2915_v5  ;;  %v2586_v40 = vpop.f32.mrf.mxu2  ;;  %v2942_v15 = vsel %vm2813_vm1, %v2748_v2, %v2878_v31 }
 0x398   : > { %v2587_v6 = vadd.f32 %v2586_v40, %v2497_v25  ;;  %3006 = vst [vmem:[%s4541_s15 + $0x1d0] sm:$0xff] %v2942_v15  ;;  %v2443_v49 = vpop.f32.mrf.mxu3  ;;  %v2356_v48 = vpop.f32.mrf.mxu1  ;;  %v2671_v40 = vld [vmem:[%s4541_s15 + $0x168] sm:$0xff] }
 0x399   : > { %v2499_v45 = vpop.f32.mrf.mxu0  ;;  %v2444_v51 = vadd.f32 %v2443_v49, %v2354_v52 }
 0x39a   : > { %v2723_v21 = vadd.f32 %v2659_v35, %v2587_v6 }
 0x39b   : > { %v2750_v24 = vadd.f32 %v2686_v28, %v2444_v51  ;;  %v2673_v51 = vld [vmem:[%s4541_s15 + $0x178] sm:$0xff] }
 0x39c   : > { %vm2788_vm3 = vcmp.gt.f32.partialorder %v2723_v21, 0.0  ;;  %v2853_v7 = vmul.f32 %v5309_v29, %v2723_v21 }
 0x39d   : > { %vm2815_vm4 = vcmp.gt.f32.partialorder %v2750_v24, 0.0  ;;  %v2880_v33 = vmul.f32 %v5309_v29, %v2750_v24 }
 0x39e   : > { %v2917_v50 = vsel %vm2788_vm3, %v2723_v21, %v2853_v7 }
 0x39f   : > { %2981 = vst [vmem:[%s4541_s15 + $0x108] sm:$0xff] %v2917_v50  ;;  %v2588_v46 = vpop.f32.mrf.mxu2  ;;  %v2944_v0 = vsel %vm2815_vm4, %v2750_v24, %v2880_v33 }
 0x3a0   : > { %v2589_v10 = vadd.f32 %v2588_v46, %v2499_v45  ;;  %3008 = vst [vmem:[%s4541_s15 + $0x1e0] sm:$0xff] %v2944_v0  ;;  %v2445_v11 = vpop.f32.mrf.mxu3 }
 0x3a1   : > { %v2502_v1 = vpop.f32.mrf.mxu0  ;;  %v2446_v55 = vadd.f32 %v2445_v11, %v2356_v48  ;;  %v2675_v48 = vld [vmem:[%s4541_s15 + $0x188] sm:$0xff] }
 0x3a2   : > { %v2725_v30 = vadd.f32 %v2661_v18, %v2589_v10 }
 0x3a3   : > { %v2752_v34 = vadd.f32 %v2688_v61, %v2446_v55  ;;  %v2677_v55 = vld [vmem:[%s4541_s15 + $0x198] sm:$0xff] }
 0x3a4   : > { %vm2790_vm5 = vcmp.gt.f32.partialorder %v2725_v30, 0.0  ;;  %v2855_v3 = vmul.f32 %v5309_v29, %v2725_v30 }
 0x3a5   : > { %vm2817_vm6 = vcmp.gt.f32.partialorder %v2752_v34, 0.0  ;;  %v2882_v16 = vmul.f32 %v5309_v29, %v2752_v34 }
 0x3a6   : > { %v2919_v43 = vsel %vm2790_vm5, %v2725_v30, %v2855_v3 }
 0x3a7   : > { %2983 = vst [vmem:[%s4541_s15 + $0x118] sm:$0xff] %v2919_v43  ;;  %v2591_v57 = vpop.f32.mrf.mxu2  ;;  %v2946_v63 = vsel %vm2817_vm6, %v2752_v34, %v2882_v16 }
 0x3a8   : > { %v2592_v32 = vadd.f32 %v2591_v57, %v2502_v1  ;;  %3010 = vst [vmem:[%s4541_s15 + $0x1f0] sm:$0xff] %v2946_v63  ;;  %v2679_v63 = vld [vmem:[%s4541_s15 + $0x1a8] sm:$0xff] }
 0x3a9   : > { %v2504_v56 = vpop.f32.mrf.mxu0 }
 0x3aa   : > { %v2727_v8 = vadd.f32 %v2663_v59, %v2592_v32 }
 0x3ac   : > { %vm2792_vm7 = vcmp.gt.f32.partialorder %v2727_v8, 0.0  ;;  %v2857_v47 = vmul.f32 %v5309_v29, %v2727_v8 }
 0x3ae   : > { %v2921_v22 = vsel %vm2792_vm7, %v2727_v8, %v2857_v47  ;;  %v1985_v47 = vld [vmem:[%s4541_s15 + $0x1b8] sm:$0xff] }
 0x3af   : > { %2985 = vst [vmem:[%s4541_s15 + $0x128] sm:$0xff] %v2921_v22  ;;  %v2593_v23 = vpop.f32.mrf.mxu2 }
 0x3b0   : > { %v2594_v4 = vadd.f32 %v2593_v23, %v2504_v56  ;;  %v2049_v23 = vadd.f32 %v1985_v47, %v5377_v42 }
 0x3b1   : > { %v2507_v54 = vpop.f32.mrf.mxu0 }
 0x3b2   : > { %v2729_v19 = vadd.f32 %v2665_v36, %v2594_v4 }
 0x3b4   : > { %vm2794_vm8 = vcmp.gt.f32.partialorder %v2729_v19, 0.0  ;;  %v2859_v60 = vmul.f32 %v5309_v29, %v2729_v19 }
 0x3b6   : > { %v2923_v38 = vsel %vm2794_vm8, %v2729_v19, %v2859_v60 }
 0x3b7   : > { %2987 = vst [vmem:[%s4541_s15 + $0x138] sm:$0xff] %v2923_v38  ;;  %v2596_v27 = vpop.f32.mrf.mxu2  ;;  %v1987_v38 = vld [vmem:[%s4541_s15 + $0x1c8] sm:$0xff] }
 0x3b8   : > { %v2597_v37 = vadd.f32 %v2596_v27, %v2507_v54 }
 0x3b9   : > { %v2509_v62 = vpop.f32.mrf.mxu0 }
 0x3ba   : > { %v2731_v44 = vadd.f32 %v2667_v13, %v2597_v37  ;;  %v2051_v37 = vadd.f32 %v1987_v38, %v5388_v9 }
 0x3bc   : > { %vm2796_vm9 = vcmp.gt.f32.partialorder %v2731_v44, 0.0  ;;  %v2861_v20 = vmul.f32 %v5309_v29, %v2731_v44 }
 0x3be   : > { %v2925_v25 = vsel %vm2796_vm9, %v2731_v44, %v2861_v20 }
 0x3bf   : > { %2989 = vst [vmem:[%s4541_s15 + $0x148] sm:$0xff] %v2925_v25  ;;  %v2598_v12 = vpop.f32.mrf.mxu2  ;;  %v1989_v25 = vld [vmem:[%s4541_s15 + $0x1d8] sm:$0xff] }
 0x3c0   : > { %v2599_v39 = vadd.f32 %v2598_v12, %v2509_v62 }
 0x3c1   : > { %v2512_v58 = vpop.f32.mrf.mxu0 }
 0x3c2   : > { %v2733_v17 = vadd.f32 %v2669_v14, %v2599_v39  ;;  %v2053_v39 = vadd.f32 %v1989_v25, %v5393_v26 }
 0x3c4   : > { %vm2798_vm10 = vcmp.gt.f32.partialorder %v2733_v17, 0.0  ;;  %v2863_v2 = vmul.f32 %v5309_v29, %v2733_v17 }
 0x3c6   : > { %v2927_v52 = vsel %vm2798_vm10, %v2733_v17, %v2863_v2 }
 0x3c7   : > { %2991 = vst [vmem:[%s4541_s15 + $0x158] sm:$0xff] %v2927_v52  ;;  %v2601_v5 = vpop.f32.mrf.mxu2  ;;  %v1991_v52 = vld [vmem:[%s4541_s15 + $0x1e8] sm:$0xff] }
 0x3c8   : > { %v2602_v31 = vadd.f32 %v2601_v5, %v2512_v58 }
 0x3c9   : > { %v2514_v15 = vpop.f32.mrf.mxu0 }
 0x3ca   : > { %v2735_v6 = vadd.f32 %v2671_v40, %v2602_v31  ;;  %v2055_v31 = vadd.f32 %v1991_v52, %v5404_v41 }
 0x3cc   : > { %vm2800_vm11 = vcmp.gt.f32.partialorder %v2735_v6, 0.0  ;;  %v2865_v35 = vmul.f32 %v5309_v29, %v2735_v6 }
 0x3ce   : > { %v2929_v45 = vsel %vm2800_vm11, %v2735_v6, %v2865_v35  ;;  %v1993_v35 = vld [vmem:[%s4541_s15 + $0x1f8] sm:$0xff] }
 0x3cf   : > { %2993 = vst [vmem:[%s4541_s15 + $0x168] sm:$0xff] %v2929_v45  ;;  %v2603_v49 = vpop.f32.mrf.mxu2 }
 0x3d0   : > { %v2604_v21 = vadd.f32 %v2603_v49, %v2514_v15 }
 0x3d1   : > { %v2517_v28 = vpop.f32.mrf.mxu0 }
 0x3d2   : > { %v2737_v7 = vadd.f32 %v2673_v51, %v2604_v21  ;;  %v2057_v21 = vadd.f32 %v1993_v35, %v5411_v53 }
 0x3d4   : > { %vm2802_vm12 = vcmp.gt.f32.partialorder %v2737_v7, 0.0  ;;  %v2867_v24 = vmul.f32 %v5309_v29, %v2737_v7 }
 0x3d6   : > { %v2931_v50 = vsel %vm2802_vm12, %v2737_v7, %v2867_v24 }
 0x3d7   : > { %2995 = vst [vmem:[%s4541_s15 + $0x178] sm:$0xff] %v2931_v50  ;;  %v2606_v33 = vpop.f32.mrf.mxu2 }
 0x3d8   : > { %v2607_v46 = vadd.f32 %v2606_v33, %v2517_v28 }
 0x3d9   : > { %v2519_v0 = vpop.f32.mrf.mxu0 }
 0x3da   : > { %v2739_v10 = vadd.f32 %v2675_v48, %v2607_v46 }
 0x3dc   : > { %vm2804_vm13 = vcmp.gt.f32.partialorder %v2739_v10, 0.0  ;;  %v2869_v18 = vmul.f32 %v5309_v29, %v2739_v10 }
 0x3de   : > { %v2933_v1 = vsel %vm2804_vm13, %v2739_v10, %v2869_v18 }
 0x3df   : > { %2997 = vst [vmem:[%s4541_s15 + $0x188] sm:$0xff] %v2933_v1  ;;  %v2608_v11 = vpop.f32.mrf.mxu2 }
 0x3e0   : > { %v2609_v30 = vadd.f32 %v2608_v11, %v2519_v0 }
 0x3e1   : > { %v2522_v61 = vpop.f32.mrf.mxu0 }
 0x3e2   : > { %v2741_v3 = vadd.f32 %v2677_v55, %v2609_v30 }
 0x3e4   : > { %vm2806_vm14 = vcmp.gt.f32.partialorder %v2741_v3, 0.0  ;;  %v2871_v34 = vmul.f32 %v5309_v29, %v2741_v3 }
 0x3e6   : > { %v2935_v43 = vsel %vm2806_vm14, %v2741_v3, %v2871_v34 }
 0x3e7   : > { %2999 = vst [vmem:[%s4541_s15 + $0x198] sm:$0xff] %v2935_v43  ;;  %v2611_v16 = vpop.f32.mrf.mxu2 }
 0x3e8   : > { %v2612_v57 = vadd.f32 %v2611_v16, %v2522_v61 }
 0x3e9   : > { %v2524_v32 = vpop.f32.mrf.mxu0 }
 0x3ea   : > { %v2743_v59 = vadd.f32 %v2679_v63, %v2612_v57 }
 0x3ec   : > { %vm2808_vm15 = vcmp.gt.f32.partialorder %v2743_v59, 0.0  ;;  %v2873_v56 = vmul.f32 %v5309_v29, %v2743_v59 }
 0x3ee   : > { %v2937_v8 = vsel %vm2808_vm15, %v2743_v59, %v2873_v56 }
 0x3ef   : > { %3001 = vst [vmem:[%s4541_s15 + $0x1a8] sm:$0xff] %v2937_v8  ;;  %v2613_v22 = vpop.f32.mrf.mxu2 }
 0x3f0   : > { %v2614_v4 = vadd.f32 %v2613_v22, %v2524_v32 }
 0x3f1   : > { %v2527_v36 = vpop.f32.mrf.mxu0 }
 0x3f2   : > { %v2745_v54 = vadd.f32 %v2614_v4, %v2049_v23 }
 0x3f4   : > { %vm2810_vm2 = vcmp.gt.f32.partialorder %v2745_v54, 0.0  ;;  %v2875_v19 = vmul.f32 %v5309_v29, %v2745_v54 }
 0x3f6   : > { %v2939_v60 = vsel %vm2810_vm2, %v2745_v54, %v2875_v19 }
 0x3f7   : > { %3003 = vst [vmem:[%s4541_s15 + $0x1b8] sm:$0xff] %v2939_v60  ;;  %v2616_v27 = vpop.f32.mrf.mxu2 }
 0x3f8   : > { %v2617_v13 = vadd.f32 %v2616_v27, %v2527_v36 }
 0x3f9   : > { %v2529_v44 = vpop.f32.mrf.mxu0 }
 0x3fa   : > { %v2747_v62 = vadd.f32 %v2617_v13, %v2051_v37 }
 0x3fc   : > { %vm2812_vm0 = vcmp.gt.f32.partialorder %v2747_v62, 0.0  ;;  %v2877_v42 = vmul.f32 %v5309_v29, %v2747_v62 }
 0x3fe   : > { %v2941_v20 = vsel %vm2812_vm0, %v2747_v62, %v2877_v42 }
 0x3ff   : > { %3005 = vst [vmem:[%s4541_s15 + $0x1c8] sm:$0xff] %v2941_v20  ;;  %v2618_v12 = vpop.f32.mrf.mxu2 }
 0x400   : > { %v2619_v14 = vadd.f32 %v2618_v12, %v2529_v44 }
 0x401   : > { %v2532_v17 = vpop.f32.mrf.mxu0 }
 0x402   : > { %v2749_v58 = vadd.f32 %v2619_v14, %v2053_v39 }
 0x404   : > { %vm2814_vm1 = vcmp.gt.f32.partialorder %v2749_v58, 0.0  ;;  %v2879_v9 = vmul.f32 %v5309_v29, %v2749_v58 }
 0x406   : > { %v2943_v2 = vsel %vm2814_vm1, %v2749_v58, %v2879_v9 }
 0x407   : > { %3007 = vst [vmem:[%s4541_s15 + $0x1d8] sm:$0xff] %v2943_v2  ;;  %v2621_v5 = vpop.f32.mrf.mxu2 }
 0x408   : > { %v2622_v40 = vadd.f32 %v2621_v5, %v2532_v17 }
 0x409   : > { %v2534_v45 = vpop.f32.mrf.mxu0 }
 0x40a   : > { %v2751_v15 = vadd.f32 %v2622_v40, %v2055_v31 }
 0x40c   : > { %vm2816_vm3 = vcmp.gt.f32.partialorder %v2751_v15, 0.0  ;;  %v2881_v26 = vmul.f32 %v5309_v29, %v2751_v15 }
 0x40e   : > { %v2945_v6 = vsel %vm2816_vm3, %v2751_v15, %v2881_v26 }
 0x40f   : > { %3009 = vst [vmem:[%s4541_s15 + $0x1e8] sm:$0xff] %v2945_v6  ;;  %v2623_v49 = vpop.f32.mrf.mxu2 }
 0x410   : > { %v2624_v51 = vadd.f32 %v2623_v49, %v2534_v45 }
 0x412   : > { %v2753_v28 = vadd.f32 %v2624_v51, %v2057_v21 }
 0x414   : > { %vm2818_vm4 = vcmp.gt.f32.partialorder %v2753_v28, 0.0  ;;  %v2883_v7 = vmul.f32 %v5309_v29, %v2753_v28 }
 0x416   : > { %v2947_v24 = vsel %vm2818_vm4, %v2753_v28, %v2883_v7 }
 0x417   : > { %3011 = vst [vmem:[%s4541_s15 + $0x1f8] sm:$0xff] %v2947_v24 }
 0x418 PF: > { %s16_s19 = sadd.s32 1, %s3811_s19   ;;  %s5734_s17 = smov %s3807_s18 }
 0x419   : > { %p13_p8 = scmp.ge.s32.totalorder %s16_s19, 4   ;;  %s5735_s18 = smov %s5737_s20 }
 0x41b   :  { %15 = sbr.rel (!%p13_p8) target bundleno = 4 (0x4), region = 73 }
 0x420   :  { %3044 = vsyncpa [#allocation4], 1 }
 0x421   :  { %3046 = vsyncpa [#allocation4 + $0x1], 1 }

</bundles_post_ra>
